<compile_context>
chip_gen: v7x
topology: tpu7x:2x2x1
jax: 0.10.0
libtpu: 0.0.40
codegen_flags: <defaults>
</compile_context>

<pallas_src>
import functools

import jax
import jax.numpy as jnp
from jax.experimental import pallas as pl
from jax.experimental.pallas import tpu as pltpu


_VMEM = pl.BlockSpec(memory_space=pltpu.MemorySpace.VMEM)


# ----------------------------- Pallas kernels ------------------------------ #

def _conv_tanh_pool_kernel(p_ref, w_ref, b_ref, o_ref, *, pool_tanh):
    """Fused conv(as matmul) + bias + tanh + AvgPool2d(2,2) (+ optional tanh).

    p_ref: (4, Mq, K)  im2col patches, leading dim = pool phase (oh%2)*2+(ow%2),
                       rows within a phase ordered (b, oh//2, ow//2).
    w_ref: (K, OC)     conv weight, feature order = (i*KW + j)*C + c.
    b_ref: (1, OC)
    o_ref: (Mq, OC)    pooled activation, rows ordered (b, h', w').
    """
    w = w_ref[...]
    b = b_ref[...]
    acc = jnp.zeros(o_ref.shape, jnp.float32)
    for phase in range(4):                 # static unroll; 4 small MXU matmuls
        y = jnp.dot(p_ref[phase], w, preferred_element_type=jnp.float32) + b
        acc = acc + jnp.tanh(y)            # Tanh is applied BEFORE the pool.
    pooled = acc * 0.25                    # 2x2 average over the 4 phases.
    if pool_tanh:
        pooled = jnp.tanh(pooled)
    o_ref[...] = pooled.astype(o_ref.dtype)


def _tail_kernel(x_ref, w3_ref, b3_ref, w4_ref, b4_ref, w5_ref, b5_ref, o_ref):
    """conv3(16->120 on 5x5 == FC 400->120) + tanh + FC(120->84) + tanh + FC(84->10)."""
    h = jnp.tanh(jnp.dot(x_ref[...], w3_ref[...],
                         preferred_element_type=jnp.float32) + b3_ref[...])
    h = jnp.tanh(jnp.dot(h, w4_ref[...],
                         preferred_element_type=jnp.float32) + b4_ref[...])
    o_ref[...] = (jnp.dot(h, w5_ref[...],
                          preferred_element_type=jnp.float32) + b5_ref[...]
                  ).astype(o_ref.dtype)


def conv_tanh_pool(patches, w2d, bias, pool_tanh):
    _, mq, _ = patches.shape
    oc = w2d.shape[1]
    kernel = functools.partial(_conv_tanh_pool_kernel, pool_tanh=pool_tanh)
    return pl.pallas_call(
        kernel,
        out_shape=jax.ShapeDtypeStruct((mq, oc), jnp.float32),
        in_specs=[_VMEM, _VMEM, _VMEM],
        out_specs=_VMEM,
    )(patches.astype(jnp.float32), w2d.astype(jnp.float32),
      bias.reshape(1, oc).astype(jnp.float32))


def fc_tail(x, w3, b3, w4, b4, w5, b5):
    B = x.shape[0]
    f32 = jnp.float32
    return pl.pallas_call(
        _tail_kernel,
        out_shape=jax.ShapeDtypeStruct((B, 10), f32),
        in_specs=[_VMEM] * 7,
        out_specs=_VMEM,
    )(x.astype(f32), w3.astype(f32), b3.reshape(1, -1).astype(f32),
      w4.astype(f32), b4.reshape(1, -1).astype(f32),
      w5.astype(f32), b5.reshape(1, -1).astype(f32))


# ------------------------------ JAX glue ----------------------------------- #

def _phase_major_patches(x_nhwc, kh, kw):
    """x: (B, H, W, C) -> patches (4, B*(OH/2)*(OW/2), kh*kw*C).

    Leading dim = pool phase (oh%2)*2 + (ow%2); feature order = (i*kw + j)*C + c.
    """
    B, H, W, C = x_nhwc.shape
    OH, OW = H - kh + 1, W - kw + 1
    crops = []
    for i in range(kh):
        for j in range(kw):
            crops.append(x_nhwc[:, i:i + OH, j:j + OW, :])      # (B, OH, OW, C)
    p = jnp.concatenate(crops, axis=-1)                         # (B, OH, OW, kh*kw*C)
    K = kh * kw * C
    p = p.reshape(B, OH // 2, 2, OW // 2, 2, K)
    p = p.transpose(2, 4, 0, 1, 3, 5)                           # (2, 2, B, OH/2, OW/2, K)
    return p.reshape(4, B * (OH // 2) * (OW // 2), K)


def _conv_weight_2d(w):
    # PyTorch OIHW -> (KH*KW*I, O) with feature order (i*KW + j)*C + c.
    OC, IC, KH, KW = w.shape
    return w.transpose(2, 3, 1, 0).reshape(KH * KW * IC, OC)


def lenet5_forward(x, p):
    # nn.Sequential(Conv(1,6,5,p=2), Tanh, AvgPool2, Conv(6,16,5), Tanh,
    #               AvgPool2, Tanh, Conv(16,120,5), Tanh, Flatten,
    #               Linear(120,84), Tanh, Linear(84,10))
    B = x.shape[0]
    x = x.astype(jnp.float32)

    # Stage 1: Conv(1->6, 5x5, pad=2) + Tanh + AvgPool(2)  -> (B*14*14, 6)
    xp = jnp.pad(x, ((0, 0), (0, 0), (2, 2), (2, 2)))            # (B,1,32,32)
    x_nhwc = xp.transpose(0, 2, 3, 1)                            # (B,32,32,1)
    p1 = _phase_major_patches(x_nhwc, 5, 5)                      # (4, B*196, 25)
    a1 = conv_tanh_pool(p1, _conv_weight_2d(p["w1"]), p["b1"], pool_tanh=False)

    # Stage 2: Conv(6->16, 5x5) + Tanh + AvgPool(2) + Tanh  -> (B*5*5, 16)
    a1_nhwc = a1.reshape(B, 14, 14, 6)
    p2 = _phase_major_patches(a1_nhwc, 5, 5)                     # (4, B*25, 150)
    a2 = conv_tanh_pool(p2, _conv_weight_2d(p["w2"]), p["b2"], pool_tanh=True)

    # Tail: Conv(16->120, 5x5 on 5x5) == FC(400->120), Tanh, FC(120,84), Tanh, FC(84,10)
    x3 = a2.reshape(B, 400)                                      # cols = (h, w, c)
    w3 = _conv_weight_2d(p["w3"])                                # (400, 120), same order
    return fc_tail(x3, w3, p["b3"], p["w4"].T, p["b4"], p["w5"].T, p["b5"])


# --------------------------- reference (pure JAX) --------------------------- #

def _ref_forward(x, p):
    def conv(x, w, b, pad):
        y = jax.lax.conv_general_dilated(
            x, w, window_strides=(1, 1),
            padding=[(pad, pad), (pad, pad)],
            dimension_numbers=("NCHW", "OIHW", "NCHW"))
        return y + b[None, :, None, None]

    def pool(x):
        B, C, H, W = x.shape
        return x.reshape(B, C, H // 2, 2, W // 2, 2).mean(axis=(3, 5))

    x = jnp.tanh(conv(x, p["w1"], p["b1"], 2))
    x = pool(x)
    x = jnp.tanh(conv(x, p["w2"], p["b2"], 0))
    x = jnp.tanh(pool(x))
    x = jnp.tanh(conv(x, p["w3"], p["b3"], 0))
    x = x.reshape(x.shape[0], 120)
    x = jnp.tanh(x @ p["w4"].T + p["b4"])
    return x @ p["w5"].T + p["b5"]


# ---------------------------------- main ------------------------------------ #

def _init_params(key):
    # Deterministic init mimicking PyTorch's default uniform(-1/sqrt(fan_in), ...).
    def uni(k, shape, fan_in):
        bound = 1.0 / jnp.sqrt(fan_in)
        return jax.random.uniform(k, shape, jnp.float32, -bound, bound)

    ks = jax.random.split(key, 10)
    return {
        "w1": uni(ks[0], (6, 1, 5, 5), 1 * 25),     "b1": uni(ks[1], (6,), 1 * 25),
        "w2": uni(ks[2], (16, 6, 5, 5), 6 * 25),    "b2": uni(ks[3], (16,), 6 * 25),
        "w3": uni(ks[4], (120, 16, 5, 5), 16 * 25), "b3": uni(ks[5], (120,), 16 * 25),
        "w4": uni(ks[6], (84, 120), 120),           "b4": uni(ks[7], (84,), 120),
        "w5": uni(ks[8], (10, 84), 84),             "b5": uni(ks[9], (10,), 84),
    }


if __name__ == "__main__":
    key = jax.random.PRNGKey(0)
    k_param, k_x = jax.random.split(key)
    params = _init_params(k_param)
    # LeNet-5 requires 28x28 inputs for the 120-wide flatten; batch=2.
    x = jax.random.normal(k_x, (2, 1, 28, 28), jnp.float32)

    out = jax.block_until_ready(jax.jit(lenet5_forward)(x, params))
    assert out.shape == (2, 10), out.shape

    ref = jax.block_until_ready(_ref_forward(x, params))
    assert jnp.allclose(out, ref, atol=2e-2, rtol=2e-2), (
        "mismatch vs reference", float(jnp.max(jnp.abs(out - ref))))

    print("KERNEL_OK")
</pallas_src>

<mosaic_0001>
module attributes {stable_mosaic.version = 11 : i64} {
  func.func @_conv_tanh_pool_kernel(%arg0: memref<4x392x25xf32, #tpu.memory_space<vmem>>, %arg1: memref<25x6xf32, #tpu.memory_space<vmem>>, %arg2: memref<1x6xf32, #tpu.memory_space<vmem>>, %arg3: memref<392x6xf32, #tpu.memory_space<vmem>>) attributes {dimension_semantics = [], scalar_prefetch = 0 : i64, scratch_operands = 0 : i64, tpu.core_type = #tpu.core_type<tc>} {
    %c0 = arith.constant 0 : index
    %c0_0 = arith.constant 0 : index
    %0 = vector.load %arg1[%c0, %c0_0] : memref<25x6xf32, #tpu.memory_space<vmem>>, vector<25x6xf32>
    %c0_1 = arith.constant 0 : index
    %c0_2 = arith.constant 0 : index
    %1 = vector.load %arg2[%c0_1, %c0_2] : memref<1x6xf32, #tpu.memory_space<vmem>>, vector<1x6xf32>
    %cst = arith.constant 0.000000e+00 : f32
    %2 = vector.broadcast %cst : f32 to vector<392x6xf32>
    %c0_3 = arith.constant 0 : index
    %c0_4 = arith.constant 0 : index
    %c0_5 = arith.constant 0 : index
    %3 = vector.load %arg0[%c0_3, %c0_4, %c0_5] : memref<4x392x25xf32, #tpu.memory_space<vmem>>, vector<1x392x25xf32>
    %4 = vector.shape_cast %3 : vector<1x392x25xf32> to vector<392x25xf32>
    %cst_6 = arith.constant dense<0.000000e+00> : vector<392x6xf32>
    %5 = tpu.matmul %4, %0, %cst_6 {dimension_numbers = #tpu.dot_dimension_numbers<[1], [0], [0], [1], [0, 0, 1, 1], [], []>} : vector<392x25xf32>, vector<25x6xf32>, vector<392x6xf32> -> vector<392x6xf32>
    %6 = vector.broadcast %1 : vector<1x6xf32> to vector<392x6xf32>
    %7 = arith.addf %5, %6 : vector<392x6xf32>
    %8 = math.tanh %7 : vector<392x6xf32>
    %9 = arith.addf %2, %8 : vector<392x6xf32>
    %c1 = arith.constant 1 : index
    %c0_7 = arith.constant 0 : index
    %c0_8 = arith.constant 0 : index
    %10 = vector.load %arg0[%c1, %c0_7, %c0_8] : memref<4x392x25xf32, #tpu.memory_space<vmem>>, vector<1x392x25xf32>
    %11 = vector.shape_cast %10 : vector<1x392x25xf32> to vector<392x25xf32>
    %cst_9 = arith.constant dense<0.000000e+00> : vector<392x6xf32>
    %12 = tpu.matmul %11, %0, %cst_9 {dimension_numbers = #tpu.dot_dimension_numbers<[1], [0], [0], [1], [0, 0, 1, 1], [], []>} : vector<392x25xf32>, vector<25x6xf32>, vector<392x6xf32> -> vector<392x6xf32>
    %13 = vector.broadcast %1 : vector<1x6xf32> to vector<392x6xf32>
    %14 = arith.addf %12, %13 : vector<392x6xf32>
    %15 = math.tanh %14 : vector<392x6xf32>
    %16 = arith.addf %9, %15 : vector<392x6xf32>
    %c2 = arith.constant 2 : index
    %c0_10 = arith.constant 0 : index
    %c0_11 = arith.constant 0 : index
    %17 = vector.load %arg0[%c2, %c0_10, %c0_11] : memref<4x392x25xf32, #tpu.memory_space<vmem>>, vector<1x392x25xf32>
    %18 = vector.shape_cast %17 : vector<1x392x25xf32> to vector<392x25xf32>
    %cst_12 = arith.constant dense<0.000000e+00> : vector<392x6xf32>
    %19 = tpu.matmul %18, %0, %cst_12 {dimension_numbers = #tpu.dot_dimension_numbers<[1], [0], [0], [1], [0, 0, 1, 1], [], []>} : vector<392x25xf32>, vector<25x6xf32>, vector<392x6xf32> -> vector<392x6xf32>
    %20 = vector.broadcast %1 : vector<1x6xf32> to vector<392x6xf32>
    %21 = arith.addf %19, %20 : vector<392x6xf32>
    %22 = math.tanh %21 : vector<392x6xf32>
    %23 = arith.addf %16, %22 : vector<392x6xf32>
    %c3 = arith.constant 3 : index
    %c0_13 = arith.constant 0 : index
    %c0_14 = arith.constant 0 : index
    %24 = vector.load %arg0[%c3, %c0_13, %c0_14] : memref<4x392x25xf32, #tpu.memory_space<vmem>>, vector<1x392x25xf32>
    %25 = vector.shape_cast %24 : vector<1x392x25xf32> to vector<392x25xf32>
    %cst_15 = arith.constant dense<0.000000e+00> : vector<392x6xf32>
    %26 = tpu.matmul %25, %0, %cst_15 {dimension_numbers = #tpu.dot_dimension_numbers<[1], [0], [0], [1], [0, 0, 1, 1], [], []>} : vector<392x25xf32>, vector<25x6xf32>, vector<392x6xf32> -> vector<392x6xf32>
    %27 = vector.broadcast %1 : vector<1x6xf32> to vector<392x6xf32>
    %28 = arith.addf %26, %27 : vector<392x6xf32>
    %29 = math.tanh %28 : vector<392x6xf32>
    %30 = arith.addf %23, %29 : vector<392x6xf32>
    %cst_16 = arith.constant 2.500000e-01 : f32
    %31 = vector.broadcast %cst_16 : f32 to vector<392x6xf32>
    %32 = arith.mulf %30, %31 : vector<392x6xf32>
    %c0_17 = arith.constant 0 : index
    %c0_18 = arith.constant 0 : index
    %33 = vector.load %arg3[%c0_17, %c0_18] : memref<392x6xf32, #tpu.memory_space<vmem>>, vector<392x6xf32>
    tpu.vector_store %arg3[%c0_17, %c0_18], %32 {strides = array<i32>} : memref<392x6xf32, #tpu.memory_space<vmem>>, vector<392x6xf32>,
    return
  }
}

module attributes {stable_mosaic.version = 11 : i64} {
  func.func @_conv_tanh_pool_kernel(%arg0: memref<4x50x150xf32, #tpu.memory_space<vmem>>, %arg1: memref<150x16xf32, #tpu.memory_space<vmem>>, %arg2: memref<1x16xf32, #tpu.memory_space<vmem>>, %arg3: memref<50x16xf32, #tpu.memory_space<vmem>>) attributes {dimension_semantics = [], scalar_prefetch = 0 : i64, scratch_operands = 0 : i64, tpu.core_type = #tpu.core_type<tc>} {
    %c0 = arith.constant 0 : index
    %c0_0 = arith.constant 0 : index
    %0 = vector.load %arg1[%c0, %c0_0] : memref<150x16xf32, #tpu.memory_space<vmem>>, vector<150x16xf32>
    %c0_1 = arith.constant 0 : index
    %c0_2 = arith.constant 0 : index
    %1 = vector.load %arg2[%c0_1, %c0_2] : memref<1x16xf32, #tpu.memory_space<vmem>>, vector<1x16xf32>
    %cst = arith.constant 0.000000e+00 : f32
    %2 = vector.broadcast %cst : f32 to vector<50x16xf32>
    %c0_3 = arith.constant 0 : index
    %c0_4 = arith.constant 0 : index
    %c0_5 = arith.constant 0 : index
    %3 = vector.load %arg0[%c0_3, %c0_4, %c0_5] : memref<4x50x150xf32, #tpu.memory_space<vmem>>, vector<1x50x150xf32>
    %4 = vector.shape_cast %3 : vector<1x50x150xf32> to vector<50x150xf32>
    %cst_6 = arith.constant dense<0.000000e+00> : vector<50x16xf32>
    %5 = tpu.matmul %4, %0, %cst_6 {dimension_numbers = #tpu.dot_dimension_numbers<[1], [0], [0], [1], [0, 0, 1, 1], [], []>} : vector<50x150xf32>, vector<150x16xf32>, vector<50x16xf32> -> vector<50x16xf32>
    %6 = vector.broadcast %1 : vector<1x16xf32> to vector<50x16xf32>
    %7 = arith.addf %5, %6 : vector<50x16xf32>
    %8 = math.tanh %7 : vector<50x16xf32>
    %9 = arith.addf %2, %8 : vector<50x16xf32>
    %c1 = arith.constant 1 : index
    %c0_7 = arith.constant 0 : index
    %c0_8 = arith.constant 0 : index
    %10 = vector.load %arg0[%c1, %c0_7, %c0_8] : memref<4x50x150xf32, #tpu.memory_space<vmem>>, vector<1x50x150xf32>
    %11 = vector.shape_cast %10 : vector<1x50x150xf32> to vector<50x150xf32>
    %cst_9 = arith.constant dense<0.000000e+00> : vector<50x16xf32>
    %12 = tpu.matmul %11, %0, %cst_9 {dimension_numbers = #tpu.dot_dimension_numbers<[1], [0], [0], [1], [0, 0, 1, 1], [], []>} : vector<50x150xf32>, vector<150x16xf32>, vector<50x16xf32> -> vector<50x16xf32>
    %13 = vector.broadcast %1 : vector<1x16xf32> to vector<50x16xf32>
    %14 = arith.addf %12, %13 : vector<50x16xf32>
    %15 = math.tanh %14 : vector<50x16xf32>
    %16 = arith.addf %9, %15 : vector<50x16xf32>
    %c2 = arith.constant 2 : index
    %c0_10 = arith.constant 0 : index
    %c0_11 = arith.constant 0 : index
    %17 = vector.load %arg0[%c2, %c0_10, %c0_11] : memref<4x50x150xf32, #tpu.memory_space<vmem>>, vector<1x50x150xf32>
    %18 = vector.shape_cast %17 : vector<1x50x150xf32> to vector<50x150xf32>
    %cst_12 = arith.constant dense<0.000000e+00> : vector<50x16xf32>
    %19 = tpu.matmul %18, %0, %cst_12 {dimension_numbers = #tpu.dot_dimension_numbers<[1], [0], [0], [1], [0, 0, 1, 1], [], []>} : vector<50x150xf32>, vector<150x16xf32>, vector<50x16xf32> -> vector<50x16xf32>
    %20 = vector.broadcast %1 : vector<1x16xf32> to vector<50x16xf32>
    %21 = arith.addf %19, %20 : vector<50x16xf32>
    %22 = math.tanh %21 : vector<50x16xf32>
    %23 = arith.addf %16, %22 : vector<50x16xf32>
    %c3 = arith.constant 3 : index
    %c0_13 = arith.constant 0 : index
    %c0_14 = arith.constant 0 : index
    %24 = vector.load %arg0[%c3, %c0_13, %c0_14] : memref<4x50x150xf32, #tpu.memory_space<vmem>>, vector<1x50x150xf32>
    %25 = vector.shape_cast %24 : vector<1x50x150xf32> to vector<50x150xf32>
    %cst_15 = arith.constant dense<0.000000e+00> : vector<50x16xf32>
    %26 = tpu.matmul %25, %0, %cst_15 {dimension_numbers = #tpu.dot_dimension_numbers<[1], [0], [0], [1], [0, 0, 1, 1], [], []>} : vector<50x150xf32>, vector<150x16xf32>, vector<50x16xf32> -> vector<50x16xf32>
    %27 = vector.broadcast %1 : vector<1x16xf32> to vector<50x16xf32>
    %28 = arith.addf %26, %27 : vector<50x16xf32>
    %29 = math.tanh %28 : vector<50x16xf32>
    %30 = arith.addf %23, %29 : vector<50x16xf32>
    %cst_16 = arith.constant 2.500000e-01 : f32
    %31 = vector.broadcast %cst_16 : f32 to vector<50x16xf32>
    %32 = arith.mulf %30, %31 : vector<50x16xf32>
    %33 = math.tanh %32 : vector<50x16xf32>
    %c0_17 = arith.constant 0 : index
    %c0_18 = arith.constant 0 : index
    %34 = vector.load %arg3[%c0_17, %c0_18] : memref<50x16xf32, #tpu.memory_space<vmem>>, vector<50x16xf32>
    tpu.vector_store %arg3[%c0_17, %c0_18], %33 {strides = array<i32>} : memref<50x16xf32, #tpu.memory_space<vmem>>, vector<50x16xf32>,
    return
  }
}

module attributes {stable_mosaic.version = 11 : i64} {
  func.func @_tail_kernel(%arg0: memref<2x400xf32, #tpu.memory_space<vmem>>, %arg1: memref<400x120xf32, #tpu.memory_space<vmem>>, %arg2: memref<1x120xf32, #tpu.memory_space<vmem>>, %arg3: memref<120x84xf32, #tpu.memory_space<vmem>>, %arg4: memref<1x84xf32, #tpu.memory_space<vmem>>, %arg5: memref<84x10xf32, #tpu.memory_space<vmem>>, %arg6: memref<1x10xf32, #tpu.memory_space<vmem>>, %arg7: memref<2x10xf32, #tpu.memory_space<vmem>>) attributes {dimension_semantics = [], scalar_prefetch = 0 : i64, scratch_operands = 0 : i64, tpu.core_type = #tpu.core_type<tc>} {
    %c0 = arith.constant 0 : index
    %c0_0 = arith.constant 0 : index
    %0 = vector.load %arg0[%c0, %c0_0] : memref<2x400xf32, #tpu.memory_space<vmem>>, vector<2x400xf32>
    %c0_1 = arith.constant 0 : index
    %c0_2 = arith.constant 0 : index
    %1 = vector.load %arg1[%c0_1, %c0_2] : memref<400x120xf32, #tpu.memory_space<vmem>>, vector<400x120xf32>
    %cst = arith.constant dense<0.000000e+00> : vector<2x120xf32>
    %2 = tpu.matmul %0, %1, %cst {dimension_numbers = #tpu.dot_dimension_numbers<[1], [0], [0], [1], [0, 0, 1, 1], [], []>} : vector<2x400xf32>, vector<400x120xf32>, vector<2x120xf32> -> vector<2x120xf32>
    %c0_3 = arith.constant 0 : index
    %c0_4 = arith.constant 0 : index
    %3 = vector.load %arg2[%c0_3, %c0_4] : memref<1x120xf32, #tpu.memory_space<vmem>>, vector<1x120xf32>
    %4 = vector.broadcast %3 : vector<1x120xf32> to vector<2x120xf32>
    %5 = arith.addf %2, %4 : vector<2x120xf32>
    %6 = math.tanh %5 : vector<2x120xf32>
    %c0_5 = arith.constant 0 : index
    %c0_6 = arith.constant 0 : index
    %7 = vector.load %arg3[%c0_5, %c0_6] : memref<120x84xf32, #tpu.memory_space<vmem>>, vector<120x84xf32>
    %cst_7 = arith.constant dense<0.000000e+00> : vector<2x84xf32>
    %8 = tpu.matmul %6, %7, %cst_7 {dimension_numbers = #tpu.dot_dimension_numbers<[1], [0], [0], [1], [0, 0, 1, 1], [], []>} : vector<2x120xf32>, vector<120x84xf32>, vector<2x84xf32> -> vector<2x84xf32>
    %c0_8 = arith.constant 0 : index
    %c0_9 = arith.constant 0 : index
    %9 = vector.load %arg4[%c0_8, %c0_9] : memref<1x84xf32, #tpu.memory_space<vmem>>, vector<1x84xf32>
    %10 = vector.broadcast %9 : vector<1x84xf32> to vector<2x84xf32>
    %11 = arith.addf %8, %10 : vector<2x84xf32>
    %12 = math.tanh %11 : vector<2x84xf32>
    %c0_10 = arith.constant 0 : index
    %c0_11 = arith.constant 0 : index
    %13 = vector.load %arg5[%c0_10, %c0_11] : memref<84x10xf32, #tpu.memory_space<vmem>>, vector<84x10xf32>
    %cst_12 = arith.constant dense<0.000000e+00> : vector<2x10xf32>
    %14 = tpu.matmul %12, %13, %cst_12 {dimension_numbers = #tpu.dot_dimension_numbers<[1], [0], [0], [1], [0, 0, 1, 1], [], []>} : vector<2x84xf32>, vector<84x10xf32>, vector<2x10xf32> -> vector<2x10xf32>
    %c0_13 = arith.constant 0 : index
    %c0_14 = arith.constant 0 : index
    %15 = vector.load %arg6[%c0_13, %c0_14] : memref<1x10xf32, #tpu.memory_space<vmem>>, vector<1x10xf32>
    %16 = vector.broadcast %15 : vector<1x10xf32> to vector<2x10xf32>
    %17 = arith.addf %14, %16 : vector<2x10xf32>
    %c0_15 = arith.constant 0 : index
    %c0_16 = arith.constant 0 : index
    %18 = vector.load %arg7[%c0_15, %c0_16] : memref<2x10xf32, #tpu.memory_space<vmem>>, vector<2x10xf32>
    tpu.vector_store %arg7[%c0_15, %c0_16], %17 {strides = array<i32>} : memref<2x10xf32, #tpu.memory_space<vmem>>, vector<2x10xf32>,
    return
  }
}

</mosaic_0001>

<bundles_post_ra>
// kernel: lenet5_forward.3
= control target key start
LH: loop header
LB: loop body
LE: loop exit
PB: predicated region body
PF: predicated region fallthrough
CT: control target
= control target key end

     0   :  { %v4158_v0 = vmov 0.0|0.0   ;;  %vm222_vm0 = vcmask 1040384   ;;  %vm4159_vm1 = vmmov 0   ;;  %v4160_v6 = vmov 0.0   ;;  %s5936_s1 = inlined_call_operand.vmem [shape: f32[25,6], index: 1, kind: input, shape index: {}]   ;;  %s5937_s0 = inlined_call_operand.vmem [shape: f32[4,392,25], index: 0, kind: input, shape index: {}]   ;;  %s5938_s2 = inlined_call_operand.vmem [shape: f32[1,6], index: 2, kind: input, shape index: {}]   ;;  %s5939_s3 = inlined_call_operand.vmem [shape: f32[392,6], index: 3, kind: output, shape index: {}]  }
   0x1   :  { %3732 = vmatprep.subr.bf16.mxu0 %v4158_v0  ;;  %v14_v1 = vld [vmem:[%s5936_s1] sm:$0xff]  ;;  %v15_v2 = vld [vmem:[%s5936_s1 + $0x8] sm:$0xff]  ;;  %3739 = vmatprep.subr.bf16.mxu1 %v4158_v0  ;;  %v16_v3 = vld [vmem:[%s5936_s1 + $0x10] sm:$0xff]  ;;  %vm4161_vm2 = vmmov 1   ;;  %vm74_vm4 = vcmask 203776   ;;  %vm2498_vm5 = vcmask 48128  }
   0x2   :  { %v3733_v4 = vpack.c.bf16 %v15_v2, %v14_v1  ;;  %v17_v5 = vld [vmem:[%s5936_s1 + $0x18] sm:$0x1]  ;;  %3120 = vmatprep.mubr.msk.f32.mxu0 %vm4159_vm1, %v4160_v6  ;;  %3275 = vmatprep.mubr.msk.f32.mxu1 %vm4159_vm1, %v4160_v6  ;;  %vm4198_vm3 = vmpackc.low %vm222_vm0, %vm4161_vm2  ;;  %v19_v9 = vld [vmem:[%s5937_s0] sm:$0xff] }
   0x3   :  { %v3736_v7 = vpack.c.bf16 %v17_v5, %v16_v3  ;;  %v2603_v10 = vld [vmem:[%s5937_s0 + $0x188] sm:$0xff]  ;;  %v2604_v12 = vld [vmem:[%s5937_s0 + $0x190] sm:$0xff]  ;;  %v2605_v14 = vld [vmem:[%s5937_s0 + $0x198] sm:$0xff] }
   0x4   :  { %3734 = vmatpush3.bf16.msra.mxu0 %v3733_v4  ;;  %3741 = vmatpush3.bf16.msra.mxu1 %v3733_v4  ;;  %v20_v11 = vld [vmem:[%s5937_s0 + $0x8] sm:$0xff]  ;;  %v21_v13 = vld [vmem:[%s5937_s0 + $0x10] sm:$0xff]  ;;  %v22_v15 = vld [vmem:[%s5937_s0 + $0x18] sm:$0xff] }
   0x5   :  { %3735 = vmatprep.subr.bf16.mxu0 %v4158_v0  ;;  %3742 = vmatprep.subr.bf16.mxu1 %v4158_v0  ;;  %v2606_v16 = vld [vmem:[%s5937_s0 + $0x1a0] sm:$0xff]  ;;  %v2607_v18 = vld [vmem:[%s5937_s0 + $0x1a8] sm:$0xff]  ;;  %v2608_v20 = vld [vmem:[%s5937_s0 + $0x1b0] sm:$0xff] }
   0x6   :  { %v23_v17 = vld [vmem:[%s5937_s0 + $0x20] sm:$0xff]  ;;  %v24_v19 = vld [vmem:[%s5937_s0 + $0x28] sm:$0xff]  ;;  %v25_v21 = vld [vmem:[%s5937_s0 + $0x30] sm:$0xff] }
   0x7   :  { %v2609_v22 = vld [vmem:[%s5937_s0 + $0x1b8] sm:$0xff]  ;;  %v2610_v24 = vld [vmem:[%s5937_s0 + $0x1c0] sm:$0xff]  ;;  %v2611_v26 = vld [vmem:[%s5937_s0 + $0x1c8] sm:$0xff] }
   0x8   :  { %3738 = vmatpush3.bf16.msk.msra.mxu0 %vm4198_vm3, %v3736_v7  ;;  %3745 = vmatpush3.bf16.msk.msra.mxu1 %vm4198_vm3, %v3736_v7  ;;  %v26_v23 = vld [vmem:[%s5937_s0 + $0x38] sm:$0xff]  ;;  %v27_v25 = vld [vmem:[%s5937_s0 + $0x40] sm:$0xff]  ;;  %v28_v27 = vld [vmem:[%s5937_s0 + $0x48] sm:$0xff] }
   0x9   :  { %3746 = vmatprep.subr.bf16.mxu0 %v4158_v0  ;;  %3753 = vmatprep.subr.bf16.mxu1 %v4158_v0  ;;  %v2612_v28 = vld [vmem:[%s5937_s0 + $0x1d0] sm:$0xff]  ;;  %v2613_v30 = vld [vmem:[%s5937_s0 + $0x1d8] sm:$0xff]  ;;  %v2614_v32 = vld [vmem:[%s5937_s0 + $0x1e0] sm:$0xff] }
   0xa   :  { %v29_v29 = vld [vmem:[%s5937_s0 + $0x50] sm:$0xff]  ;;  %v30_v31 = vld [vmem:[%s5937_s0 + $0x58] sm:$0xff]  ;;  %v31_v33 = vld [vmem:[%s5937_s0 + $0x60] sm:$0xff] }
   0xb   :  { %3121 = vmatmul.mubr.msk.f32.vlgmr.msra.gmra.mrb[0].mxu0 %vm74_vm4, %v19_v9  ;;  %3276 = vmatmul.mubr.msk.f32.vlgmr.msra.gmra.mrb[0].mxu1 %vm74_vm4, %v2603_v10  ;;  %v2615_v34 = vld [vmem:[%s5937_s0 + $0x1e8] sm:$0xff]  ;;  %v2616_v36 = vld [vmem:[%s5937_s0 + $0x1f0] sm:$0xff]  ;;  %v2617_v38 = vld [vmem:[%s5937_s0 + $0x1f8] sm:$0xff] }
   0xc   :  { %3748 = vmatpush3.bf16.msra.mxu0 %v3733_v4  ;;  %3123 = vmatprep.mubr.msk.f32.mxu0 %vm4159_vm1, %v4160_v6  ;;  %v32_v35 = vld [vmem:[%s5937_s0 + $0x68] sm:$0xff]  ;;  %v33_v37 = vld [vmem:[%s5937_s0 + $0x70] sm:$0xff]  ;;  %v34_v39 = vld [vmem:[%s5937_s0 + $0x78] sm:$0xff] }
   0xd   :  { %3755 = vmatpush3.bf16.msra.mxu1 %v3733_v4  ;;  %3278 = vmatprep.mubr.msk.f32.mxu1 %vm4159_vm1, %v4160_v6  ;;  %v2618_v40 = vld [vmem:[%s5937_s0 + $0x200] sm:$0xff]  ;;  %v2619_v42 = vld [vmem:[%s5937_s0 + $0x208] sm:$0xff]  ;;  %v2620_v44 = vld [vmem:[%s5937_s0 + $0x210] sm:$0xff] }
   0xe   :  { %3749 = vmatprep.subr.bf16.mxu0 %v4158_v0  ;;  %3756 = vmatprep.subr.bf16.mxu1 %v4158_v0  ;;  %v35_v41 = vld [vmem:[%s5937_s0 + $0x80] sm:$0xff]  ;;  %v36_v43 = vld [vmem:[%s5937_s0 + $0x88] sm:$0xff]  ;;  %v37_v45 = vld [vmem:[%s5937_s0 + $0x90] sm:$0xff] }
   0xf   :  { %3124 = vmatmul.mubr.msk.f32.gmra.mrb[2].mxu0 %vm74_vm4, %v20_v11  ;;  %3279 = vmatmul.mubr.msk.f32.gmra.mrb[2].mxu1 %vm74_vm4, %v2604_v12  ;;  %v2621_v46 = vld [vmem:[%s5937_s0 + $0x218] sm:$0xff]  ;;  %v2622_v48 = vld [vmem:[%s5937_s0 + $0x220] sm:$0xff]  ;;  %v2623_v50 = vld [vmem:[%s5937_s0 + $0x228] sm:$0xff] }
  0x10   :  { %3126 = vmatprep.mubr.msk.f32.mxu0 %vm4159_vm1, %v4160_v6  ;;  %3281 = vmatprep.mubr.msk.f32.mxu1 %vm4159_vm1, %v4160_v6  ;;  %v38_v47 = vld [vmem:[%s5937_s0 + $0x98] sm:$0xff]  ;;  %v39_v49 = vld [vmem:[%s5937_s0 + $0xa0] sm:$0xff]  ;;  %v40_v51 = vld [vmem:[%s5937_s0 + $0xa8] sm:$0xff] }
  0x11   :  { %3752 = vmatpush3.bf16.msk.msra.mxu0 %vm4198_vm3, %v3736_v7  ;;  %3759 = vmatpush3.bf16.msk.msra.mxu1 %vm4198_vm3, %v3736_v7  ;;  %v2624_v52 = vld [vmem:[%s5937_s0 + $0x230] sm:$0xff]  ;;  %v2625_v54 = vld [vmem:[%s5937_s0 + $0x238] sm:$0xff]  ;;  %v2626_v56 = vld [vmem:[%s5937_s0 + $0x240] sm:$0xff] }
  0x12   :  { %v41_v53 = vld [vmem:[%s5937_s0 + $0xb0] sm:$0xff]  ;;  %v42_v55 = vld [vmem:[%s5937_s0 + $0xb8] sm:$0xff]  ;;  %v43_v57 = vld [vmem:[%s5937_s0 + $0xc0] sm:$0xff] }
  0x13   :  { %3127 = vmatmul.mubr.msk.f32.gmra.mrb[4].mxu0 %vm74_vm4, %v21_v13  ;;  %3282 = vmatmul.mubr.msk.f32.gmra.mrb[4].mxu1 %vm74_vm4, %v2605_v14  ;;  %v2627_v58 = vld [vmem:[%s5937_s0 + $0x248] sm:$0xff]  ;;  %v2628_v60 = vld [vmem:[%s5937_s0 + $0x250] sm:$0xff]  ;;  %v2629_v62 = vld [vmem:[%s5937_s0 + $0x258] sm:$0xff] }
  0x14   :  { %3129 = vmatprep.mubr.msk.f32.mxu0 %vm4159_vm1, %v4160_v6  ;;  %3284 = vmatprep.mubr.msk.f32.mxu1 %vm4159_vm1, %v4160_v6  ;;  %v44_v59 = vld [vmem:[%s5937_s0 + $0xc8] sm:$0xff]  ;;  %v45_v61 = vld [vmem:[%s5937_s0 + $0xd0] sm:$0xff]  ;;  %v46_v63 = vld [vmem:[%s5937_s0 + $0xd8] sm:$0xff] }
  0x15   :  { %v2630_v0 = vld [vmem:[%s5937_s0 + $0x260] sm:$0xff]  ;;  %v2631_v2 = vld [vmem:[%s5937_s0 + $0x268] sm:$0xff]  ;;  %v2632_v4 = vld [vmem:[%s5937_s0 + $0x270] sm:$0xff] }
  0x16   :  { %v47_v1 = vld [vmem:[%s5937_s0 + $0xe0] sm:$0xff]  ;;  %v48_v3 = vld [vmem:[%s5937_s0 + $0xe8] sm:$0xff]  ;;  %v49_v5 = vld [vmem:[%s5937_s0 + $0xf0] sm:$0xff] }
  0x17   :  { %3130 = vmatmul.mubr.msk.f32.gmra.mrb[6].mxu0 %vm74_vm4, %v22_v15  ;;  %3285 = vmatmul.mubr.msk.f32.gmra.mrb[6].mxu1 %vm74_vm4, %v2606_v16  ;;  %v2633_v7 = vld [vmem:[%s5937_s0 + $0x278] sm:$0xff]  ;;  %v2634_v9 = vld [vmem:[%s5937_s0 + $0x280] sm:$0xff]  ;;  %v2635_v11 = vld [vmem:[%s5937_s0 + $0x288] sm:$0xff] }
  0x18   :  { %3132 = vmatprep.mubr.msk.f32.mxu0 %vm4159_vm1, %v4160_v6  ;;  %3287 = vmatprep.mubr.msk.f32.mxu1 %vm4159_vm1, %v4160_v6  ;;  %v50_v8 = vld [vmem:[%s5937_s0 + $0xf8] sm:$0xff]  ;;  %v51_v10 = vld [vmem:[%s5937_s0 + $0x100] sm:$0xff]  ;;  %v52_v12 = vld [vmem:[%s5937_s0 + $0x108] sm:$0xff] }
  0x19   :  { %v2636_v13 = vld [vmem:[%s5937_s0 + $0x290] sm:$0xff]  ;;  %v2637_v15 = vld [vmem:[%s5937_s0 + $0x298] sm:$0xff] }
  0x1a   :  { %v53_v14 = vld [vmem:[%s5937_s0 + $0x110] sm:$0xff]  ;;  %v54_v16 = vld [vmem:[%s5937_s0 + $0x118] sm:$0xff] }
  0x1b   :  { %3133 = vmatmul.mubr.msk.f32.gmra.mrb[8].mxu0 %vm74_vm4, %v23_v17  ;;  %3288 = vmatmul.mubr.msk.f32.gmra.mrb[8].mxu1 %vm74_vm4, %v2607_v18  ;;  %v2638_v17 = vld [vmem:[%s5937_s0 + $0x2a0] sm:$0xff] }
  0x1c   :  { %3135 = vmatprep.mubr.msk.f32.mxu0 %vm4159_vm1, %v4160_v6  ;;  %3290 = vmatprep.mubr.msk.f32.mxu1 %vm4159_vm1, %v4160_v6  ;;  %v55_v18 = vld [vmem:[%s5937_s0 + $0x120] sm:$0xff] }
  0x1f   :  { %3136 = vmatmul.mubr.msk.f32.gmra.mrb[10].mxu0 %vm74_vm4, %v24_v19  ;;  %3291 = vmatmul.mubr.msk.f32.gmra.mrb[10].mxu1 %vm74_vm4, %v2608_v20  ;;  %v2639_v19 = vld [vmem:[%s5937_s0 + $0x2a8] sm:$0xff] }
  0x20   :  { %3138 = vmatprep.mubr.msk.f32.mxu0 %vm4159_vm1, %v4160_v6  ;;  %3293 = vmatprep.mubr.msk.f32.mxu1 %vm4159_vm1, %v4160_v6  ;;  %v56_v20 = vld [vmem:[%s5937_s0 + $0x128] sm:$0xff] }
  0x23   :  { %3139 = vmatmul.mubr.msk.f32.gmra.mrb[12].mxu0 %vm74_vm4, %v25_v21  ;;  %3294 = vmatmul.mubr.msk.f32.gmra.mrb[12].mxu1 %vm74_vm4, %v2609_v22  ;;  %v2640_v21 = vld [vmem:[%s5937_s0 + $0x2b0] sm:$0xff] }
  0x24   :  { %3141 = vmatprep.mubr.msk.f32.mxu0 %vm4159_vm1, %v4160_v6  ;;  %3296 = vmatprep.mubr.msk.f32.mxu1 %vm4159_vm1, %v4160_v6  ;;  %v57_v22 = vld [vmem:[%s5937_s0 + $0x130] sm:$0xff] }
  0x27   :  { %3142 = vmatmul.mubr.msk.f32.gmra.mrb[14].mxu0 %vm74_vm4, %v26_v23  ;;  %3297 = vmatmul.mubr.msk.f32.gmra.mrb[14].mxu1 %vm74_vm4, %v2610_v24  ;;  %v2641_v23 = vld [vmem:[%s5937_s0 + $0x2b8] sm:$0xff] }
  0x28   :  { %3144 = vmatprep.mubr.msk.f32.mxu0 %vm4159_vm1, %v4160_v6  ;;  %3299 = vmatprep.mubr.msk.f32.mxu1 %vm4159_vm1, %v4160_v6  ;;  %v58_v24 = vld [vmem:[%s5937_s0 + $0x138] sm:$0xff] }
  0x2b   :  { %3145 = vmatmul.mubr.msk.f32.gmra.mrb[16].mxu0 %vm74_vm4, %v27_v25  ;;  %3300 = vmatmul.mubr.msk.f32.gmra.mrb[16].mxu1 %vm74_vm4, %v2611_v26  ;;  %v2642_v25 = vld [vmem:[%s5937_s0 + $0x2c0] sm:$0xff] }
  0x2c   :  { %3147 = vmatprep.mubr.msk.f32.mxu0 %vm4159_vm1, %v4160_v6  ;;  %3302 = vmatprep.mubr.msk.f32.mxu1 %vm4159_vm1, %v4160_v6  ;;  %v59_v26 = vld [vmem:[%s5937_s0 + $0x140] sm:$0xff] }
  0x2f   :  { %3148 = vmatmul.mubr.msk.f32.gmra.mrb[18].mxu0 %vm74_vm4, %v28_v27  ;;  %3303 = vmatmul.mubr.msk.f32.gmra.mrb[18].mxu1 %vm74_vm4, %v2612_v28  ;;  %v2643_v27 = vld [vmem:[%s5937_s0 + $0x2c8] sm:$0xff] }
  0x30   :  { %3150 = vmatprep.mubr.msk.f32.mxu0 %vm4159_vm1, %v4160_v6  ;;  %3305 = vmatprep.mubr.msk.f32.mxu1 %vm4159_vm1, %v4160_v6  ;;  %v60_v28 = vld [vmem:[%s5937_s0 + $0x148] sm:$0xff] }
  0x33   :  { %3151 = vmatmul.mubr.msk.f32.gmra.mrb[20].mxu0 %vm74_vm4, %v29_v29  ;;  %3306 = vmatmul.mubr.msk.f32.gmra.mrb[20].mxu1 %vm74_vm4, %v2613_v30  ;;  %v2644_v29 = vld [vmem:[%s5937_s0 + $0x2d0] sm:$0xff] }
  0x34   :  { %3153 = vmatprep.mubr.msk.f32.mxu0 %vm4159_vm1, %v4160_v6  ;;  %3308 = vmatprep.mubr.msk.f32.mxu1 %vm4159_vm1, %v4160_v6  ;;  %v61_v30 = vld [vmem:[%s5937_s0 + $0x150] sm:$0xff] }
  0x37   :  { %3154 = vmatmul.mubr.msk.f32.gmra.mrb[22].mxu0 %vm74_vm4, %v30_v31  ;;  %3309 = vmatmul.mubr.msk.f32.gmra.mrb[22].mxu1 %vm74_vm4, %v2614_v32  ;;  %v2645_v31 = vld [vmem:[%s5937_s0 + $0x2d8] sm:$0xff] }
  0x38   :  { %3156 = vmatprep.mubr.msk.f32.mxu0 %vm4159_vm1, %v4160_v6  ;;  %3311 = vmatprep.mubr.msk.f32.mxu1 %vm4159_vm1, %v4160_v6  ;;  %v62_v32 = vld [vmem:[%s5937_s0 + $0x158] sm:$0xff] }
  0x3b   :  { %3157 = vmatmul.mubr.msk.f32.gmra.mrb[24].mxu0 %vm74_vm4, %v31_v33  ;;  %3312 = vmatmul.mubr.msk.f32.gmra.mrb[24].mxu1 %vm74_vm4, %v2615_v34  ;;  %v2646_v33 = vld [vmem:[%s5937_s0 + $0x2e0] sm:$0xff] }
  0x3c   :  { %3159 = vmatprep.mubr.msk.f32.mxu0 %vm4159_vm1, %v4160_v6  ;;  %3314 = vmatprep.mubr.msk.f32.mxu1 %vm4159_vm1, %v4160_v6  ;;  %v63_v34 = vld [vmem:[%s5937_s0 + $0x160] sm:$0xff] }
  0x3f   :  { %3160 = vmatmul.mubr.msk.f32.gmra.mrb[26].mxu0 %vm74_vm4, %v32_v35  ;;  %3315 = vmatmul.mubr.msk.f32.gmra.mrb[26].mxu1 %vm74_vm4, %v2616_v36  ;;  %v2647_v35 = vld [vmem:[%s5937_s0 + $0x2e8] sm:$0xff] }
  0x40   :  { %3162 = vmatprep.mubr.msk.f32.mxu0 %vm4159_vm1, %v4160_v6  ;;  %3317 = vmatprep.mubr.msk.f32.mxu1 %vm4159_vm1, %v4160_v6  ;;  %v64_v36 = vld [vmem:[%s5937_s0 + $0x168] sm:$0xff] }
  0x43   :  { %3163 = vmatmul.mubr.msk.f32.gmra.mrb[28].mxu0 %vm74_vm4, %v33_v37  ;;  %3318 = vmatmul.mubr.msk.f32.gmra.mrb[28].mxu1 %vm74_vm4, %v2617_v38  ;;  %v2648_v37 = vld [vmem:[%s5937_s0 + $0x2f0] sm:$0xff] }
  0x44   :  { %3165 = vmatprep.mubr.msk.f32.mxu0 %vm4159_vm1, %v4160_v6  ;;  %3320 = vmatprep.mubr.msk.f32.mxu1 %vm4159_vm1, %v4160_v6  ;;  %v65_v38 = vld [vmem:[%s5937_s0 + $0x170] sm:$0xff] }
  0x47   :  { %3166 = vmatmul.mubr.msk.f32.gmra.mrb[30].mxu0 %vm74_vm4, %v34_v39  ;;  %3321 = vmatmul.mubr.msk.f32.gmra.mrb[30].mxu1 %vm74_vm4, %v2618_v40  ;;  %v2649_v39 = vld [vmem:[%s5937_s0 + $0x2f8] sm:$0xff] }
  0x48   :  { %3168 = vmatprep.mubr.msk.f32.mxu0 %vm4159_vm1, %v4160_v6  ;;  %3323 = vmatprep.mubr.msk.f32.mxu1 %vm4159_vm1, %v4160_v6  ;;  %v66_v40 = vld [vmem:[%s5937_s0 + $0x178] sm:$0xff] }
  0x4b   :  { %3169 = vmatmul.mubr.msk.f32.gmra.mrb[32].mxu0 %vm74_vm4, %v35_v41  ;;  %3324 = vmatmul.mubr.msk.f32.gmra.mrb[32].mxu1 %vm74_vm4, %v2619_v42  ;;  %v2650_v41 = vld [vmem:[%s5937_s0 + $0x300] sm:$0xff] }
  0x4c   :  { %3171 = vmatprep.mubr.msk.f32.mxu0 %vm4159_vm1, %v4160_v6  ;;  %3326 = vmatprep.mubr.msk.f32.mxu1 %vm4159_vm1, %v4160_v6  ;;  %v67_v42 = vld [vmem:[%s5937_s0 + $0x180] sm:$0xff] }
  0x4f   :  { %3172 = vmatmul.mubr.msk.f32.gmra.mrb[34].mxu0 %vm74_vm4, %v36_v43  ;;  %3327 = vmatmul.mubr.msk.f32.gmra.mrb[34].mxu1 %vm74_vm4, %v2620_v44  ;;  %v2651_v43 = vld [vmem:[%s5937_s0 + $0x308] sm:$0xff]  ;;  %v2702_v44 = vld [vmem:[%s5937_s0 + $0x310] sm:$0xff] }
  0x50   :  { %3174 = vmatprep.mubr.msk.f32.mxu0 %vm4159_vm1, %v4160_v6  ;;  %3329 = vmatprep.mubr.msk.f32.mxu1 %vm4159_vm1, %v4160_v6 }
  0x53   :  { %3175 = vmatmul.mubr.msk.f32.gmra.mrb[36].mxu0 %vm74_vm4, %v37_v45  ;;  %3330 = vmatmul.mubr.msk.f32.gmra.mrb[36].mxu1 %vm74_vm4, %v2621_v46  ;;  %v2801_v45 = vld [vmem:[%s5937_s0 + $0x498] sm:$0xff] }
  0x54   :  { %3177 = vmatprep.mubr.msk.f32.mxu0 %vm4159_vm1, %v4160_v6  ;;  %3332 = vmatprep.mubr.msk.f32.mxu1 %vm4159_vm1, %v4160_v6  ;;  %v2703_v46 = vld [vmem:[%s5937_s0 + $0x318] sm:$0xff] }
  0x57   :  { %3178 = vmatmul.mubr.msk.f32.gmra.mrb[38].mxu0 %vm74_vm4, %v38_v47  ;;  %3333 = vmatmul.mubr.msk.f32.gmra.mrb[38].mxu1 %vm74_vm4, %v2622_v48  ;;  %v2802_v47 = vld [vmem:[%s5937_s0 + $0x4a0] sm:$0xff] }
  0x58   :  { %3180 = vmatprep.mubr.msk.f32.mxu0 %vm4159_vm1, %v4160_v6  ;;  %3335 = vmatprep.mubr.msk.f32.mxu1 %vm4159_vm1, %v4160_v6  ;;  %v2704_v48 = vld [vmem:[%s5937_s0 + $0x320] sm:$0xff] }
  0x5b   :  { %3181 = vmatmul.mubr.msk.f32.gmra.mrb[40].mxu0 %vm74_vm4, %v39_v49  ;;  %3336 = vmatmul.mubr.msk.f32.gmra.mrb[40].mxu1 %vm74_vm4, %v2623_v50  ;;  %v2803_v49 = vld [vmem:[%s5937_s0 + $0x4a8] sm:$0xff] }
  0x5c   :  { %3183 = vmatprep.mubr.msk.f32.mxu0 %vm4159_vm1, %v4160_v6  ;;  %3338 = vmatprep.mubr.msk.f32.mxu1 %vm4159_vm1, %v4160_v6  ;;  %v2705_v50 = vld [vmem:[%s5937_s0 + $0x328] sm:$0xff] }
  0x5f   :  { %3184 = vmatmul.mubr.msk.f32.gmra.mrb[42].mxu0 %vm74_vm4, %v40_v51  ;;  %3339 = vmatmul.mubr.msk.f32.gmra.mrb[42].mxu1 %vm74_vm4, %v2624_v52  ;;  %v2804_v51 = vld [vmem:[%s5937_s0 + $0x4b0] sm:$0xff]  ;;  %v4845_v52 = vld [vmem:[%s5938_s2] ss:$0 sm:$0xff] }
  0x60   :  { %3186 = vmatprep.mubr.msk.f32.mxu0 %vm4159_vm1, %v4160_v6  ;;  %3341 = vmatprep.mubr.msk.f32.mxu1 %vm4159_vm1, %v4160_v6 }
  0x63   :  { %3187 = vmatmul.mubr.msk.f32.gmra.mrb[44].mxu0 %vm74_vm4, %v41_v53  ;;  %3342 = vmatmul.mubr.msk.f32.gmra.mrb[44].mxu1 %vm74_vm4, %v2625_v54  ;;  %v2706_v53 = vld [vmem:[%s5937_s0 + $0x330] sm:$0xff]  ;;  %v2805_v54 = vld [vmem:[%s5937_s0 + $0x4b8] sm:$0xff] }
  0x64   :  { %3189 = vmatprep.mubr.msk.f32.mxu0 %vm4159_vm1, %v4160_v6  ;;  %3344 = vmatprep.mubr.msk.f32.mxu1 %vm4159_vm1, %v4160_v6 }
  0x67   :  { %3190 = vmatmul.mubr.msk.f32.gmra.mrb[46].mxu0 %vm74_vm4, %v42_v55  ;;  %3345 = vmatmul.mubr.msk.f32.gmra.mrb[46].mxu1 %vm74_vm4, %v2626_v56 }
  0x68   :  { %3192 = vmatprep.mubr.msk.f32.mxu0 %vm4159_vm1, %v4160_v6  ;;  %3347 = vmatprep.mubr.msk.f32.mxu1 %vm4159_vm1, %v4160_v6 }
  0x6b   :  { %3193 = vmatmul.mubr.msk.f32.gmra.mrb[48].mxu0 %vm74_vm4, %v43_v57  ;;  %3348 = vmatmul.mubr.msk.f32.gmra.mrb[48].mxu1 %vm74_vm4, %v2627_v58 }
  0x6c   :  { %3195 = vmatprep.mubr.msk.f32.mxu0 %vm4159_vm1, %v4160_v6  ;;  %3350 = vmatprep.mubr.msk.f32.mxu1 %vm4159_vm1, %v4160_v6 }
  0x6f   :  { %3196 = vmatmul.mubr.msk.f32.gmra.mrb[50].mxu0 %vm74_vm4, %v44_v59  ;;  %3351 = vmatmul.mubr.msk.f32.gmra.mrb[50].mxu1 %vm74_vm4, %v2628_v60 }
  0x70   :  { %3198 = vmatprep.mubr.msk.f32.mxu0 %vm4159_vm1, %v4160_v6  ;;  %3353 = vmatprep.mubr.msk.f32.mxu1 %vm4159_vm1, %v4160_v6 }
  0x73   :  { %3199 = vmatmul.mubr.msk.f32.gmra.mrb[52].mxu0 %vm74_vm4, %v45_v61  ;;  %3354 = vmatmul.mubr.msk.f32.gmra.mrb[52].mxu1 %vm74_vm4, %v2629_v62  ;;  %v2707_v61 = vld [vmem:[%s5937_s0 + $0x338] sm:$0xff]  ;;  %v2806_v62 = vld [vmem:[%s5937_s0 + $0x4c0] sm:$0xff] }
  0x74   :  { %3201 = vmatprep.mubr.msk.f32.mxu0 %vm4159_vm1, %v4160_v6  ;;  %3356 = vmatprep.mubr.msk.f32.mxu1 %vm4159_vm1, %v4160_v6 }
  0x77   :  { %3202 = vmatmul.mubr.msk.f32.gmra.mrb[54].mxu0 %vm74_vm4, %v46_v63  ;;  %3357 = vmatmul.mubr.msk.f32.gmra.mrb[54].mxu1 %vm74_vm4, %v2630_v0 }
  0x78   :  { %3204 = vmatprep.mubr.msk.f32.mxu0 %vm4159_vm1, %v4160_v6  ;;  %3359 = vmatprep.mubr.msk.f32.mxu1 %vm4159_vm1, %v4160_v6 }
  0x7b   :  { %3205 = vmatmul.mubr.msk.f32.gmra.mrb[56].mxu0 %vm74_vm4, %v47_v1  ;;  %3360 = vmatmul.mubr.msk.f32.gmra.mrb[56].mxu1 %vm74_vm4, %v2631_v2 }
  0x7c   :  { %3207 = vmatprep.mubr.msk.f32.mxu0 %vm4159_vm1, %v4160_v6  ;;  %3362 = vmatprep.mubr.msk.f32.mxu1 %vm4159_vm1, %v4160_v6 }
  0x7f   :  { %3208 = vmatmul.mubr.msk.f32.gmra.mrb[58].mxu0 %vm74_vm4, %v48_v3  ;;  %3363 = vmatmul.mubr.msk.f32.gmra.mrb[58].mxu1 %vm74_vm4, %v2632_v4 }
  0x80   :  { %3210 = vmatprep.mubr.msk.f32.mxu0 %vm4159_vm1, %v4160_v6  ;;  %3365 = vmatprep.mubr.msk.f32.mxu1 %vm4159_vm1, %v4160_v6 }
  0x83   :  { %3211 = vmatmul.mubr.msk.f32.gmra.mrb[60].mxu0 %vm74_vm4, %v49_v5  ;;  %3366 = vmatmul.mubr.msk.f32.gmra.mrb[60].mxu1 %vm74_vm4, %v2633_v7  ;;  %v2708_v5 = vld [vmem:[%s5937_s0 + $0x340] sm:$0xff]  ;;  %v2807_v7 = vld [vmem:[%s5937_s0 + $0x4c8] sm:$0xff] }
  0x84   :  { %3213 = vmatprep.mubr.msk.f32.mxu0 %vm4159_vm1, %v4160_v6  ;;  %3368 = vmatprep.mubr.msk.f32.mxu1 %vm4159_vm1, %v4160_v6 }
  0x87   :  { %3214 = vmatmul.mubr.msk.f32.gmra.mrb[62].mxu0 %vm74_vm4, %v50_v8  ;;  %3369 = vmatmul.mubr.msk.f32.gmra.mrb[62].mxu1 %vm74_vm4, %v2634_v9 }
  0x88   :  { %3216 = vmatprep.mubr.msk.f32.mxu0 %vm4159_vm1, %v4160_v6  ;;  %3371 = vmatprep.mubr.msk.f32.mxu1 %vm4159_vm1, %v4160_v6 }
  0x8b   :  { %3217 = vmatmul.mubr.msk.f32.gmra.mrb[64].mxu0 %vm74_vm4, %v51_v10  ;;  %3372 = vmatmul.mubr.msk.f32.gmra.mrb[64].mxu1 %vm74_vm4, %v2635_v11 }
  0x8c   :  { %3219 = vmatprep.mubr.msk.f32.mxu0 %vm4159_vm1, %v4160_v6  ;;  %3374 = vmatprep.mubr.msk.f32.mxu1 %vm4159_vm1, %v4160_v6 }
  0x8f   :  { %3220 = vmatmul.mubr.msk.f32.gmra.mrb[66].mxu0 %vm74_vm4, %v52_v12  ;;  %3375 = vmatmul.mubr.msk.f32.gmra.mrb[66].mxu1 %vm74_vm4, %v2636_v13 }
  0x90   :  { %3222 = vmatprep.mubr.msk.f32.mxu0 %vm4159_vm1, %v4160_v6  ;;  %3377 = vmatprep.mubr.msk.f32.mxu1 %vm4159_vm1, %v4160_v6 }
  0x93   :  { %3223 = vmatmul.mubr.msk.f32.gmra.mrb[68].mxu0 %vm74_vm4, %v53_v14  ;;  %3378 = vmatmul.mubr.msk.f32.gmra.mrb[68].mxu1 %vm74_vm4, %v2637_v15  ;;  %v2709_v14 = vld [vmem:[%s5937_s0 + $0x348] sm:$0xff]  ;;  %v2808_v15 = vld [vmem:[%s5937_s0 + $0x4d0] sm:$0xff] }
  0x94   :  { %3225 = vmatprep.mubr.msk.f32.mxu0 %vm4159_vm1, %v4160_v6  ;;  %3380 = vmatprep.mubr.msk.f32.mxu1 %vm4159_vm1, %v4160_v6 }
  0x97   :  { %3226 = vmatmul.mubr.msk.f32.gmra.mrb[70].mxu0 %vm74_vm4, %v54_v16  ;;  %3381 = vmatmul.mubr.msk.f32.gmra.mrb[70].mxu1 %vm74_vm4, %v2638_v17 }
  0x98   :  { %3228 = vmatprep.mubr.msk.f32.mxu0 %vm4159_vm1, %v4160_v6  ;;  %3383 = vmatprep.mubr.msk.f32.mxu1 %vm4159_vm1, %v4160_v6 }
  0x9b   :  { %3229 = vmatmul.mubr.msk.f32.gmra.mrb[72].mxu0 %vm74_vm4, %v55_v18  ;;  %3384 = vmatmul.mubr.msk.f32.gmra.mrb[72].mxu1 %vm74_vm4, %v2639_v19 }
  0x9c   :  { %3231 = vmatprep.mubr.msk.f32.mxu0 %vm4159_vm1, %v4160_v6  ;;  %3386 = vmatprep.mubr.msk.f32.mxu1 %vm4159_vm1, %v4160_v6 }
  0x9f   :  { %3232 = vmatmul.mubr.msk.f32.gmra.mrb[74].mxu0 %vm74_vm4, %v56_v20  ;;  %3387 = vmatmul.mubr.msk.f32.gmra.mrb[74].mxu1 %vm74_vm4, %v2640_v21 }
  0xa0   :  { %3234 = vmatprep.mubr.msk.f32.mxu0 %vm4159_vm1, %v4160_v6  ;;  %3389 = vmatprep.mubr.msk.f32.mxu1 %vm4159_vm1, %v4160_v6 }
  0xa3   :  { %3235 = vmatmul.mubr.msk.f32.gmra.mrb[76].mxu0 %vm74_vm4, %v57_v22  ;;  %3390 = vmatmul.mubr.msk.f32.gmra.mrb[76].mxu1 %vm74_vm4, %v2641_v23 }
  0xa4   :  { %3237 = vmatprep.mubr.msk.f32.mxu0 %vm4159_vm1, %v4160_v6  ;;  %3392 = vmatprep.mubr.msk.f32.mxu1 %vm4159_vm1, %v4160_v6 }
  0xa7   :  { %3238 = vmatmul.mubr.msk.f32.gmra.mrb[78].mxu0 %vm74_vm4, %v58_v24  ;;  %3393 = vmatmul.mubr.msk.f32.gmra.mrb[78].mxu1 %vm74_vm4, %v2642_v25  ;;  %v2710_v24 = vld [vmem:[%s5937_s0 + $0x350] sm:$0xff]  ;;  %v2809_v25 = vld [vmem:[%s5937_s0 + $0x4d8] sm:$0xff] }
  0xa8   :  { %3240 = vmatprep.mubr.msk.f32.mxu0 %vm4159_vm1, %v4160_v6  ;;  %3395 = vmatprep.mubr.msk.f32.mxu1 %vm4159_vm1, %v4160_v6 }
  0xab   :  { %3241 = vmatmul.mubr.msk.f32.gmra.mrb[80].mxu0 %vm74_vm4, %v59_v26  ;;  %3396 = vmatmul.mubr.msk.f32.gmra.mrb[80].mxu1 %vm74_vm4, %v2643_v27 }
  0xac   :  { %3243 = vmatprep.mubr.msk.f32.mxu0 %vm4159_vm1, %v4160_v6  ;;  %3398 = vmatprep.mubr.msk.f32.mxu1 %vm4159_vm1, %v4160_v6 }
  0xaf   :  { %3244 = vmatmul.mubr.msk.f32.gmra.mrb[82].mxu0 %vm74_vm4, %v60_v28  ;;  %3399 = vmatmul.mubr.msk.f32.gmra.mrb[82].mxu1 %vm74_vm4, %v2644_v29 }
  0xb0   :  { %3246 = vmatprep.mubr.msk.f32.mxu0 %vm4159_vm1, %v4160_v6  ;;  %3401 = vmatprep.mubr.msk.f32.mxu1 %vm4159_vm1, %v4160_v6 }
  0xb3   :  { %3247 = vmatmul.mubr.msk.f32.gmra.mrb[84].mxu0 %vm74_vm4, %v61_v30  ;;  %3402 = vmatmul.mubr.msk.f32.gmra.mrb[84].mxu1 %vm74_vm4, %v2645_v31 }
  0xb4   :  { %3249 = vmatprep.mubr.msk.f32.mxu0 %vm4159_vm1, %v4160_v6  ;;  %3404 = vmatprep.mubr.msk.f32.mxu1 %vm4159_vm1, %v4160_v6 }
  0xb7   :  { %3250 = vmatmul.mubr.msk.f32.gmra.mrb[86].mxu0 %vm74_vm4, %v62_v32  ;;  %3405 = vmatmul.mubr.msk.f32.gmra.mrb[86].mxu1 %vm74_vm4, %v2646_v33 }
  0xb8   :  { %3252 = vmatprep.mubr.msk.f32.mxu0 %vm4159_vm1, %v4160_v6  ;;  %3407 = vmatprep.mubr.msk.f32.mxu1 %vm4159_vm1, %v4160_v6 }
  0xbb   :  { %3253 = vmatmul.mubr.msk.f32.gmra.mrb[88].mxu0 %vm74_vm4, %v63_v34  ;;  %3408 = vmatmul.mubr.msk.f32.gmra.mrb[88].mxu1 %vm74_vm4, %v2647_v35  ;;  %v2711_v35 = vld [vmem:[%s5937_s0 + $0x358] sm:$0xff] }
  0xbc   :  { %3255 = vmatprep.mubr.msk.f32.mxu0 %vm4159_vm1, %v4160_v6  ;;  %3410 = vmatprep.mubr.msk.f32.mxu1 %vm4159_vm1, %v4160_v6 }
  0xbf   :  { %3256 = vmatmul.mubr.msk.f32.gmra.mrb[90].mxu0 %vm74_vm4, %v64_v36  ;;  %3411 = vmatmul.mubr.msk.f32.gmra.mrb[90].mxu1 %vm74_vm4, %v2648_v37  ;;  %v2810_v36 = vld [vmem:[%s5937_s0 + $0x4e0] sm:$0xff] }
  0xc0   :  { %3258 = vmatprep.mubr.msk.f32.mxu0 %vm4159_vm1, %v4160_v6  ;;  %3413 = vmatprep.mubr.msk.f32.mxu1 %vm4159_vm1, %v4160_v6 }
  0xc3   :  { %3259 = vmatmul.mubr.msk.f32.gmra.mrb[92].mxu0 %vm74_vm4, %v65_v38  ;;  %3414 = vmatmul.mubr.msk.f32.gmra.mrb[92].mxu1 %vm74_vm4, %v2649_v39 }
  0xc4   :  { %3261 = vmatprep.mubr.msk.f32.mxu0 %vm4159_vm1, %v4160_v6  ;;  %3416 = vmatprep.mubr.msk.f32.mxu1 %vm4159_vm1, %v4160_v6 }
  0xc7   :  { %3262 = vmatmul.mubr.msk.f32.gmra.mrb[94].mxu0 %vm74_vm4, %v66_v40  ;;  %3417 = vmatmul.mubr.msk.f32.gmra.mrb[94].mxu1 %vm74_vm4, %v2650_v41 }
  0xc8   :  { %3264 = vmatprep.mubr.msk.f32.mxu0 %vm4159_vm1, %v4160_v6  ;;  %3419 = vmatprep.mubr.msk.f32.mxu1 %vm4159_vm1, %v4160_v6 }
  0xcb   :  { %3265 = vmatmul.mubr.msk.f32.gmra.mrb[96].mxu0 %vm74_vm4, %v67_v42  ;;  %3420 = vmatmul.mubr.msk.f32.gmra.mrb[96].mxu1 %vm74_vm4, %v2651_v43 }
  0xcc   :  { %3430 = vmatprep.mubr.msk.f32.mxu0 %vm4159_vm1, %v4160_v6  ;;  %3585 = vmatprep.mubr.msk.f32.mxu1 %vm4159_vm1, %v4160_v6 }
  0xcf   :  { %3431 = vmatmul.mubr.msk.f32.vlgmr.msra.gmra.mrb[98].mxu0 %vm74_vm4, %v2702_v44  ;;  %3586 = vmatmul.mubr.msk.f32.vlgmr.msra.gmra.mrb[98].mxu1 %vm74_vm4, %v2801_v45 }
  0xd0   :  { %3433 = vmatprep.mubr.msk.f32.mxu0 %vm4159_vm1, %v4160_v6  ;;  %3588 = vmatprep.mubr.msk.f32.mxu1 %vm4159_vm1, %v4160_v6 }
  0xd3   :  { %3434 = vmatmul.mubr.msk.f32.gmra.mrb[100].mxu0 %vm74_vm4, %v2703_v46  ;;  %3589 = vmatmul.mubr.msk.f32.gmra.mrb[100].mxu1 %vm74_vm4, %v2802_v47  ;;  %v2712_v46 = vld [vmem:[%s5937_s0 + $0x360] sm:$0xff]  ;;  %v2811_v47 = vld [vmem:[%s5937_s0 + $0x4e8] sm:$0xff] }
  0xd4   :  { %3436 = vmatprep.mubr.msk.f32.mxu0 %vm4159_vm1, %v4160_v6  ;;  %3591 = vmatprep.mubr.msk.f32.mxu1 %vm4159_vm1, %v4160_v6 }
  0xd7   :  { %3437 = vmatmul.mubr.msk.f32.gmra.mrb[102].mxu0 %vm74_vm4, %v2704_v48  ;;  %3592 = vmatmul.mubr.msk.f32.gmra.mrb[102].mxu1 %vm74_vm4, %v2803_v49 }
  0xd8   :  { %3439 = vmatprep.mubr.msk.f32.mxu0 %vm4159_vm1, %v4160_v6  ;;  %3594 = vmatprep.mubr.msk.f32.mxu1 %vm4159_vm1, %v4160_v6 }
  0xdb   :  { %3440 = vmatmul.mubr.msk.f32.gmra.mrb[104].mxu0 %vm74_vm4, %v2705_v50  ;;  %3595 = vmatmul.mubr.msk.f32.gmra.mrb[104].mxu1 %vm74_vm4, %v2804_v51 }
  0xdc   :  { %3442 = vmatprep.mubr.msk.f32.mxu0 %vm4159_vm1, %v4160_v6  ;;  %3597 = vmatprep.mubr.msk.f32.mxu1 %vm4159_vm1, %v4160_v6 }
  0xde   :  { %v292_v55 = vpop.f32.mrb[0].mxu0  ;;  %v897_v56 = vpop.f32.mrb[0].mxu1 }
  0xdf   :  { %v293_v57 = vadd.f32 %v4845_v52, %v292_v55  ;;  %v3122_v58 = vpop.f32.mrb[1].mxu0  ;;  %v898_v59 = vadd.f32 %v4845_v52, %v897_v56  ;;  %3443 = vmatmul.mubr.msk.f32.gmra.mrb[106].mxu0 %vm74_vm4, %v2706_v53  ;;  %v3277_v60 = vpop.f32.mrb[1].mxu1  ;;  %3598 = vmatmul.mubr.msk.f32.gmra.mrb[106].mxu1 %vm74_vm4, %v2805_v54 }
  0xe0   :  { %3445 = vmatprep.mubr.msk.f32.mxu0 %vm4159_vm1, %v4160_v6  ;;  %3600 = vmatprep.mubr.msk.f32.mxu1 %vm4159_vm1, %v4160_v6  ;;  %v2713_v58 = vld [vmem:[%s5937_s0 + $0x368] sm:$0xff] }
  0xe1   :  { %3764 = vtanh.f32 %v293_v57 }
  0xe2   :  { %3766 = vtanh.f32 %v898_v59  ;;  %v297_v63 = vpop.f32.mrb[2].mxu0  ;;  %v902_v0 = vpop.f32.mrb[2].mxu1  ;;  %v2812_v59 = vld [vmem:[%s5937_s0 + $0x4f0] sm:$0xff] }
  0xe3   :  { %v298_v1 = vadd.f32 %v4845_v52, %v297_v63  ;;  %v3125_v2 = vpop.f32.mrb[3].mxu0  ;;  %v903_v3 = vadd.f32 %v4845_v52, %v902_v0  ;;  %3446 = vmatmul.mubr.msk.f32.gmra.mrb[108].mxu0 %vm74_vm4, %v2707_v61  ;;  %v3280_v4 = vpop.f32.mrb[3].mxu1  ;;  %3601 = vmatmul.mubr.msk.f32.gmra.mrb[108].mxu1 %vm74_vm4, %v2806_v62 }
  0xe4   :  { %3448 = vmatprep.mubr.msk.f32.mxu0 %vm4159_vm1, %v4160_v6  ;;  %3603 = vmatprep.mubr.msk.f32.mxu1 %vm4159_vm1, %v4160_v6 }
  0xe5   :  { %3768 = vtanh.f32 %v298_v1 }
  0xe6   :  { %3770 = vtanh.f32 %v903_v3  ;;  %v302_v8 = vpop.f32.mrb[4].mxu0  ;;  %v907_v9 = vpop.f32.mrb[4].mxu1 }
  0xe7   :  { %v303_v10 = vadd.f32 %v4845_v52, %v302_v8  ;;  %v3128_v11 = vpop.f32.mrb[5].mxu0  ;;  %v908_v12 = vadd.f32 %v4845_v52, %v907_v9  ;;  %3449 = vmatmul.mubr.msk.f32.gmra.mrb[110].mxu0 %vm74_vm4, %v2708_v5  ;;  %v3283_v13 = vpop.f32.mrb[5].mxu1  ;;  %3604 = vmatmul.mubr.msk.f32.gmra.mrb[110].mxu1 %vm74_vm4, %v2807_v7  ;;  %v2714_v5 = vld [vmem:[%s5937_s0 + $0x370] sm:$0xff]  ;;  %v2813_v7 = vld [vmem:[%s5937_s0 + $0x4f8] sm:$0xff] }
  0xe8   :  { %3451 = vmatprep.mubr.msk.f32.mxu0 %vm4159_vm1, %v4160_v6  ;;  %3606 = vmatprep.mubr.msk.f32.mxu1 %vm4159_vm1, %v4160_v6 }
  0xe9   :  { %3772 = vtanh.f32 %v303_v10 }
  0xea   :  { %3774 = vtanh.f32 %v908_v12  ;;  %v307_v16 = vpop.f32.mrb[6].mxu0  ;;  %v912_v17 = vpop.f32.mrb[6].mxu1 }
  0xeb   :  { %v3765_v18 = vpop.eup %3764  ;;  %v308_v19 = vadd.f32 %v4845_v52, %v307_v16  ;;  %v3131_v20 = vpop.f32.mrb[7].mxu0  ;;  %v913_v21 = vadd.f32 %v4845_v52, %v912_v17  ;;  %3452 = vmatmul.mubr.msk.f32.gmra.mrb[112].mxu0 %vm74_vm4, %v2709_v14  ;;  %3607 = vmatmul.mubr.msk.f32.gmra.mrb[112].mxu1 %vm74_vm4, %v2808_v15  ;;  %v2715_v17 = vld [vmem:[%s5937_s0 + $0x378] sm:$0xff] }
  0xec   :  { %v3286_v22 = vpop.f32.mrb[7].mxu1  ;;  %v3767_v23 = vpop.eup %3766  ;;  %3454 = vmatprep.mubr.msk.f32.mxu0 %vm4159_vm1, %v4160_v6  ;;  %3609 = vmatprep.mubr.msk.f32.mxu1 %vm4159_vm1, %v4160_v6 }
  0xed   :  { %v4913_v26 = vadd.f32 %v3767_v23, %v3765_v18  ;;  %3776 = vtanh.f32 %v308_v19  ;;  %v2814_v18 = vld [vmem:[%s5937_s0 + $0x500] sm:$0xff] }
  0xee   :  { %3778 = vtanh.f32 %v913_v21  ;;  %v312_v27 = vpop.f32.mrb[8].mxu0  ;;  %v917_v28 = vpop.f32.mrb[8].mxu1 }
  0xef   :  { %v3769_v29 = vpop.eup %3768  ;;  %v313_v30 = vadd.f32 %v4845_v52, %v312_v27  ;;  %v3134_v31 = vpop.f32.mrb[9].mxu0  ;;  %v918_v32 = vadd.f32 %v4845_v52, %v917_v28  ;;  %3455 = vmatmul.mubr.msk.f32.gmra.mrb[114].mxu0 %vm74_vm4, %v2710_v24  ;;  %3610 = vmatmul.mubr.msk.f32.gmra.mrb[114].mxu1 %vm74_vm4, %v2809_v25 }
  0xf0   :  { %v3289_v33 = vpop.f32.mrb[9].mxu1  ;;  %v3771_v34 = vpop.eup %3770  ;;  %3457 = vmatprep.mubr.msk.f32.mxu0 %vm4159_vm1, %v4160_v6  ;;  %3612 = vmatprep.mubr.msk.f32.mxu1 %vm4159_vm1, %v4160_v6 }
  0xf1   :  { %v4929_v37 = vadd.f32 %v3771_v34, %v3769_v29  ;;  %3780 = vtanh.f32 %v313_v30  ;;  %v2716_v29 = vld [vmem:[%s5937_s0 + $0x380] sm:$0xff]  ;;  %v2815_v30 = vld [vmem:[%s5937_s0 + $0x508] sm:$0xff] }
  0xf2   :  { %3782 = vtanh.f32 %v918_v32  ;;  %v317_v38 = vpop.f32.mrb[10].mxu0  ;;  %v922_v39 = vpop.f32.mrb[10].mxu1 }
  0xf3   :  { %v3773_v40 = vpop.eup %3772  ;;  %v318_v41 = vadd.f32 %v4845_v52, %v317_v38  ;;  %v3137_v42 = vpop.f32.mrb[11].mxu0  ;;  %v923_v43 = vadd.f32 %v4845_v52, %v922_v39  ;;  %3458 = vmatmul.mubr.msk.f32.gmra.mrb[116].mxu0 %vm74_vm4, %v2711_v35  ;;  %3613 = vmatmul.mubr.msk.f32.gmra.mrb[116].mxu1 %vm74_vm4, %v2810_v36 }
  0xf4   :  { %v3292_v44 = vpop.f32.mrb[11].mxu1  ;;  %v3775_v45 = vpop.eup %3774  ;;  %3460 = vmatprep.mubr.msk.f32.mxu0 %vm4159_vm1, %v4160_v6  ;;  %3615 = vmatprep.mubr.msk.f32.mxu1 %vm4159_vm1, %v4160_v6  ;;  %v2816_v42 = vld [vmem:[%s5937_s0 + $0x510] sm:$0xff] }
  0xf5   :  { %v4945_v48 = vadd.f32 %v3775_v45, %v3773_v40  ;;  %3784 = vtanh.f32 %v318_v41  ;;  %v2717_v41 = vld [vmem:[%s5937_s0 + $0x388] sm:$0xff] }
  0xf6   :  { %3786 = vtanh.f32 %v923_v43  ;;  %v322_v49 = vpop.f32.mrb[12].mxu0  ;;  %v927_v50 = vpop.f32.mrb[12].mxu1 }
  0xf7   :  { %v3777_v51 = vpop.eup %3776  ;;  %v323_v53 = vadd.f32 %v4845_v52, %v322_v49  ;;  %v3140_v54 = vpop.f32.mrb[13].mxu0  ;;  %v928_v55 = vadd.f32 %v4845_v52, %v927_v50  ;;  %3461 = vmatmul.mubr.msk.f32.gmra.mrb[118].mxu0 %vm74_vm4, %v2712_v46  ;;  %3616 = vmatmul.mubr.msk.f32.gmra.mrb[118].mxu1 %vm74_vm4, %v2811_v47 }
  0xf8   :  { %v3295_v56 = vpop.f32.mrb[13].mxu1  ;;  %v3779_v57 = vpop.eup %3778  ;;  %3463 = vmatprep.mubr.msk.f32.mxu0 %vm4159_vm1, %v4160_v6  ;;  %3618 = vmatprep.mubr.msk.f32.mxu1 %vm4159_vm1, %v4160_v6  ;;  %v2718_v54 = vld [vmem:[%s5937_s0 + $0x390] sm:$0xff] }
  0xf9   :  { %v4961_v60 = vadd.f32 %v3779_v57, %v3777_v51  ;;  %3788 = vtanh.f32 %v323_v53 }
  0xfa   :  { %3790 = vtanh.f32 %v928_v55  ;;  %v327_v61 = vpop.f32.mrb[14].mxu0  ;;  %v932_v62 = vpop.f32.mrb[14].mxu1  ;;  %v2817_v55 = vld [vmem:[%s5937_s0 + $0x518] sm:$0xff] }
  0xfb   :  { %v3781_v63 = vpop.eup %3780  ;;  %v328_v0 = vadd.f32 %v4845_v52, %v327_v61  ;;  %v3143_v1 = vpop.f32.mrb[15].mxu0  ;;  %v933_v2 = vadd.f32 %v4845_v52, %v932_v62  ;;  %3464 = vmatmul.mubr.msk.f32.gmra.mrb[120].mxu0 %vm74_vm4, %v2713_v58  ;;  %3619 = vmatmul.mubr.msk.f32.gmra.mrb[120].mxu1 %vm74_vm4, %v2812_v59 }
  0xfc   :  { %v3298_v3 = vpop.f32.mrb[15].mxu1  ;;  %v3783_v4 = vpop.eup %3782  ;;  %3466 = vmatprep.mubr.msk.f32.mxu0 %vm4159_vm1, %v4160_v6  ;;  %3621 = vmatprep.mubr.msk.f32.mxu1 %vm4159_vm1, %v4160_v6 }
  0xfd   :  { %v4977_v8 = vadd.f32 %v3783_v4, %v3781_v63  ;;  %3792 = vtanh.f32 %v328_v0  ;;  %v2818_v3 = vld [vmem:[%s5937_s0 + $0x520] sm:$0xff] }
  0xfe   :  { %3794 = vtanh.f32 %v933_v2  ;;  %v332_v9 = vpop.f32.mrb[16].mxu0  ;;  %v937_v10 = vpop.f32.mrb[16].mxu1  ;;  %v2719_v2 = vld [vmem:[%s5937_s0 + $0x398] sm:$0xff] }
  0xff   :  { %v3785_v11 = vpop.eup %3784  ;;  %v333_v12 = vadd.f32 %v4845_v52, %v332_v9  ;;  %v3146_v13 = vpop.f32.mrb[17].mxu0  ;;  %v938_v14 = vadd.f32 %v4845_v52, %v937_v10  ;;  %3467 = vmatmul.mubr.msk.f32.gmra.mrb[122].mxu0 %vm74_vm4, %v2714_v5  ;;  %3622 = vmatmul.mubr.msk.f32.gmra.mrb[122].mxu1 %vm74_vm4, %v2813_v7 }
 0x100   :  { %v3301_v15 = vpop.f32.mrb[17].mxu1  ;;  %v3787_v16 = vpop.eup %3786  ;;  %3469 = vmatprep.mubr.msk.f32.mxu0 %vm4159_vm1, %v4160_v6  ;;  %3624 = vmatprep.mubr.msk.f32.mxu1 %vm4159_vm1, %v4160_v6 }
 0x101   :  { %v4993_v19 = vadd.f32 %v3787_v16, %v3785_v11  ;;  %3796 = vtanh.f32 %v333_v12  ;;  %v2720_v15 = vld [vmem:[%s5937_s0 + $0x3a0] sm:$0xff]  ;;  %v2819_v16 = vld [vmem:[%s5937_s0 + $0x528] sm:$0xff] }
 0x102   :  { %3798 = vtanh.f32 %v938_v14  ;;  %v337_v20 = vpop.f32.mrb[18].mxu0  ;;  %v942_v21 = vpop.f32.mrb[18].mxu1 }
 0x103   :  { %v3789_v22 = vpop.eup %3788  ;;  %v338_v23 = vadd.f32 %v4845_v52, %v337_v20  ;;  %v3149_v24 = vpop.f32.mrb[19].mxu0  ;;  %v943_v25 = vadd.f32 %v4845_v52, %v942_v21  ;;  %3470 = vmatmul.mubr.msk.f32.gmra.mrb[124].mxu0 %vm74_vm4, %v2715_v17  ;;  %3625 = vmatmul.mubr.msk.f32.gmra.mrb[124].mxu1 %vm74_vm4, %v2814_v18 }
 0x104   :  { %v3304_v27 = vpop.f32.mrb[19].mxu1  ;;  %v3791_v28 = vpop.eup %3790  ;;  %3472 = vmatprep.mubr.msk.f32.mxu0 %vm4159_vm1, %v4160_v6  ;;  %3627 = vmatprep.mubr.msk.f32.mxu1 %vm4159_vm1, %v4160_v6 }
 0x105   :  { %v5009_v31 = vadd.f32 %v3791_v28, %v3789_v22  ;;  %3800 = vtanh.f32 %v338_v23  ;;  %v2721_v28 = vld [vmem:[%s5937_s0 + $0x3a8] sm:$0xff] }
 0x106   :  { %3802 = vtanh.f32 %v943_v25  ;;  %v342_v32 = vpop.f32.mrb[20].mxu0  ;;  %v947_v33 = vpop.f32.mrb[20].mxu1 }
 0x107   :  { %v3793_v34 = vpop.eup %3792  ;;  %v343_v35 = vadd.f32 %v4845_v52, %v342_v32  ;;  %v3152_v36 = vpop.f32.mrb[21].mxu0  ;;  %v948_v38 = vadd.f32 %v4845_v52, %v947_v33  ;;  %3473 = vmatmul.mubr.msk.f32.gmra.mrb[126].mxu0 %vm74_vm4, %v2716_v29  ;;  %3628 = vmatmul.mubr.msk.f32.gmra.mrb[126].mxu1 %vm74_vm4, %v2815_v30  ;;  %v2820_v29 = vld [vmem:[%s5937_s0 + $0x530] sm:$0xff] }
 0x108   :  { %v3307_v39 = vpop.f32.mrb[21].mxu1  ;;  %v3795_v40 = vpop.eup %3794  ;;  %3475 = vmatprep.mubr.msk.f32.mxu0 %vm4159_vm1, %v4160_v6  ;;  %3630 = vmatprep.mubr.msk.f32.mxu1 %vm4159_vm1, %v4160_v6 }
 0x109   :  { %v5025_v43 = vadd.f32 %v3795_v40, %v3793_v34  ;;  %3804 = vtanh.f32 %v343_v35 }
 0x10a   :  { %3806 = vtanh.f32 %v948_v38  ;;  %v347_v44 = vpop.f32.mrb[22].mxu0  ;;  %v952_v45 = vpop.f32.mrb[22].mxu1 }
 0x10b   :  { %v3797_v46 = vpop.eup %3796  ;;  %v348_v47 = vadd.f32 %v4845_v52, %v347_v44  ;;  %v3155_v49 = vpop.f32.mrb[23].mxu0  ;;  %v953_v50 = vadd.f32 %v4845_v52, %v952_v45  ;;  %3476 = vmatmul.mubr.msk.f32.gmra.mrb[128].mxu0 %vm74_vm4, %v2717_v41  ;;  %3631 = vmatmul.mubr.msk.f32.gmra.mrb[128].mxu1 %vm74_vm4, %v2816_v42  ;;  %v2722_v41 = vld [vmem:[%s5937_s0 + $0x3b0] sm:$0xff]  ;;  %v2821_v42 = vld [vmem:[%s5937_s0 + $0x538] sm:$0xff] }
 0x10c   :  { %v3310_v51 = vpop.f32.mrb[23].mxu1  ;;  %v3799_v53 = vpop.eup %3798  ;;  %3478 = vmatprep.mubr.msk.f32.mxu0 %vm4159_vm1, %v4160_v6  ;;  %3633 = vmatprep.mubr.msk.f32.mxu1 %vm4159_vm1, %v4160_v6 }
 0x10d   :  { %v5041_v56 = vadd.f32 %v3799_v53, %v3797_v46  ;;  %3808 = vtanh.f32 %v348_v47 }
 0x10e   :  { %3810 = vtanh.f32 %v953_v50  ;;  %v352_v57 = vpop.f32.mrb[24].mxu0  ;;  %v957_v58 = vpop.f32.mrb[24].mxu1 }
 0x10f   :  { %v3801_v59 = vpop.eup %3800  ;;  %v353_v61 = vadd.f32 %v4845_v52, %v352_v57  ;;  %v3158_v62 = vpop.f32.mrb[25].mxu0  ;;  %v958_v63 = vadd.f32 %v4845_v52, %v957_v58  ;;  %3479 = vmatmul.mubr.msk.f32.gmra.mrb[130].mxu0 %vm74_vm4, %v2718_v54  ;;  %3634 = vmatmul.mubr.msk.f32.gmra.mrb[130].mxu1 %vm74_vm4, %v2817_v55  ;;  %v2723_v55 = vld [vmem:[%s5937_s0 + $0x3b8] sm:$0xff]  ;;  %v2822_v57 = vld [vmem:[%s5937_s0 + $0x540] sm:$0xff] }
 0x110   :  { %v3313_v0 = vpop.f32.mrb[25].mxu1  ;;  %v3803_v1 = vpop.eup %3802  ;;  %3481 = vmatprep.mubr.msk.f32.mxu0 %vm4159_vm1, %v4160_v6  ;;  %3636 = vmatprep.mubr.msk.f32.mxu1 %vm4159_vm1, %v4160_v6 }
 0x111   :  { %v5057_v4 = vadd.f32 %v3803_v1, %v3801_v59  ;;  %3812 = vtanh.f32 %v353_v61 }
 0x112   :  { %3814 = vtanh.f32 %v958_v63  ;;  %v357_v5 = vpop.f32.mrb[26].mxu0  ;;  %v962_v7 = vpop.f32.mrb[26].mxu1 }
 0x113   :  { %v3805_v9 = vpop.eup %3804  ;;  %v358_v10 = vadd.f32 %v4845_v52, %v357_v5  ;;  %v3161_v11 = vpop.f32.mrb[27].mxu0  ;;  %v963_v12 = vadd.f32 %v4845_v52, %v962_v7  ;;  %3482 = vmatmul.mubr.msk.f32.gmra.mrb[132].mxu0 %vm74_vm4, %v2719_v2  ;;  %3637 = vmatmul.mubr.msk.f32.gmra.mrb[132].mxu1 %vm74_vm4, %v2818_v3  ;;  %v2724_v5 = vld [vmem:[%s5937_s0 + $0x3c0] sm:$0xff]  ;;  %v2823_v7 = vld [vmem:[%s5937_s0 + $0x548] sm:$0xff] }
 0x114   :  { %v3316_v13 = vpop.f32.mrb[27].mxu1  ;;  %v3807_v14 = vpop.eup %3806  ;;  %3484 = vmatprep.mubr.msk.f32.mxu0 %vm4159_vm1, %v4160_v6  ;;  %3639 = vmatprep.mubr.msk.f32.mxu1 %vm4159_vm1, %v4160_v6 }
 0x115   :  { %v5073_v17 = vadd.f32 %v3807_v14, %v3805_v9  ;;  %3816 = vtanh.f32 %v358_v10 }
 0x116   :  { %3818 = vtanh.f32 %v963_v12  ;;  %v362_v18 = vpop.f32.mrb[28].mxu0  ;;  %v967_v20 = vpop.f32.mrb[28].mxu1 }
 0x117   :  { %v3809_v21 = vpop.eup %3808  ;;  %v363_v22 = vadd.f32 %v4845_v52, %v362_v18  ;;  %v3164_v23 = vpop.f32.mrb[29].mxu0  ;;  %v968_v24 = vadd.f32 %v4845_v52, %v967_v20  ;;  %3485 = vmatmul.mubr.msk.f32.gmra.mrb[134].mxu0 %vm74_vm4, %v2720_v15  ;;  %3640 = vmatmul.mubr.msk.f32.gmra.mrb[134].mxu1 %vm74_vm4, %v2819_v16  ;;  %v2725_v20 = vld [vmem:[%s5937_s0 + $0x3c8] sm:$0xff] }
 0x118   :  { %v3319_v25 = vpop.f32.mrb[29].mxu1  ;;  %v3811_v27 = vpop.eup %3810  ;;  %3487 = vmatprep.mubr.msk.f32.mxu0 %vm4159_vm1, %v4160_v6  ;;  %3642 = vmatprep.mubr.msk.f32.mxu1 %vm4159_vm1, %v4160_v6 }
 0x119   :  { %v5089_v30 = vadd.f32 %v3811_v27, %v3809_v21  ;;  %3820 = vtanh.f32 %v363_v22  ;;  %v2824_v21 = vld [vmem:[%s5937_s0 + $0x550] sm:$0xff] }
 0x11a   :  { %3822 = vtanh.f32 %v968_v24  ;;  %v367_v32 = vpop.f32.mrb[30].mxu0  ;;  %v972_v33 = vpop.f32.mrb[30].mxu1 }
 0x11b   :  { %v3813_v34 = vpop.eup %3812  ;;  %v368_v35 = vadd.f32 %v4845_v52, %v367_v32  ;;  %v3167_v36 = vpop.f32.mrb[31].mxu0  ;;  %v973_v38 = vadd.f32 %v4845_v52, %v972_v33  ;;  %3488 = vmatmul.mubr.msk.f32.gmra.mrb[136].mxu0 %vm74_vm4, %v2721_v28  ;;  %3643 = vmatmul.mubr.msk.f32.gmra.mrb[136].mxu1 %vm74_vm4, %v2820_v29 }
 0x11c   :  { %v3322_v39 = vpop.f32.mrb[31].mxu1  ;;  %v3815_v40 = vpop.eup %3814  ;;  %3490 = vmatprep.mubr.msk.f32.mxu0 %vm4159_vm1, %v4160_v6  ;;  %3645 = vmatprep.mubr.msk.f32.mxu1 %vm4159_vm1, %v4160_v6 }
 0x11d   :  { %v5105_v44 = vadd.f32 %v3815_v40, %v3813_v34  ;;  %3824 = vtanh.f32 %v368_v35  ;;  %v2726_v34 = vld [vmem:[%s5937_s0 + $0x3d0] sm:$0xff]  ;;  %v2825_v35 = vld [vmem:[%s5937_s0 + $0x558] sm:$0xff] }
 0x11e   :  { %3826 = vtanh.f32 %v973_v38  ;;  %v372_v45 = vpop.f32.mrb[32].mxu0  ;;  %v977_v46 = vpop.f32.mrb[32].mxu1 }
 0x11f   :  { %v3817_v47 = vpop.eup %3816  ;;  %v373_v49 = vadd.f32 %v4845_v52, %v372_v45  ;;  %v3170_v50 = vpop.f32.mrb[33].mxu0  ;;  %v978_v51 = vadd.f32 %v4845_v52, %v977_v46  ;;  %3491 = vmatmul.mubr.msk.f32.gmra.mrb[138].mxu0 %vm74_vm4, %v2722_v41  ;;  %3646 = vmatmul.mubr.msk.f32.gmra.mrb[138].mxu1 %vm74_vm4, %v2821_v42 }
 0x120   :  { %v3325_v53 = vpop.f32.mrb[33].mxu1  ;;  %v3819_v54 = vpop.eup %3818  ;;  %3493 = vmatprep.mubr.msk.f32.mxu0 %vm4159_vm1, %v4160_v6  ;;  %3648 = vmatprep.mubr.msk.f32.mxu1 %vm4159_vm1, %v4160_v6  ;;  %v2826_v50 = vld [vmem:[%s5937_s0 + $0x560] sm:$0xff] }
 0x121   :  { %v5121_v58 = vadd.f32 %v3819_v54, %v3817_v47  ;;  %3828 = vtanh.f32 %v373_v49  ;;  %v2727_v49 = vld [vmem:[%s5937_s0 + $0x3d8] sm:$0xff] }
 0x122   :  { %3830 = vtanh.f32 %v978_v51  ;;  %v377_v59 = vpop.f32.mrb[34].mxu0  ;;  %v982_v61 = vpop.f32.mrb[34].mxu1 }
 0x123   :  { %v3821_v62 = vpop.eup %3820  ;;  %v378_v63 = vadd.f32 %v4845_v52, %v377_v59  ;;  %v3173_v0 = vpop.f32.mrb[35].mxu0  ;;  %v983_v1 = vadd.f32 %v4845_v52, %v982_v61  ;;  %3494 = vmatmul.mubr.msk.f32.gmra.mrb[140].mxu0 %vm74_vm4, %v2723_v55  ;;  %3649 = vmatmul.mubr.msk.f32.gmra.mrb[140].mxu1 %vm74_vm4, %v2822_v57 }
 0x124   :  { %v3328_v2 = vpop.f32.mrb[35].mxu1  ;;  %v3823_v3 = vpop.eup %3822  ;;  %3496 = vmatprep.mubr.msk.f32.mxu0 %vm4159_vm1, %v4160_v6  ;;  %3651 = vmatprep.mubr.msk.f32.mxu1 %vm4159_vm1, %v4160_v6  ;;  %v2728_v0 = vld [vmem:[%s5937_s0 + $0x3e0] sm:$0xff] }
 0x125   :  { %v5137_v9 = vadd.f32 %v3823_v3, %v3821_v62  ;;  %3832 = vtanh.f32 %v378_v63 }
 0x126   :  { %3834 = vtanh.f32 %v983_v1  ;;  %v382_v10 = vpop.f32.mrb[36].mxu0  ;;  %v987_v11 = vpop.f32.mrb[36].mxu1  ;;  %v2827_v1 = vld [vmem:[%s5937_s0 + $0x568] sm:$0xff] }
 0x127   :  { %v3825_v12 = vpop.eup %3824  ;;  %v383_v13 = vadd.f32 %v4845_v52, %v382_v10  ;;  %v3176_v14 = vpop.f32.mrb[37].mxu0  ;;  %v988_v15 = vadd.f32 %v4845_v52, %v987_v11  ;;  %3497 = vmatmul.mubr.msk.f32.gmra.mrb[142].mxu0 %vm74_vm4, %v2724_v5  ;;  %3652 = vmatmul.mubr.msk.f32.gmra.mrb[142].mxu1 %vm74_vm4, %v2823_v7 }
 0x128   :  { %v3331_v16 = vpop.f32.mrb[37].mxu1  ;;  %v3827_v18 = vpop.eup %3826  ;;  %3499 = vmatprep.mubr.msk.f32.mxu0 %vm4159_vm1, %v4160_v6  ;;  %3654 = vmatprep.mubr.msk.f32.mxu1 %vm4159_vm1, %v4160_v6 }
 0x129   :  { %v5153_v22 = vadd.f32 %v3827_v18, %v3825_v12  ;;  %3836 = vtanh.f32 %v383_v13  ;;  %v2828_v16 = vld [vmem:[%s5937_s0 + $0x570] sm:$0xff] }
 0x12a   :  { %3838 = vtanh.f32 %v988_v15  ;;  %v387_v23 = vpop.f32.mrb[38].mxu0  ;;  %v992_v24 = vpop.f32.mrb[38].mxu1  ;;  %v2729_v15 = vld [vmem:[%s5937_s0 + $0x3e8] sm:$0xff] }
 0x12b   :  { %v3829_v25 = vpop.eup %3828  ;;  %v388_v27 = vadd.f32 %v4845_v52, %v387_v23  ;;  %v3179_v28 = vpop.f32.mrb[39].mxu0  ;;  %v993_v29 = vadd.f32 %v4845_v52, %v992_v24  ;;  %3500 = vmatmul.mubr.msk.f32.gmra.mrb[144].mxu0 %vm74_vm4, %v2725_v20  ;;  %3655 = vmatmul.mubr.msk.f32.gmra.mrb[144].mxu1 %vm74_vm4, %v2824_v21 }
 0x12c   :  { %v3334_v32 = vpop.f32.mrb[39].mxu1  ;;  %v3831_v33 = vpop.eup %3830  ;;  %3502 = vmatprep.mubr.msk.f32.mxu0 %vm4159_vm1, %v4160_v6  ;;  %3657 = vmatprep.mubr.msk.f32.mxu1 %vm4159_vm1, %v4160_v6 }
 0x12d   :  { %v5169_v36 = vadd.f32 %v3831_v33, %v3829_v25  ;;  %3840 = vtanh.f32 %v388_v27  ;;  %v2730_v32 = vld [vmem:[%s5937_s0 + $0x3f0] sm:$0xff]  ;;  %v2829_v33 = vld [vmem:[%s5937_s0 + $0x578] sm:$0xff] }
 0x12e   :  { %3842 = vtanh.f32 %v993_v29  ;;  %v392_v38 = vpop.f32.mrb[40].mxu0  ;;  %v997_v39 = vpop.f32.mrb[40].mxu1 }
 0x12f   :  { %v3833_v40 = vpop.eup %3832  ;;  %v393_v41 = vadd.f32 %v4845_v52, %v392_v38  ;;  %v3182_v42 = vpop.f32.mrb[41].mxu0  ;;  %v998_v45 = vadd.f32 %v4845_v52, %v997_v39  ;;  %3503 = vmatmul.mubr.msk.f32.gmra.mrb[146].mxu0 %vm74_vm4, %v2726_v34  ;;  %3658 = vmatmul.mubr.msk.f32.gmra.mrb[146].mxu1 %vm74_vm4, %v2825_v35 }
 0x130   :  { %v3337_v46 = vpop.f32.mrb[41].mxu1  ;;  %v3835_v47 = vpop.eup %3834  ;;  %3505 = vmatprep.mubr.msk.f32.mxu0 %vm4159_vm1, %v4160_v6  ;;  %3660 = vmatprep.mubr.msk.f32.mxu1 %vm4159_vm1, %v4160_v6 }
 0x131   :  { %v5185_v51 = vadd.f32 %v3835_v47, %v3833_v40  ;;  %3844 = vtanh.f32 %v393_v41  ;;  %v2731_v47 = vld [vmem:[%s5937_s0 + $0x3f8] sm:$0xff] }
 0x132   :  { %3846 = vtanh.f32 %v998_v45  ;;  %v397_v53 = vpop.f32.mrb[42].mxu0  ;;  %v1002_v54 = vpop.f32.mrb[42].mxu1 }
 0x133   :  { %v3837_v55 = vpop.eup %3836  ;;  %v398_v57 = vadd.f32 %v4845_v52, %v397_v53  ;;  %v3185_v59 = vpop.f32.mrb[43].mxu0  ;;  %v1003_v61 = vadd.f32 %v4845_v52, %v1002_v54  ;;  %3506 = vmatmul.mubr.msk.f32.gmra.mrb[148].mxu0 %vm74_vm4, %v2727_v49  ;;  %3661 = vmatmul.mubr.msk.f32.gmra.mrb[148].mxu1 %vm74_vm4, %v2826_v50  ;;  %v2830_v49 = vld [vmem:[%s5937_s0 + $0x580] sm:$0xff] }
 0x134   :  { %v3340_v62 = vpop.f32.mrb[43].mxu1  ;;  %v3839_v63 = vpop.eup %3838  ;;  %3508 = vmatprep.mubr.msk.f32.mxu0 %vm4159_vm1, %v4160_v6  ;;  %3663 = vmatprep.mubr.msk.f32.mxu1 %vm4159_vm1, %v4160_v6 }
 0x135   :  { %v5201_v2 = vadd.f32 %v3839_v63, %v3837_v55  ;;  %3848 = vtanh.f32 %v398_v57 }
 0x136   :  { %3850 = vtanh.f32 %v1003_v61  ;;  %v402_v3 = vpop.f32.mrb[44].mxu0  ;;  %v1007_v5 = vpop.f32.mrb[44].mxu1 }
 0x137   :  { %v3841_v7 = vpop.eup %3840  ;;  %v403_v10 = vadd.f32 %v4845_v52, %v402_v3  ;;  %v3188_v11 = vpop.f32.mrb[45].mxu0  ;;  %v1008_v12 = vadd.f32 %v4845_v52, %v1007_v5  ;;  %3509 = vmatmul.mubr.msk.f32.gmra.mrb[150].mxu0 %vm74_vm4, %v2728_v0  ;;  %3664 = vmatmul.mubr.msk.f32.gmra.mrb[150].mxu1 %vm74_vm4, %v2827_v1  ;;  %v2732_v0 = vld [vmem:[%s5937_s0 + $0x400] sm:$0xff]  ;;  %v2831_v1 = vld [vmem:[%s5937_s0 + $0x588] sm:$0xff] }
 0x138   :  { %v3343_v13 = vpop.f32.mrb[45].mxu1  ;;  %v3843_v14 = vpop.eup %3842  ;;  %3511 = vmatprep.mubr.msk.f32.mxu0 %vm4159_vm1, %v4160_v6  ;;  %3666 = vmatprep.mubr.msk.f32.mxu1 %vm4159_vm1, %v4160_v6 }
 0x139   :  { %v5217_v18 = vadd.f32 %v3843_v14, %v3841_v7  ;;  %3852 = vtanh.f32 %v403_v10 }
 0x13a   :  { %3854 = vtanh.f32 %v1008_v12  ;;  %v407_v20 = vpop.f32.mrb[46].mxu0  ;;  %v1012_v21 = vpop.f32.mrb[46].mxu1 }
 0x13b   :  { %v3845_v23 = vpop.eup %3844  ;;  %v408_v24 = vadd.f32 %v4845_v52, %v407_v20  ;;  %v3191_v25 = vpop.f32.mrb[47].mxu0  ;;  %v1013_v27 = vadd.f32 %v4845_v52, %v1012_v21  ;;  %3512 = vmatmul.mubr.msk.f32.gmra.mrb[152].mxu0 %vm74_vm4, %v2729_v15  ;;  %3667 = vmatmul.mubr.msk.f32.gmra.mrb[152].mxu1 %vm74_vm4, %v2828_v16  ;;  %v2733_v16 = vld [vmem:[%s5937_s0 + $0x408] sm:$0xff]  ;;  %v2832_v20 = vld [vmem:[%s5937_s0 + $0x590] sm:$0xff] }
 0x13c   :  { %v3346_v28 = vpop.f32.mrb[47].mxu1  ;;  %v3847_v29 = vpop.eup %3846  ;;  %3514 = vmatprep.mubr.msk.f32.mxu0 %vm4159_vm1, %v4160_v6  ;;  %3669 = vmatprep.mubr.msk.f32.mxu1 %vm4159_vm1, %v4160_v6 }
 0x13d   :  { %v5233_v34 = vadd.f32 %v3847_v29, %v3845_v23  ;;  %3856 = vtanh.f32 %v408_v24 }
 0x13e   :  { %3858 = vtanh.f32 %v1013_v27  ;;  %v412_v35 = vpop.f32.mrb[48].mxu0  ;;  %v1017_v38 = vpop.f32.mrb[48].mxu1 }
 0x13f   :  { %v3849_v39 = vpop.eup %3848  ;;  %v413_v40 = vadd.f32 %v4845_v52, %v412_v35  ;;  %v3194_v41 = vpop.f32.mrb[49].mxu0  ;;  %v1018_v42 = vadd.f32 %v4845_v52, %v1017_v38  ;;  %3515 = vmatmul.mubr.msk.f32.gmra.mrb[154].mxu0 %vm74_vm4, %v2730_v32  ;;  %3670 = vmatmul.mubr.msk.f32.gmra.mrb[154].mxu1 %vm74_vm4, %v2829_v33  ;;  %v2734_v35 = vld [vmem:[%s5937_s0 + $0x410] sm:$0xff]  ;;  %v2833_v38 = vld [vmem:[%s5937_s0 + $0x598] sm:$0xff] }
 0x140   :  { %v3349_v45 = vpop.f32.mrb[49].mxu1  ;;  %v3851_v46 = vpop.eup %3850  ;;  %3517 = vmatprep.mubr.msk.f32.mxu0 %vm4159_vm1, %v4160_v6  ;;  %3672 = vmatprep.mubr.msk.f32.mxu1 %vm4159_vm1, %v4160_v6 }
 0x141   :  { %v5249_v50 = vadd.f32 %v3851_v46, %v3849_v39  ;;  %3860 = vtanh.f32 %v413_v40 }
 0x142   :  { %3862 = vtanh.f32 %v1018_v42  ;;  %v417_v53 = vpop.f32.mrb[50].mxu0  ;;  %v1022_v54 = vpop.f32.mrb[50].mxu1 }
 0x143   :  { %v3853_v55 = vpop.eup %3852  ;;  %v418_v57 = vadd.f32 %v4845_v52, %v417_v53  ;;  %v3197_v59 = vpop.f32.mrb[51].mxu0  ;;  %v1023_v61 = vadd.f32 %v4845_v52, %v1022_v54  ;;  %3518 = vmatmul.mubr.msk.f32.gmra.mrb[156].mxu0 %vm74_vm4, %v2731_v47  ;;  %3673 = vmatmul.mubr.msk.f32.gmra.mrb[156].mxu1 %vm74_vm4, %v2830_v49  ;;  %v2735_v54 = vld [vmem:[%s5937_s0 + $0x418] sm:$0xff] }
 0x144   :  { %v3352_v62 = vpop.f32.mrb[51].mxu1  ;;  %v3855_v63 = vpop.eup %3854  ;;  %3520 = vmatprep.mubr.msk.f32.mxu0 %vm4159_vm1, %v4160_v6  ;;  %3675 = vmatprep.mubr.msk.f32.mxu1 %vm4159_vm1, %v4160_v6 }
 0x145   :  { %v5265_v3 = vadd.f32 %v3855_v63, %v3853_v55  ;;  %3864 = vtanh.f32 %v418_v57  ;;  %v2834_v55 = vld [vmem:[%s5937_s0 + $0x5a0] sm:$0xff] }
 0x146   :  { %3866 = vtanh.f32 %v1023_v61  ;;  %v422_v5 = vpop.f32.mrb[52].mxu0  ;;  %v1027_v7 = vpop.f32.mrb[52].mxu1 }
 0x147   :  { %v3857_v10 = vpop.eup %3856  ;;  %v423_v11 = vadd.f32 %v4845_v52, %v422_v5  ;;  %v3200_v12 = vpop.f32.mrb[53].mxu0  ;;  %v1028_v13 = vadd.f32 %v4845_v52, %v1027_v7  ;;  %3521 = vmatmul.mubr.msk.f32.gmra.mrb[158].mxu0 %vm74_vm4, %v2732_v0  ;;  %3676 = vmatmul.mubr.msk.f32.gmra.mrb[158].mxu1 %vm74_vm4, %v2831_v1 }
 0x148   :  { %v3355_v14 = vpop.f32.mrb[53].mxu1  ;;  %v3859_v15 = vpop.eup %3858  ;;  %3523 = vmatprep.mubr.msk.f32.mxu0 %vm4159_vm1, %v4160_v6  ;;  %3678 = vmatprep.mubr.msk.f32.mxu1 %vm4159_vm1, %v4160_v6 }
 0x149   :  { %v5281_v21 = vadd.f32 %v3859_v15, %v3857_v10  ;;  %3868 = vtanh.f32 %v423_v11  ;;  %v2736_v10 = vld [vmem:[%s5937_s0 + $0x420] sm:$0xff]  ;;  %v2835_v11 = vld [vmem:[%s5937_s0 + $0x5a8] sm:$0xff] }
 0x14a   :  { %3870 = vtanh.f32 %v1028_v13  ;;  %v427_v23 = vpop.f32.mrb[54].mxu0  ;;  %v1032_v24 = vpop.f32.mrb[54].mxu1 }
 0x14b   :  { %v3861_v25 = vpop.eup %3860  ;;  %v428_v27 = vadd.f32 %v4845_v52, %v427_v23  ;;  %v3203_v28 = vpop.f32.mrb[55].mxu0  ;;  %v1033_v29 = vadd.f32 %v4845_v52, %v1032_v24  ;;  %3524 = vmatmul.mubr.msk.f32.gmra.mrb[160].mxu0 %vm74_vm4, %v2733_v16  ;;  %3679 = vmatmul.mubr.msk.f32.gmra.mrb[160].mxu1 %vm74_vm4, %v2832_v20 }
 0x14c   :  { %v3358_v32 = vpop.f32.mrb[55].mxu1  ;;  %v3863_v33 = vpop.eup %3862  ;;  %3526 = vmatprep.mubr.msk.f32.mxu0 %vm4159_vm1, %v4160_v6  ;;  %3681 = vmatprep.mubr.msk.f32.mxu1 %vm4159_vm1, %v4160_v6 }
 0x14d   :  { %v5297_v39 = vadd.f32 %v3863_v33, %v3861_v25  ;;  %3872 = vtanh.f32 %v428_v27  ;;  %v2737_v27 = vld [vmem:[%s5937_s0 + $0x428] sm:$0xff] }
 0x14e   :  { %3874 = vtanh.f32 %v1033_v29  ;;  %v432_v40 = vpop.f32.mrb[56].mxu0  ;;  %v1037_v41 = vpop.f32.mrb[56].mxu1 }
 0x14f   :  { %v3865_v42 = vpop.eup %3864  ;;  %v433_v45 = vadd.f32 %v4845_v52, %v432_v40  ;;  %v3206_v46 = vpop.f32.mrb[57].mxu0  ;;  %v1038_v47 = vadd.f32 %v4845_v52, %v1037_v41  ;;  %3527 = vmatmul.mubr.msk.f32.gmra.mrb[162].mxu0 %vm74_vm4, %v2734_v35  ;;  %3682 = vmatmul.mubr.msk.f32.gmra.mrb[162].mxu1 %vm74_vm4, %v2833_v38  ;;  %v5350_v35 = vld [vmem:[%s5938_s2] ss:$0 sm:$0xff] }
 0x150   :  { %v3361_v49 = vpop.f32.mrb[57].mxu1  ;;  %v3867_v53 = vpop.eup %3866  ;;  %3529 = vmatprep.mubr.msk.f32.mxu0 %vm4159_vm1, %v4160_v6  ;;  %3684 = vmatprep.mubr.msk.f32.mxu1 %vm4159_vm1, %v4160_v6  ;;  %v2738_v46 = vld [vmem:[%s5937_s0 + $0x430] sm:$0xff] }
 0x151   :  { %v5313_v57 = vadd.f32 %v3867_v53, %v3865_v42  ;;  %3876 = vtanh.f32 %v433_v45 }
 0x152   :  { %3878 = vtanh.f32 %v1038_v47  ;;  %v437_v59 = vpop.f32.mrb[58].mxu0  ;;  %v1042_v61 = vpop.f32.mrb[58].mxu1  ;;  %v2837_v47 = vld [vmem:[%s5937_s0 + $0x5b8] sm:$0xff] }
 0x153   :  { %v3869_v62 = vpop.eup %3868  ;;  %v438_v63 = vadd.f32 %v4845_v52, %v437_v59  ;;  %v3209_v0 = vpop.f32.mrb[59].mxu0  ;;  %v1043_v1 = vadd.f32 %v4845_v52, %v1042_v61  ;;  %3530 = vmatmul.mubr.msk.f32.gmra.mrb[164].mxu0 %vm74_vm4, %v2735_v54  ;;  %3685 = vmatmul.mubr.msk.f32.gmra.mrb[164].mxu1 %vm74_vm4, %v2834_v55 }
 0x154   :  { %v3364_v5 = vpop.f32.mrb[59].mxu1  ;;  %v3871_v7 = vpop.eup %3870  ;;  %3532 = vmatprep.mubr.msk.f32.mxu0 %vm4159_vm1, %v4160_v6  ;;  %3687 = vmatprep.mubr.msk.f32.mxu1 %vm4159_vm1, %v4160_v6 }
 0x155   :  { %v5329_v12 = vadd.f32 %v3871_v7, %v3869_v62  ;;  %3880 = vtanh.f32 %v438_v63  ;;  %v2838_v5 = vld [vmem:[%s5937_s0 + $0x5c0] sm:$0xff] }
 0x156   :  { %3882 = vtanh.f32 %v1043_v1  ;;  %v442_v13 = vpop.f32.mrb[60].mxu0  ;;  %v1047_v14 = vpop.f32.mrb[60].mxu1  ;;  %v2739_v1 = vld [vmem:[%s5937_s0 + $0x438] sm:$0xff] }
 0x157   :  { %v3873_v15 = vpop.eup %3872  ;;  %v443_v16 = vadd.f32 %v4845_v52, %v442_v13  ;;  %v3212_v20 = vpop.f32.mrb[61].mxu0  ;;  %v1048_v23 = vadd.f32 %v4845_v52, %v1047_v14  ;;  %3533 = vmatmul.mubr.msk.f32.gmra.mrb[166].mxu0 %vm74_vm4, %v2736_v10  ;;  %3688 = vmatmul.mubr.msk.f32.gmra.mrb[166].mxu1 %vm74_vm4, %v2835_v11  ;;  %v2836_v52 = vld [vmem:[%s5937_s0 + $0x5b0] sm:$0xff] }
 0x158   :  { %v3367_v24 = vpop.f32.mrb[61].mxu1  ;;  %v3875_v25 = vpop.eup %3874  ;;  %3535 = vmatprep.mubr.msk.f32.mxu0 %vm4159_vm1, %v4160_v6  ;;  %3690 = vmatprep.mubr.msk.f32.mxu1 %vm4159_vm1, %v4160_v6 }
 0x159   :  { %v5345_v28 = vadd.f32 %v3875_v25, %v3873_v15  ;;  %3884 = vtanh.f32 %v443_v16  ;;  %v2740_v24 = vld [vmem:[%s5937_s0 + $0x440] sm:$0xff]  ;;  %v2839_v25 = vld [vmem:[%s5937_s0 + $0x5c8] sm:$0xff] }
 0x15a   :  { %3886 = vtanh.f32 %v1048_v23  ;;  %v447_v29 = vpop.f32.mrb[62].mxu0  ;;  %v1052_v32 = vpop.f32.mrb[62].mxu1 }
 0x15b   :  { %v3877_v33 = vpop.eup %3876  ;;  %v448_v38 = vadd.f32 %v5350_v35, %v447_v29  ;;  %v3215_v40 = vpop.f32.mrb[63].mxu0  ;;  %v1053_v41 = vadd.f32 %v5350_v35, %v1052_v32  ;;  %3536 = vmatmul.mubr.msk.f32.gmra.mrb[168].mxu0 %vm74_vm4, %v2737_v27  ;;  %3691 = vmatmul.mubr.msk.f32.gmra.mrb[168].mxu1 %vm74_vm4, %v2836_v52 }
 0x15c   :  { %v3370_v42 = vpop.f32.mrb[63].mxu1  ;;  %v3879_v45 = vpop.eup %3878  ;;  %3538 = vmatprep.mubr.msk.f32.mxu0 %vm4159_vm1, %v4160_v6  ;;  %3693 = vmatprep.mubr.msk.f32.mxu1 %vm4159_vm1, %v4160_v6 }
 0x15d   :  { %v5366_v49 = vadd.f32 %v3879_v45, %v3877_v33  ;;  %3888 = vtanh.f32 %v448_v38  ;;  %v2741_v45 = vld [vmem:[%s5937_s0 + $0x448] sm:$0xff] }
 0x15e   :  { %3890 = vtanh.f32 %v1053_v41  ;;  %v452_v53 = vpop.f32.mrb[64].mxu0  ;;  %v1057_v54 = vpop.f32.mrb[64].mxu1 }
 0x15f   :  { %v3881_v55 = vpop.eup %3880  ;;  %v453_v59 = vadd.f32 %v5350_v35, %v452_v53  ;;  %v3218_v61 = vpop.f32.mrb[65].mxu0  ;;  %v1058_v62 = vadd.f32 %v5350_v35, %v1057_v54  ;;  %3539 = vmatmul.mubr.msk.f32.gmra.mrb[170].mxu0 %vm74_vm4, %v2738_v46  ;;  %3694 = vmatmul.mubr.msk.f32.gmra.mrb[170].mxu1 %vm74_vm4, %v2837_v47  ;;  %v2840_v46 = vld [vmem:[%s5937_s0 + $0x5d0] sm:$0xff] }
 0x160   :  { %v3373_v63 = vpop.f32.mrb[65].mxu1  ;;  %v3883_v0 = vpop.eup %3882  ;;  %3541 = vmatprep.mubr.msk.f32.mxu0 %vm4159_vm1, %v4160_v6  ;;  %3696 = vmatprep.mubr.msk.f32.mxu1 %vm4159_vm1, %v4160_v6 }
 0x161   :  { %v5382_v7 = vadd.f32 %v3883_v0, %v3881_v55  ;;  %3892 = vtanh.f32 %v453_v59 }
 0x162   :  { %3894 = vtanh.f32 %v1058_v62  ;;  %v457_v10 = vpop.f32.mrb[66].mxu0  ;;  %v1062_v11 = vpop.f32.mrb[66].mxu1 }
 0x163   :  { %v3885_v13 = vpop.eup %3884  ;;  %v458_v14 = vadd.f32 %v5350_v35, %v457_v10  ;;  %v3221_v15 = vpop.f32.mrb[67].mxu0  ;;  %v1063_v16 = vadd.f32 %v5350_v35, %v1062_v11  ;;  %3542 = vmatmul.mubr.msk.f32.gmra.mrb[172].mxu0 %vm74_vm4, %v2739_v1  ;;  %3697 = vmatmul.mubr.msk.f32.gmra.mrb[172].mxu1 %vm74_vm4, %v2838_v5  ;;  %v2742_v1 = vld [vmem:[%s5937_s0 + $0x450] sm:$0xff]  ;;  %v2841_v5 = vld [vmem:[%s5937_s0 + $0x5d8] sm:$0xff] }
 0x164   :  { %v3376_v20 = vpop.f32.mrb[67].mxu1  ;;  %v3887_v23 = vpop.eup %3886  ;;  %3544 = vmatprep.mubr.msk.f32.mxu0 %vm4159_vm1, %v4160_v6  ;;  %3699 = vmatprep.mubr.msk.f32.mxu1 %vm4159_vm1, %v4160_v6 }
 0x165   :  { %v5398_v27 = vadd.f32 %v3887_v23, %v3885_v13  ;;  %3896 = vtanh.f32 %v458_v14 }
 0x166   :  { %3898 = vtanh.f32 %v1063_v16  ;;  %v462_v52 = vpop.f32.mrb[68].mxu0  ;;  %v1067_v29 = vpop.f32.mrb[68].mxu1 }
 0x167   :  { %v3889_v32 = vpop.eup %3888  ;;  %v463_v33 = vadd.f32 %v5350_v35, %v462_v52  ;;  %v3224_v38 = vpop.f32.mrb[69].mxu0  ;;  %v1068_v40 = vadd.f32 %v5350_v35, %v1067_v29  ;;  %3545 = vmatmul.mubr.msk.f32.gmra.mrb[174].mxu0 %vm74_vm4, %v2740_v24  ;;  %3700 = vmatmul.mubr.msk.f32.gmra.mrb[174].mxu1 %vm74_vm4, %v2839_v25  ;;  %v2743_v25 = vld [vmem:[%s5937_s0 + $0x458] sm:$0xff]  ;;  %v2842_v52 = vld [vmem:[%s5937_s0 + $0x5e0] sm:$0xff] }
 0x168   :  { %v3379_v41 = vpop.f32.mrb[69].mxu1  ;;  %v3891_v42 = vpop.eup %3890  ;;  %3547 = vmatprep.mubr.msk.f32.mxu0 %vm4159_vm1, %v4160_v6  ;;  %3702 = vmatprep.mubr.msk.f32.mxu1 %vm4159_vm1, %v4160_v6 }
 0x169   :  { %v5414_v47 = vadd.f32 %v3891_v42, %v3889_v32  ;;  %3900 = vtanh.f32 %v463_v33 }
 0x16a   :  { %3902 = vtanh.f32 %v1068_v40  ;;  %v467_v53 = vpop.f32.mrb[70].mxu0  ;;  %v1072_v54 = vpop.f32.mrb[70].mxu1 }
 0x16b   :  { %v3893_v55 = vpop.eup %3892  ;;  %v468_v59 = vadd.f32 %v5350_v35, %v467_v53  ;;  %v3227_v61 = vpop.f32.mrb[71].mxu0  ;;  %v1073_v62 = vadd.f32 %v5350_v35, %v1072_v54  ;;  %3548 = vmatmul.mubr.msk.f32.gmra.mrb[176].mxu0 %vm74_vm4, %v2741_v45  ;;  %3703 = vmatmul.mubr.msk.f32.gmra.mrb[176].mxu1 %vm74_vm4, %v2840_v46  ;;  %v2744_v53 = vld [vmem:[%s5937_s0 + $0x460] sm:$0xff]  ;;  %v2843_v54 = vld [vmem:[%s5937_s0 + $0x5e8] sm:$0xff] }
 0x16c   :  { %v3382_v63 = vpop.f32.mrb[71].mxu1  ;;  %v3895_v0 = vpop.eup %3894  ;;  %3550 = vmatprep.mubr.msk.f32.mxu0 %vm4159_vm1, %v4160_v6  ;;  %3705 = vmatprep.mubr.msk.f32.mxu1 %vm4159_vm1, %v4160_v6 }
 0x16d   :  { %v5430_v10 = vadd.f32 %v3895_v0, %v3893_v55  ;;  %3904 = vtanh.f32 %v468_v59 }
 0x16e   :  { %3906 = vtanh.f32 %v1073_v62  ;;  %v472_v11 = vpop.f32.mrb[72].mxu0  ;;  %v1077_v13 = vpop.f32.mrb[72].mxu1 }
 0x16f   :  { %v3897_v14 = vpop.eup %3896  ;;  %v473_v15 = vadd.f32 %v5350_v35, %v472_v11  ;;  %v3230_v16 = vpop.f32.mrb[73].mxu0  ;;  %v1078_v20 = vadd.f32 %v5350_v35, %v1077_v13  ;;  %3551 = vmatmul.mubr.msk.f32.gmra.mrb[178].mxu0 %vm74_vm4, %v2742_v1  ;;  %3706 = vmatmul.mubr.msk.f32.gmra.mrb[178].mxu1 %vm74_vm4, %v2841_v5  ;;  %v2745_v13 = vld [vmem:[%s5937_s0 + $0x468] sm:$0xff] }
 0x170   :  { %v3385_v23 = vpop.f32.mrb[73].mxu1  ;;  %v3899_v24 = vpop.eup %3898  ;;  %3553 = vmatprep.mubr.msk.f32.mxu0 %vm4159_vm1, %v4160_v6  ;;  %3708 = vmatprep.mubr.msk.f32.mxu1 %vm4159_vm1, %v4160_v6 }
 0x171   :  { %v5446_v29 = vadd.f32 %v3899_v24, %v3897_v14  ;;  %3908 = vtanh.f32 %v473_v15  ;;  %v2844_v14 = vld [vmem:[%s5937_s0 + $0x5f0] sm:$0xff] }
 0x172   :  { %3910 = vtanh.f32 %v1078_v20  ;;  %v477_v32 = vpop.f32.mrb[74].mxu0  ;;  %v1082_v33 = vpop.f32.mrb[74].mxu1 }
 0x173   :  { %v3901_v38 = vpop.eup %3900  ;;  %v478_v40 = vadd.f32 %v5350_v35, %v477_v32  ;;  %v3233_v41 = vpop.f32.mrb[75].mxu0  ;;  %v1083_v42 = vadd.f32 %v5350_v35, %v1082_v33  ;;  %3554 = vmatmul.mubr.msk.f32.gmra.mrb[180].mxu0 %vm74_vm4, %v2743_v25  ;;  %3709 = vmatmul.mubr.msk.f32.gmra.mrb[180].mxu1 %vm74_vm4, %v2842_v52 }
 0x174   :  { %v3388_v45 = vpop.f32.mrb[75].mxu1  ;;  %v3903_v46 = vpop.eup %3902  ;;  %3556 = vmatprep.mubr.msk.f32.mxu0 %vm4159_vm1, %v4160_v6  ;;  %3711 = vmatprep.mubr.msk.f32.mxu1 %vm4159_vm1, %v4160_v6 }
 0x175   :  { %v5462_v55 = vadd.f32 %v3903_v46, %v3901_v38  ;;  %3912 = vtanh.f32 %v478_v40  ;;  %v2746_v38 = vld [vmem:[%s5937_s0 + $0x470] sm:$0xff]  ;;  %v2845_v40 = vld [vmem:[%s5937_s0 + $0x5f8] sm:$0xff] }
 0x176   :  { %3914 = vtanh.f32 %v1083_v42  ;;  %v482_v59 = vpop.f32.mrb[76].mxu0  ;;  %v1087_v61 = vpop.f32.mrb[76].mxu1 }
 0x177   :  { %v3905_v62 = vpop.eup %3904  ;;  %v483_v63 = vadd.f32 %v5350_v35, %v482_v59  ;;  %v3236_v0 = vpop.f32.mrb[77].mxu0  ;;  %v1088_v1 = vadd.f32 %v5350_v35, %v1087_v61  ;;  %3557 = vmatmul.mubr.msk.f32.gmra.mrb[182].mxu0 %vm74_vm4, %v2744_v53  ;;  %3712 = vmatmul.mubr.msk.f32.gmra.mrb[182].mxu1 %vm74_vm4, %v2843_v54 }
 0x178   :  { %v3391_v5 = vpop.f32.mrb[77].mxu1  ;;  %v3907_v11 = vpop.eup %3906  ;;  %3559 = vmatprep.mubr.msk.f32.mxu0 %vm4159_vm1, %v4160_v6  ;;  %3714 = vmatprep.mubr.msk.f32.mxu1 %vm4159_vm1, %v4160_v6  ;;  %v2846_v0 = vld [vmem:[%s5937_s0 + $0x600] sm:$0xff] }
 0x179   :  { %v5478_v15 = vadd.f32 %v3907_v11, %v3905_v62  ;;  %3916 = vtanh.f32 %v483_v63  ;;  %v2747_v63 = vld [vmem:[%s5937_s0 + $0x478] sm:$0xff] }
 0x17a   :  { %3918 = vtanh.f32 %v1088_v1  ;;  %v487_v16 = vpop.f32.mrb[78].mxu0  ;;  %v1092_v20 = vpop.f32.mrb[78].mxu1 }
 0x17b   :  { %v3909_v23 = vpop.eup %3908  ;;  %v488_v24 = vadd.f32 %v5350_v35, %v487_v16  ;;  %v3239_v25 = vpop.f32.mrb[79].mxu0  ;;  %v1093_v52 = vadd.f32 %v5350_v35, %v1092_v20  ;;  %3560 = vmatmul.mubr.msk.f32.gmra.mrb[184].mxu0 %vm74_vm4, %v2745_v13  ;;  %3715 = vmatmul.mubr.msk.f32.gmra.mrb[184].mxu1 %vm74_vm4, %v2844_v14 }
 0x17c   :  { %v3394_v32 = vpop.f32.mrb[79].mxu1  ;;  %v3911_v33 = vpop.eup %3910  ;;  %3562 = vmatprep.mubr.msk.f32.mxu0 %vm4159_vm1, %v4160_v6  ;;  %3717 = vmatprep.mubr.msk.f32.mxu1 %vm4159_vm1, %v4160_v6  ;;  %v2748_v25 = vld [vmem:[%s5937_s0 + $0x480] sm:$0xff] }
 0x17d   :  { %v5494_v41 = vadd.f32 %v3911_v33, %v3909_v23  ;;  %3920 = vtanh.f32 %v488_v24 }
 0x17e   :  { %3922 = vtanh.f32 %v1093_v52  ;;  %v492_v42 = vpop.f32.mrb[80].mxu0  ;;  %v1097_v45 = vpop.f32.mrb[80].mxu1  ;;  %v2847_v52 = vld [vmem:[%s5937_s0 + $0x608] sm:$0xff] }
 0x17f   :  { %v3913_v46 = vpop.eup %3912  ;;  %v493_v53 = vadd.f32 %v5350_v35, %v492_v42  ;;  %v3242_v54 = vpop.f32.mrb[81].mxu0  ;;  %v1098_v59 = vadd.f32 %v5350_v35, %v1097_v45  ;;  %3563 = vmatmul.mubr.msk.f32.gmra.mrb[186].mxu0 %vm74_vm4, %v2746_v38  ;;  %3718 = vmatmul.mubr.msk.f32.gmra.mrb[186].mxu1 %vm74_vm4, %v2845_v40 }
 0x180   :  { %v3397_v61 = vpop.f32.mrb[81].mxu1  ;;  %v3915_v62 = vpop.eup %3914  ;;  %3565 = vmatprep.mubr.msk.f32.mxu0 %vm4159_vm1, %v4160_v6  ;;  %3720 = vmatprep.mubr.msk.f32.mxu1 %vm4159_vm1, %v4160_v6 }
 0x181   :  { %v5510_v1 = vadd.f32 %v3915_v62, %v3913_v46  ;;  %3924 = vtanh.f32 %v493_v53  ;;  %v2848_v61 = vld [vmem:[%s5937_s0 + $0x610] sm:$0xff] }
 0x182   :  { %3926 = vtanh.f32 %v1098_v59  ;;  %v497_v5 = vpop.f32.mrb[82].mxu0  ;;  %v1102_v11 = vpop.f32.mrb[82].mxu1  ;;  %v2749_v59 = vld [vmem:[%s5937_s0 + $0x488] sm:$0xff] }
 0x183   :  { %v3917_v13 = vpop.eup %3916  ;;  %v498_v14 = vadd.f32 %v5350_v35, %v497_v5  ;;  %v3245_v16 = vpop.f32.mrb[83].mxu0  ;;  %v1103_v20 = vadd.f32 %v5350_v35, %v1102_v11  ;;  %3566 = vmatmul.mubr.msk.f32.gmra.mrb[188].mxu0 %vm74_vm4, %v2747_v63  ;;  %3721 = vmatmul.mubr.msk.f32.gmra.mrb[188].mxu1 %vm74_vm4, %v2846_v0 }
 0x184   :  { %v3400_v23 = vpop.f32.mrb[83].mxu1  ;;  %v3919_v24 = vpop.eup %3918  ;;  %3568 = vmatprep.mubr.msk.f32.mxu0 %vm4159_vm1, %v4160_v6  ;;  %3723 = vmatprep.mubr.msk.f32.mxu1 %vm4159_vm1, %v4160_v6 }
 0x185   :  { %v5526_v32 = vadd.f32 %v3919_v24, %v3917_v13  ;;  %3928 = vtanh.f32 %v498_v14  ;;  %v2750_v23 = vld [vmem:[%s5937_s0 + $0x490] sm:$0xff]  ;;  %v2849_v24 = vld [vmem:[%s5937_s0 + $0x618] sm:$0xff] }
 0x186   :  { %3930 = vtanh.f32 %v1103_v20  ;;  %v502_v33 = vpop.f32.mrb[84].mxu0  ;;  %v1107_v38 = vpop.f32.mrb[84].mxu1 }
 0x187   :  { %v3921_v40 = vpop.eup %3920  ;;  %v503_v42 = vadd.f32 %v5350_v35, %v502_v33  ;;  %v3248_v45 = vpop.f32.mrb[85].mxu0  ;;  %v1108_v46 = vadd.f32 %v5350_v35, %v1107_v38  ;;  %3569 = vmatmul.mubr.msk.f32.gmra.mrb[190].mxu0 %vm74_vm4, %v2748_v25  ;;  %3724 = vmatmul.mubr.msk.f32.gmra.mrb[190].mxu1 %vm74_vm4, %v2847_v52 }
 0x188   :  { %v3403_v53 = vpop.f32.mrb[85].mxu1  ;;  %v3923_v54 = vpop.eup %3922  ;;  %3571 = vmatprep.mubr.msk.f32.mxu0 %vm4159_vm1, %v4160_v6  ;;  %3726 = vmatprep.mubr.msk.f32.mxu1 %vm4159_vm1, %v4160_v6 }
 0x189   :  { %v5542_v62 = vadd.f32 %v3923_v54, %v3921_v40  ;;  %3932 = vtanh.f32 %v503_v42 }
 0x18a   :  { %3934 = vtanh.f32 %v1108_v46  ;;  %v507_v63 = vpop.f32.mrb[86].mxu0  ;;  %v1112_v0 = vpop.f32.mrb[86].mxu1 }
 0x18b   :  { %v3925_v5 = vpop.eup %3924  ;;  %v508_v11 = vadd.f32 %v5350_v35, %v507_v63  ;;  %v3251_v13 = vpop.f32.mrb[87].mxu0  ;;  %v1113_v14 = vadd.f32 %v5350_v35, %v1112_v0  ;;  %3572 = vmatmul.mubr.msk.f32.gmra.mrb[192].mxu0 %vm74_vm4, %v2749_v59  ;;  %3727 = vmatmul.mubr.msk.f32.gmra.mrb[192].mxu1 %vm74_vm4, %v2848_v61 }
 0x18c   :  { %v3406_v16 = vpop.f32.mrb[87].mxu1  ;;  %v3927_v20 = vpop.eup %3926  ;;  %3574 = vmatprep.mubr.msk.f32.mxu0 %vm4159_vm1, %v4160_v6  ;;  %3729 = vmatprep.mubr.msk.f32.mxu1 %vm4159_vm1, %v4160_v6 }
 0x18d   :  { %v5558_v25 = vadd.f32 %v3927_v20, %v3925_v5  ;;  %3936 = vtanh.f32 %v508_v11 }
 0x18e   :  { %3938 = vtanh.f32 %v1113_v14  ;;  %v512_v52 = vpop.f32.mrb[88].mxu0  ;;  %v1117_v33 = vpop.f32.mrb[88].mxu1 }
 0x18f   :  { %v3929_v38 = vpop.eup %3928  ;;  %v513_v40 = vadd.f32 %v5350_v35, %v512_v52  ;;  %v3254_v42 = vpop.f32.mrb[89].mxu0  ;;  %v1118_v45 = vadd.f32 %v5350_v35, %v1117_v33  ;;  %3575 = vmatmul.mubr.msk.f32.gmra.mrb[194].mxu0 %vm74_vm4, %v2750_v23  ;;  %3730 = vmatmul.mubr.msk.f32.gmra.mrb[194].mxu1 %vm74_vm4, %v2849_v24 }
 0x190   :  { %v3409_v46 = vpop.f32.mrb[89].mxu1  ;;  %v3931_v6 = vpop.eup %3930 }
 0x191   :  { %v5564_v53 = vadd.f32 %v3931_v6, %v3929_v38  ;;  %3940 = vtanh.f32 %v513_v40 }
 0x192   :  { %3942 = vtanh.f32 %v1118_v45  ;;  %v517_v54 = vpop.f32.mrb[90].mxu0  ;;  %v1122_v59 = vpop.f32.mrb[90].mxu1 }
 0x193   :  { %v3933_v61 = vpop.eup %3932  ;;  %v518_v63 = vadd.f32 %v5350_v35, %v517_v54  ;;  %v3257_v0 = vpop.f32.mrb[91].mxu0  ;;  %v1123_v5 = vadd.f32 %v5350_v35, %v1122_v59 }
 0x194   :  { %v3412_v11 = vpop.f32.mrb[91].mxu1  ;;  %v3935_v13 = vpop.eup %3934 }
 0x195   :  { %v5568_v14 = vadd.f32 %v3935_v13, %v3933_v61  ;;  %3944 = vtanh.f32 %v518_v63 }
 0x196   :  { %3946 = vtanh.f32 %v1123_v5  ;;  %v522_v16 = vpop.f32.mrb[92].mxu0  ;;  %v1127_v20 = vpop.f32.mrb[92].mxu1 }
 0x197   :  { %v3937_v23 = vpop.eup %3936  ;;  %v523_v24 = vadd.f32 %v5350_v35, %v522_v16  ;;  %v3260_v52 = vpop.f32.mrb[93].mxu0  ;;  %v1128_v33 = vadd.f32 %v5350_v35, %v1127_v20 }
 0x198   :  { %v3415_v38 = vpop.f32.mrb[93].mxu1  ;;  %v3939_v40 = vpop.eup %3938 }
 0x199   :  { %v5572_v42 = vadd.f32 %v3939_v40, %v3937_v23  ;;  %3948 = vtanh.f32 %v523_v24 }
 0x19a   :  { %3950 = vtanh.f32 %v1128_v33  ;;  %v527_v45 = vpop.f32.mrb[94].mxu0  ;;  %v1132_v46 = vpop.f32.mrb[94].mxu1 }
 0x19b   :  { %v3941_v6 = vpop.eup %3940  ;;  %v528_v54 = vadd.f32 %v5350_v35, %v527_v45  ;;  %v3263_v59 = vpop.f32.mrb[95].mxu0  ;;  %v1133_v61 = vadd.f32 %v5350_v35, %v1132_v46 }
 0x19c   :  { %v3418_v63 = vpop.f32.mrb[95].mxu1  ;;  %v3943_v0 = vpop.eup %3942 }
 0x19d   :  { %v5576_v5 = vadd.f32 %v3943_v0, %v3941_v6  ;;  %3952 = vtanh.f32 %v528_v54 }
 0x19e   :  { %3954 = vtanh.f32 %v1133_v61  ;;  %v532_v11 = vpop.f32.mrb[96].mxu0  ;;  %v1137_v13 = vpop.f32.mrb[96].mxu1 }
 0x19f   :  { %v3945_v16 = vpop.eup %3944  ;;  %v533_v20 = vadd.f32 %v5350_v35, %v532_v11  ;;  %v3266_v23 = vpop.f32.mrb[97].mxu0  ;;  %v1138_v24 = vadd.f32 %v5350_v35, %v1137_v13 }
 0x1a0   :  { %v3421_v52 = vpop.f32.mrb[97].mxu1  ;;  %v3947_v33 = vpop.eup %3946 }
 0x1a1   :  { %v5580_v38 = vadd.f32 %v3947_v33, %v3945_v16  ;;  %3956 = vtanh.f32 %v533_v20 }
 0x1a2   :  { %3958 = vtanh.f32 %v1138_v24  ;;  %v1502_v40 = vpop.f32.mrb[98].mxu0  ;;  %v2107_v45 = vpop.f32.mrb[98].mxu1 }
 0x1a3   :  { %v3949_v46 = vpop.eup %3948  ;;  %v1503_v6 = vadd.f32 %v5350_v35, %v1502_v40  ;;  %v3432_v54 = vpop.f32.mrb[99].mxu0  ;;  %v2108_v59 = vadd.f32 %v5350_v35, %v2107_v45 }
 0x1a4   :  { %v3587_v61 = vpop.f32.mrb[99].mxu1  ;;  %v3951_v63 = vpop.eup %3950 }
 0x1a5   :  { %v5584_v0 = vadd.f32 %v3951_v63, %v3949_v46  ;;  %3960 = vtanh.f32 %v1503_v6 }
 0x1a6   :  { %3962 = vtanh.f32 %v2108_v59  ;;  %v1507_v11 = vpop.f32.mrb[100].mxu0  ;;  %v2112_v13 = vpop.f32.mrb[100].mxu1 }
 0x1a7   :  { %5942 = vst [vmem:[#allocation2_spill] sm:$0xff] %v5584_v0  ;;  %v3953_v16 = vpop.eup %3952  ;;  %v1508_v20 = vadd.f32 %v5350_v35, %v1507_v11  ;;  %v3435_v23 = vpop.f32.mrb[101].mxu0  ;;  %v2113_v24 = vadd.f32 %v5350_v35, %v2112_v13 }
 0x1a8   :  { %v3590_v52 = vpop.f32.mrb[101].mxu1  ;;  %v3955_v33 = vpop.eup %3954 }
 0x1a9   :  { %v5588_v40 = vadd.f32 %v3955_v33, %v3953_v16  ;;  %3964 = vtanh.f32 %v1508_v20 }
 0x1aa   :  { %3966 = vtanh.f32 %v2113_v24  ;;  %v1512_v45 = vpop.f32.mrb[102].mxu0  ;;  %v2117_v54 = vpop.f32.mrb[102].mxu1 }
 0x1ab   :  { %5943 = vst [vmem:[#allocation3_spill] sm:$0xff] %v5588_v40  ;;  %v3957_v46 = vpop.eup %3956  ;;  %v1513_v6 = vadd.f32 %v5350_v35, %v1512_v45  ;;  %v3438_v59 = vpop.f32.mrb[103].mxu0  ;;  %v2118_v61 = vadd.f32 %v5350_v35, %v2117_v54 }
 0x1ac   :  { %v3593_v63 = vpop.f32.mrb[103].mxu1  ;;  %v3959_v0 = vpop.eup %3958 }
 0x1ad   :  { %v5592_v11 = vadd.f32 %v3959_v0, %v3957_v46  ;;  %3968 = vtanh.f32 %v1513_v6 }
 0x1ae   :  { %3970 = vtanh.f32 %v2118_v61  ;;  %v1517_v13 = vpop.f32.mrb[104].mxu0  ;;  %v2122_v23 = vpop.f32.mrb[104].mxu1 }
 0x1af   :  { %5944 = vst [vmem:[#allocation4_spill] sm:$0xff] %v5592_v11  ;;  %v3961_v16 = vpop.eup %3960  ;;  %v1518_v20 = vadd.f32 %v5350_v35, %v1517_v13  ;;  %v3441_v24 = vpop.f32.mrb[105].mxu0  ;;  %v2123_v52 = vadd.f32 %v5350_v35, %v2122_v23 }
 0x1b0   :  { %v3596_v33 = vpop.f32.mrb[105].mxu1  ;;  %v3963_v40 = vpop.eup %3962  ;;  %v1795_v45 = vadd.f32 %v3961_v16, %v4913_v26 }
 0x1b1   :  { %3972 = vtanh.f32 %v1518_v20 }
 0x1b2   :  { %v2400_v54 = vadd.f32 %v3963_v40, %v1795_v45  ;;  %3974 = vtanh.f32 %v2123_v52  ;;  %v1522_v59 = vpop.f32.mrb[106].mxu0  ;;  %v2127_v0 = vpop.f32.mrb[106].mxu1 }
 0x1b3   :  { %v3965_v46 = vpop.eup %3964  ;;  %v1523_v6 = vadd.f32 %v5350_v35, %v1522_v59  ;;  %v3444_v61 = vpop.f32.mrb[107].mxu0  ;;  %v2128_v63 = vadd.f32 %v5350_v35, %v2127_v0 }
 0x1b4   :  { %v3599_v13 = vpop.f32.mrb[107].mxu1  ;;  %v3967_v24 = vpop.eup %3966  ;;  %v2449_v11 = vmul.f32 0.25, %v2400_v54  ;;  %v1796_v23 = vadd.f32 %v3965_v46, %v4929_v37 }
 0x1b5   :  { %3976 = vtanh.f32 %v1523_v6 }
 0x1b6   :  { %2499 = vst.msk [vmem:[%s5939_s3] sm:$0xff] %vm2498_vm5, %v2449_v11  ;;  %v2401_v26 = vadd.f32 %v3967_v24, %v1796_v23  ;;  %3978 = vtanh.f32 %v2128_v63  ;;  %v1527_v40 = vpop.f32.mrb[108].mxu0  ;;  %v2132_v16 = vpop.f32.mrb[108].mxu1 }
 0x1b7   :  { %v3969_v20 = vpop.eup %3968  ;;  %v1528_v52 = vadd.f32 %v5350_v35, %v1527_v40  ;;  %v3447_v33 = vpop.f32.mrb[109].mxu0  ;;  %v2133_v45 = vadd.f32 %v5350_v35, %v2132_v16 }
 0x1b8   :  { %v3602_v59 = vpop.f32.mrb[109].mxu1  ;;  %v3971_v54 = vpop.eup %3970  ;;  %v2450_v0 = vmul.f32 0.25, %v2401_v26  ;;  %v1797_v37 = vadd.f32 %v3969_v20, %v4945_v48 }
 0x1b9   :  { %3980 = vtanh.f32 %v1528_v52 }
 0x1ba   :  { %2500 = vst.msk [vmem:[%s5939_s3 + $0x8] sm:$0xff] %vm2498_vm5, %v2450_v0  ;;  %v2402_v11 = vadd.f32 %v3971_v54, %v1797_v37  ;;  %3982 = vtanh.f32 %v2133_v45  ;;  %v1532_v46 = vpop.f32.mrb[110].mxu0  ;;  %v2137_v6 = vpop.f32.mrb[110].mxu1 }
 0x1bb   :  { %v3973_v61 = vpop.eup %3972  ;;  %v1533_v63 = vadd.f32 %v5350_v35, %v1532_v46  ;;  %v3450_v13 = vpop.f32.mrb[111].mxu0  ;;  %v2138_v24 = vadd.f32 %v5350_v35, %v2137_v6 }
 0x1bc   :  { %v3605_v23 = vpop.f32.mrb[111].mxu1  ;;  %v3975_v26 = vpop.eup %3974  ;;  %v2451_v40 = vmul.f32 0.25, %v2402_v11  ;;  %v1798_v48 = vadd.f32 %v3973_v61, %v4961_v60 }
 0x1bd   :  { %3984 = vtanh.f32 %v1533_v63 }
 0x1be   :  { %2501 = vst.msk [vmem:[%s5939_s3 + $0x10] sm:$0xff] %vm2498_vm5, %v2451_v40  ;;  %v2403_v16 = vadd.f32 %v3975_v26, %v1798_v48  ;;  %3986 = vtanh.f32 %v2138_v24  ;;  %v1537_v20 = vpop.f32.mrb[112].mxu0  ;;  %v2142_v52 = vpop.f32.mrb[112].mxu1 }
 0x1bf   :  { %v3977_v33 = vpop.eup %3976  ;;  %v1538_v45 = vadd.f32 %v5350_v35, %v1537_v20  ;;  %v3453_v59 = vpop.f32.mrb[113].mxu0  ;;  %v2143_v54 = vadd.f32 %v5350_v35, %v2142_v52 }
 0x1c0   :  { %v3608_v0 = vpop.f32.mrb[113].mxu1  ;;  %v3979_v37 = vpop.eup %3978  ;;  %v2452_v11 = vmul.f32 0.25, %v2403_v16  ;;  %v1799_v60 = vadd.f32 %v3977_v33, %v4977_v8 }
 0x1c1   :  { %3988 = vtanh.f32 %v1538_v45 }
 0x1c2   :  { %2502 = vst.msk [vmem:[%s5939_s3 + $0x18] sm:$0xff] %vm2498_vm5, %v2452_v11  ;;  %v2404_v46 = vadd.f32 %v3979_v37, %v1799_v60  ;;  %3990 = vtanh.f32 %v2143_v54  ;;  %v1542_v6 = vpop.f32.mrb[114].mxu0  ;;  %v2147_v61 = vpop.f32.mrb[114].mxu1 }
 0x1c3   :  { %v3981_v63 = vpop.eup %3980  ;;  %v1543_v13 = vadd.f32 %v5350_v35, %v1542_v6  ;;  %v3456_v24 = vpop.f32.mrb[115].mxu0  ;;  %v2148_v23 = vadd.f32 %v5350_v35, %v2147_v61 }
 0x1c4   :  { %v3611_v26 = vpop.f32.mrb[115].mxu1  ;;  %v3983_v40 = vpop.eup %3982  ;;  %v2453_v48 = vmul.f32 0.25, %v2404_v46  ;;  %v1800_v8 = vadd.f32 %v3981_v63, %v4993_v19 }
 0x1c5   :  { %3992 = vtanh.f32 %v1543_v13 }
 0x1c6   :  { %2503 = vst.msk [vmem:[%s5939_s3 + $0x20] sm:$0xff] %vm2498_vm5, %v2453_v48  ;;  %v2405_v16 = vadd.f32 %v3983_v40, %v1800_v8  ;;  %3994 = vtanh.f32 %v2148_v23  ;;  %v1547_v20 = vpop.f32.mrb[116].mxu0  ;;  %v2152_v52 = vpop.f32.mrb[116].mxu1 }
 0x1c7   :  { %v3985_v33 = vpop.eup %3984  ;;  %v1548_v45 = vadd.f32 %v5350_v35, %v1547_v20  ;;  %v3459_v59 = vpop.f32.mrb[117].mxu0  ;;  %v2153_v54 = vadd.f32 %v5350_v35, %v2152_v52 }
 0x1c8   :  { %v3614_v0 = vpop.f32.mrb[117].mxu1  ;;  %v3987_v37 = vpop.eup %3986  ;;  %v2454_v11 = vmul.f32 0.25, %v2405_v16  ;;  %v1801_v19 = vadd.f32 %v3985_v33, %v5009_v31 }
 0x1c9   :  { %3996 = vtanh.f32 %v1548_v45 }
 0x1ca   :  { %2504 = vst.msk [vmem:[%s5939_s3 + $0x28] sm:$0xff] %vm2498_vm5, %v2454_v11  ;;  %v2406_v60 = vadd.f32 %v3987_v37, %v1801_v19  ;;  %3998 = vtanh.f32 %v2153_v54  ;;  %v1552_v46 = vpop.f32.mrb[118].mxu0  ;;  %v2157_v6 = vpop.f32.mrb[118].mxu1 }
 0x1cb   :  { %v3989_v61 = vpop.eup %3988  ;;  %v1553_v63 = vadd.f32 %v5350_v35, %v1552_v46  ;;  %v3462_v13 = vpop.f32.mrb[119].mxu0  ;;  %v2158_v24 = vadd.f32 %v5350_v35, %v2157_v6 }
 0x1cc   :  { %v3617_v23 = vpop.f32.mrb[119].mxu1  ;;  %v3991_v26 = vpop.eup %3990  ;;  %v2455_v40 = vmul.f32 0.25, %v2406_v60  ;;  %v1802_v31 = vadd.f32 %v3989_v61, %v5025_v43 }
 0x1cd   :  { %4000 = vtanh.f32 %v1553_v63 }
 0x1ce   :  { %2505 = vst.msk [vmem:[%s5939_s3 + $0x30] sm:$0xff] %vm2498_vm5, %v2455_v40  ;;  %v2407_v48 = vadd.f32 %v3991_v26, %v1802_v31  ;;  %4002 = vtanh.f32 %v2158_v24  ;;  %v1557_v8 = vpop.f32.mrb[120].mxu0  ;;  %v2162_v16 = vpop.f32.mrb[120].mxu1 }
 0x1cf   :  { %v3993_v20 = vpop.eup %3992  ;;  %v1558_v52 = vadd.f32 %v5350_v35, %v1557_v8  ;;  %v3465_v33 = vpop.f32.mrb[121].mxu0  ;;  %v2163_v45 = vadd.f32 %v5350_v35, %v2162_v16 }
 0x1d0   :  { %v3620_v59 = vpop.f32.mrb[121].mxu1  ;;  %v3995_v54 = vpop.eup %3994  ;;  %v2456_v0 = vmul.f32 0.25, %v2407_v48  ;;  %v1803_v43 = vadd.f32 %v3993_v20, %v5041_v56 }
 0x1d1   :  { %4004 = vtanh.f32 %v1558_v52 }
 0x1d2   :  { %2506 = vst.msk [vmem:[%s5939_s3 + $0x38] sm:$0xff] %vm2498_vm5, %v2456_v0  ;;  %v2408_v37 = vadd.f32 %v3995_v54, %v1803_v43  ;;  %4006 = vtanh.f32 %v2163_v45  ;;  %v1562_v11 = vpop.f32.mrb[122].mxu0  ;;  %v2167_v19 = vpop.f32.mrb[122].mxu1 }
 0x1d3   :  { %v3997_v60 = vpop.eup %3996  ;;  %v1563_v46 = vadd.f32 %v5350_v35, %v1562_v11  ;;  %v3468_v6 = vpop.f32.mrb[123].mxu0  ;;  %v2168_v61 = vadd.f32 %v5350_v35, %v2167_v19 }
 0x1d4   :  { %v3623_v63 = vpop.f32.mrb[123].mxu1  ;;  %v3999_v13 = vpop.eup %3998  ;;  %v2457_v24 = vmul.f32 0.25, %v2408_v37  ;;  %v1804_v56 = vadd.f32 %v3997_v60, %v5057_v4 }
 0x1d5   :  { %4008 = vtanh.f32 %v1563_v46 }
 0x1d6   :  { %2507 = vst.msk [vmem:[%s5939_s3 + $0x40] sm:$0xff] %vm2498_vm5, %v2457_v24  ;;  %v2409_v23 = vadd.f32 %v3999_v13, %v1804_v56  ;;  %4010 = vtanh.f32 %v2168_v61  ;;  %v1567_v26 = vpop.f32.mrb[124].mxu0  ;;  %v2172_v40 = vpop.f32.mrb[124].mxu1 }
 0x1d7   :  { %v4001_v31 = vpop.eup %4000  ;;  %v1568_v48 = vadd.f32 %v5350_v35, %v1567_v26  ;;  %v3471_v8 = vpop.f32.mrb[125].mxu0  ;;  %v2173_v16 = vadd.f32 %v5350_v35, %v2172_v40 }
 0x1d8   :  { %v3626_v20 = vpop.f32.mrb[125].mxu1  ;;  %v4003_v52 = vpop.eup %4002  ;;  %v2458_v33 = vmul.f32 0.25, %v2409_v23  ;;  %v1805_v4 = vadd.f32 %v4001_v31, %v5073_v17 }
 0x1d9   :  { %4012 = vtanh.f32 %v1568_v48 }
 0x1da   :  { %2508 = vst.msk [vmem:[%s5939_s3 + $0x48] sm:$0xff] %vm2498_vm5, %v2458_v33  ;;  %v2410_v45 = vadd.f32 %v4003_v52, %v1805_v4  ;;  %4014 = vtanh.f32 %v2173_v16  ;;  %v1572_v59 = vpop.f32.mrb[126].mxu0  ;;  %v2177_v54 = vpop.f32.mrb[126].mxu1 }
 0x1db   :  { %v4005_v0 = vpop.eup %4004  ;;  %v1573_v43 = vadd.f32 %v5350_v35, %v1572_v59  ;;  %v3474_v37 = vpop.f32.mrb[127].mxu0  ;;  %v2178_v11 = vadd.f32 %v5350_v35, %v2177_v54 }
 0x1dc   :  { %v3629_v19 = vpop.f32.mrb[127].mxu1  ;;  %v4007_v60 = vpop.eup %4006  ;;  %v2459_v46 = vmul.f32 0.25, %v2410_v45  ;;  %v1806_v17 = vadd.f32 %v4005_v0, %v5089_v30 }
 0x1dd   :  { %4016 = vtanh.f32 %v1573_v43 }
 0x1de   :  { %2509 = vst.msk [vmem:[%s5939_s3 + $0x50] sm:$0xff] %vm2498_vm5, %v2459_v46  ;;  %v2411_v6 = vadd.f32 %v4007_v60, %v1806_v17  ;;  %4018 = vtanh.f32 %v2178_v11  ;;  %v1577_v61 = vpop.f32.mrb[128].mxu0  ;;  %v2182_v63 = vpop.f32.mrb[128].mxu1 }
 0x1df   :  { %v4009_v13 = vpop.eup %4008  ;;  %v1578_v24 = vadd.f32 %v5350_v35, %v1577_v61  ;;  %v3477_v56 = vpop.f32.mrb[129].mxu0  ;;  %v2183_v23 = vadd.f32 %v5350_v35, %v2182_v63 }
 0x1e0   :  { %v3632_v26 = vpop.f32.mrb[129].mxu1  ;;  %v4011_v40 = vpop.eup %4010  ;;  %v2460_v31 = vmul.f32 0.25, %v2411_v6  ;;  %v1807_v30 = vadd.f32 %v4009_v13, %v5105_v44 }
 0x1e1   :  { %4020 = vtanh.f32 %v1578_v24 }
 0x1e2   :  { %2510 = vst.msk [vmem:[%s5939_s3 + $0x58] sm:$0xff] %vm2498_vm5, %v2460_v31  ;;  %v2412_v48 = vadd.f32 %v4011_v40, %v1807_v30  ;;  %4022 = vtanh.f32 %v2183_v23  ;;  %v1582_v8 = vpop.f32.mrb[130].mxu0  ;;  %v2187_v16 = vpop.f32.mrb[130].mxu1 }
 0x1e3   :  { %v4013_v20 = vpop.eup %4012  ;;  %v1583_v52 = vadd.f32 %v5350_v35, %v1582_v8  ;;  %v3480_v33 = vpop.f32.mrb[131].mxu0  ;;  %v2188_v4 = vadd.f32 %v5350_v35, %v2187_v16 }
 0x1e4   :  { %v3635_v45 = vpop.f32.mrb[131].mxu1  ;;  %v4015_v59 = vpop.eup %4014  ;;  %v2461_v54 = vmul.f32 0.25, %v2412_v48  ;;  %v1808_v44 = vadd.f32 %v4013_v20, %v5121_v58 }
 0x1e5   :  { %4024 = vtanh.f32 %v1583_v52 }
 0x1e6   :  { %2511 = vst.msk [vmem:[%s5939_s3 + $0x60] sm:$0xff] %vm2498_vm5, %v2461_v54  ;;  %v2413_v0 = vadd.f32 %v4015_v59, %v1808_v44  ;;  %4026 = vtanh.f32 %v2188_v4  ;;  %v1587_v43 = vpop.f32.mrb[132].mxu0  ;;  %v2192_v37 = vpop.f32.mrb[132].mxu1 }
 0x1e7   :  { %v4017_v11 = vpop.eup %4016  ;;  %v1588_v19 = vadd.f32 %v5350_v35, %v1587_v43  ;;  %v3483_v60 = vpop.f32.mrb[133].mxu0  ;;  %v2193_v46 = vadd.f32 %v5350_v35, %v2192_v37  ;;  %v5698_v35 = vld [vmem:[%s5938_s2] ss:$0 sm:$0xff] }
 0x1e8   :  { %v3638_v17 = vpop.f32.mrb[133].mxu1  ;;  %v4019_v6 = vpop.eup %4018  ;;  %v2462_v61 = vmul.f32 0.25, %v2413_v0  ;;  %v1809_v58 = vadd.f32 %v4017_v11, %v5137_v9 }
 0x1e9   :  { %4028 = vtanh.f32 %v1588_v19 }
 0x1ea   :  { %2512 = vst.msk [vmem:[%s5939_s3 + $0x68] sm:$0xff] %vm2498_vm5, %v2462_v61  ;;  %v2414_v63 = vadd.f32 %v4019_v6, %v1809_v58  ;;  %4030 = vtanh.f32 %v2193_v46  ;;  %v1592_v13 = vpop.f32.mrb[134].mxu0  ;;  %v2197_v24 = vpop.f32.mrb[134].mxu1 }
 0x1eb   :  { %v4021_v56 = vpop.eup %4020  ;;  %v1593_v23 = vadd.f32 %v5698_v35, %v1592_v13  ;;  %v3486_v26 = vpop.f32.mrb[135].mxu0  ;;  %v2198_v9 = vadd.f32 %v5698_v35, %v2197_v24 }
 0x1ec   :  { %v3641_v40 = vpop.f32.mrb[135].mxu1  ;;  %v4023_v31 = vpop.eup %4022  ;;  %v2463_v30 = vmul.f32 0.25, %v2414_v63  ;;  %v1810_v48 = vadd.f32 %v4021_v56, %v5153_v22 }
 0x1ed   :  { %4032 = vtanh.f32 %v1593_v23 }
 0x1ee   :  { %2513 = vst.msk [vmem:[%s5939_s3 + $0x70] sm:$0xff] %vm2498_vm5, %v2463_v30  ;;  %v2415_v8 = vadd.f32 %v4023_v31, %v1810_v48  ;;  %4034 = vtanh.f32 %v2198_v9  ;;  %v1597_v16 = vpop.f32.mrb[136].mxu0  ;;  %v2202_v20 = vpop.f32.mrb[136].mxu1 }
 0x1ef   :  { %v4025_v52 = vpop.eup %4024  ;;  %v1598_v33 = vadd.f32 %v5698_v35, %v1597_v16  ;;  %v3489_v4 = vpop.f32.mrb[137].mxu0  ;;  %v2203_v45 = vadd.f32 %v5698_v35, %v2202_v20 }
 0x1f0   :  { %v3644_v59 = vpop.f32.mrb[137].mxu1  ;;  %v4027_v54 = vpop.eup %4026  ;;  %v2464_v44 = vmul.f32 0.25, %v2415_v8  ;;  %v1811_v22 = vadd.f32 %v4025_v52, %v5169_v36 }
 0x1f1   :  { %4036 = vtanh.f32 %v1598_v33 }
 0x1f2   :  { %2514 = vst.msk [vmem:[%s5939_s3 + $0x78] sm:$0xff] %vm2498_vm5, %v2464_v44  ;;  %v2416_v0 = vadd.f32 %v4027_v54, %v1811_v22  ;;  %4038 = vtanh.f32 %v2203_v45  ;;  %v1602_v43 = vpop.f32.mrb[138].mxu0  ;;  %v2207_v37 = vpop.f32.mrb[138].mxu1 }
 0x1f3   :  { %v4029_v11 = vpop.eup %4028  ;;  %v1603_v19 = vadd.f32 %v5698_v35, %v1602_v43  ;;  %v3492_v60 = vpop.f32.mrb[139].mxu0  ;;  %v2208_v46 = vadd.f32 %v5698_v35, %v2207_v37 }
 0x1f4   :  { %v3647_v17 = vpop.f32.mrb[139].mxu1  ;;  %v4031_v6 = vpop.eup %4030  ;;  %v2465_v61 = vmul.f32 0.25, %v2416_v0  ;;  %v1812_v36 = vadd.f32 %v4029_v11, %v5185_v51 }
 0x1f5   :  { %4040 = vtanh.f32 %v1603_v19 }
 0x1f6   :  { %2515 = vst.msk [vmem:[%s5939_s3 + $0x80] sm:$0xff] %vm2498_vm5, %v2465_v61  ;;  %v2417_v58 = vadd.f32 %v4031_v6, %v1812_v36  ;;  %4042 = vtanh.f32 %v2208_v46  ;;  %v1607_v63 = vpop.f32.mrb[140].mxu0  ;;  %v2212_v13 = vpop.f32.mrb[140].mxu1 }
 0x1f7   :  { %v4033_v24 = vpop.eup %4032  ;;  %v1608_v56 = vadd.f32 %v5698_v35, %v1607_v63  ;;  %v3495_v23 = vpop.f32.mrb[141].mxu0  ;;  %v2213_v26 = vadd.f32 %v5698_v35, %v2212_v13 }
 0x1f8   :  { %v3650_v9 = vpop.f32.mrb[141].mxu1  ;;  %v4035_v40 = vpop.eup %4034  ;;  %v2466_v31 = vmul.f32 0.25, %v2417_v58  ;;  %v1813_v51 = vadd.f32 %v4033_v24, %v5201_v2 }
 0x1f9   :  { %4044 = vtanh.f32 %v1608_v56 }
 0x1fa   :  { %2516 = vst.msk [vmem:[%s5939_s3 + $0x88] sm:$0xff] %vm2498_vm5, %v2466_v31  ;;  %v2418_v30 = vadd.f32 %v4035_v40, %v1813_v51  ;;  %4046 = vtanh.f32 %v2213_v26  ;;  %v1612_v48 = vpop.f32.mrb[142].mxu0  ;;  %v2217_v8 = vpop.f32.mrb[142].mxu1 }
 0x1fb   :  { %v4037_v16 = vpop.eup %4036  ;;  %v1613_v20 = vadd.f32 %v5698_v35, %v1612_v48  ;;  %v3498_v52 = vpop.f32.mrb[143].mxu0  ;;  %v2218_v33 = vadd.f32 %v5698_v35, %v2217_v8 }
 0x1fc   :  { %v3653_v4 = vpop.f32.mrb[143].mxu1  ;;  %v4039_v45 = vpop.eup %4038  ;;  %v2467_v59 = vmul.f32 0.25, %v2418_v30  ;;  %v1814_v2 = vadd.f32 %v4037_v16, %v5217_v18 }
 0x1fd   :  { %4048 = vtanh.f32 %v1613_v20 }
 0x1fe   :  { %2517 = vst.msk [vmem:[%s5939_s3 + $0x90] sm:$0xff] %vm2498_vm5, %v2467_v59  ;;  %v2419_v54 = vadd.f32 %v4039_v45, %v1814_v2  ;;  %4050 = vtanh.f32 %v2218_v33  ;;  %v1617_v44 = vpop.f32.mrb[144].mxu0  ;;  %v2222_v22 = vpop.f32.mrb[144].mxu1 }
 0x1ff   :  { %v4041_v0 = vpop.eup %4040  ;;  %v1618_v43 = vadd.f32 %v5698_v35, %v1617_v44  ;;  %v3501_v37 = vpop.f32.mrb[145].mxu0  ;;  %v2223_v11 = vadd.f32 %v5698_v35, %v2222_v22 }
 0x200   :  { %v3656_v19 = vpop.f32.mrb[145].mxu1  ;;  %v4043_v60 = vpop.eup %4042  ;;  %v2468_v46 = vmul.f32 0.25, %v2419_v54  ;;  %v1815_v18 = vadd.f32 %v4041_v0, %v5233_v34 }
 0x201   :  { %4052 = vtanh.f32 %v1618_v43 }
 0x202   :  { %2518 = vst.msk [vmem:[%s5939_s3 + $0x98] sm:$0xff] %vm2498_vm5, %v2468_v46  ;;  %v2420_v17 = vadd.f32 %v4043_v60, %v1815_v18  ;;  %4054 = vtanh.f32 %v2223_v11  ;;  %v1622_v6 = vpop.f32.mrb[146].mxu0  ;;  %v2227_v61 = vpop.f32.mrb[146].mxu1 }
 0x203   :  { %v4045_v36 = vpop.eup %4044  ;;  %v1623_v58 = vadd.f32 %v5698_v35, %v1622_v6  ;;  %v3504_v63 = vpop.f32.mrb[147].mxu0  ;;  %v2228_v13 = vadd.f32 %v5698_v35, %v2227_v61 }
 0x204   :  { %v3659_v24 = vpop.f32.mrb[147].mxu1  ;;  %v4047_v56 = vpop.eup %4046  ;;  %v2469_v23 = vmul.f32 0.25, %v2420_v17  ;;  %v1816_v34 = vadd.f32 %v4045_v36, %v5249_v50 }
 0x205   :  { %4056 = vtanh.f32 %v1623_v58 }
 0x206   :  { %2519 = vst.msk [vmem:[%s5939_s3 + $0xa0] sm:$0xff] %vm2498_vm5, %v2469_v23  ;;  %v2421_v26 = vadd.f32 %v4047_v56, %v1816_v34  ;;  %4058 = vtanh.f32 %v2228_v13  ;;  %v1627_v9 = vpop.f32.mrb[148].mxu0  ;;  %v2232_v40 = vpop.f32.mrb[148].mxu1 }
 0x207   :  { %v4049_v31 = vpop.eup %4048  ;;  %v1628_v51 = vadd.f32 %v5698_v35, %v1627_v9  ;;  %v3507_v30 = vpop.f32.mrb[149].mxu0  ;;  %v2233_v48 = vadd.f32 %v5698_v35, %v2232_v40 }
 0x208   :  { %v3662_v8 = vpop.f32.mrb[149].mxu1  ;;  %v4051_v16 = vpop.eup %4050  ;;  %v2470_v20 = vmul.f32 0.25, %v2421_v26  ;;  %v1817_v50 = vadd.f32 %v4049_v31, %v5265_v3 }
 0x209   :  { %4060 = vtanh.f32 %v1628_v51 }
 0x20a   :  { %2520 = vst.msk [vmem:[%s5939_s3 + $0xa8] sm:$0xff] %vm2498_vm5, %v2470_v20  ;;  %v2422_v52 = vadd.f32 %v4051_v16, %v1817_v50  ;;  %4062 = vtanh.f32 %v2233_v48  ;;  %v1632_v33 = vpop.f32.mrb[150].mxu0  ;;  %v2237_v4 = vpop.f32.mrb[150].mxu1 }
 0x20b   :  { %v4053_v45 = vpop.eup %4052  ;;  %v1633_v59 = vadd.f32 %v5698_v35, %v1632_v33  ;;  %v3510_v2 = vpop.f32.mrb[151].mxu0  ;;  %v2238_v54 = vadd.f32 %v5698_v35, %v2237_v4 }
 0x20c   :  { %v3665_v44 = vpop.f32.mrb[151].mxu1  ;;  %v4055_v22 = vpop.eup %4054  ;;  %v2471_v0 = vmul.f32 0.25, %v2422_v52  ;;  %v1818_v3 = vadd.f32 %v4053_v45, %v5281_v21 }
 0x20d   :  { %4064 = vtanh.f32 %v1633_v59 }
 0x20e   :  { %2521 = vst.msk [vmem:[%s5939_s3 + $0xb0] sm:$0xff] %vm2498_vm5, %v2471_v0  ;;  %v2423_v43 = vadd.f32 %v4055_v22, %v1818_v3  ;;  %4066 = vtanh.f32 %v2238_v54  ;;  %v1637_v37 = vpop.f32.mrb[152].mxu0  ;;  %v2242_v11 = vpop.f32.mrb[152].mxu1 }
 0x20f   :  { %v4057_v19 = vpop.eup %4056  ;;  %v1638_v60 = vadd.f32 %v5698_v35, %v1637_v37  ;;  %v3513_v46 = vpop.f32.mrb[153].mxu0  ;;  %v2243_v18 = vadd.f32 %v5698_v35, %v2242_v11 }
 0x210   :  { %v3668_v17 = vpop.f32.mrb[153].mxu1  ;;  %v4059_v6 = vpop.eup %4058  ;;  %v2472_v61 = vmul.f32 0.25, %v2423_v43  ;;  %v1819_v21 = vadd.f32 %v4057_v19, %v5297_v39 }
 0x211   :  { %4068 = vtanh.f32 %v1638_v60 }
 0x212   :  { %2522 = vst.msk [vmem:[%s5939_s3 + $0xb8] sm:$0xff] %vm2498_vm5, %v2472_v61  ;;  %v2424_v36 = vadd.f32 %v4059_v6, %v1819_v21  ;;  %4070 = vtanh.f32 %v2243_v18  ;;  %v1642_v58 = vpop.f32.mrb[154].mxu0  ;;  %v2247_v63 = vpop.f32.mrb[154].mxu1 }
 0x213   :  { %v4061_v13 = vpop.eup %4060  ;;  %v1643_v24 = vadd.f32 %v5698_v35, %v1642_v58  ;;  %v3516_v56 = vpop.f32.mrb[155].mxu0  ;;  %v2248_v23 = vadd.f32 %v5698_v35, %v2247_v63 }
 0x214   :  { %v3671_v34 = vpop.f32.mrb[155].mxu1  ;;  %v4063_v26 = vpop.eup %4062  ;;  %v2473_v9 = vmul.f32 0.25, %v2424_v36  ;;  %v1820_v39 = vadd.f32 %v4061_v13, %v5313_v57 }
 0x215   :  { %4072 = vtanh.f32 %v1643_v24 }
 0x216   :  { %2523 = vst.msk [vmem:[%s5939_s3 + $0xc0] sm:$0xff] %vm2498_vm5, %v2473_v9  ;;  %v2425_v40 = vadd.f32 %v4063_v26, %v1820_v39  ;;  %4074 = vtanh.f32 %v2248_v23  ;;  %v1647_v31 = vpop.f32.mrb[156].mxu0  ;;  %v2252_v51 = vpop.f32.mrb[156].mxu1 }
 0x217   :  { %v4065_v30 = vpop.eup %4064  ;;  %v1648_v48 = vadd.f32 %v5698_v35, %v1647_v31  ;;  %v3519_v8 = vpop.f32.mrb[157].mxu0  ;;  %v2253_v16 = vadd.f32 %v5698_v35, %v2252_v51 }
 0x218   :  { %v3674_v20 = vpop.f32.mrb[157].mxu1  ;;  %v4067_v50 = vpop.eup %4066  ;;  %v2474_v52 = vmul.f32 0.25, %v2425_v40  ;;  %v1821_v57 = vadd.f32 %v4065_v30, %v5329_v12 }
 0x219   :  { %4076 = vtanh.f32 %v1648_v48 }
 0x21a   :  { %2524 = vst.msk [vmem:[%s5939_s3 + $0xc8] sm:$0xff] %vm2498_vm5, %v2474_v52  ;;  %v2426_v33 = vadd.f32 %v4067_v50, %v1821_v57  ;;  %4078 = vtanh.f32 %v2253_v16  ;;  %v1652_v4 = vpop.f32.mrb[158].mxu0  ;;  %v2257_v45 = vpop.f32.mrb[158].mxu1 }
 0x21b   :  { %v4069_v59 = vpop.eup %4068  ;;  %v1653_v2 = vadd.f32 %v5698_v35, %v1652_v4  ;;  %v3522_v54 = vpop.f32.mrb[159].mxu0  ;;  %v2258_v44 = vadd.f32 %v5698_v35, %v2257_v45 }
 0x21c   :  { %v3677_v22 = vpop.f32.mrb[159].mxu1  ;;  %v4071_v0 = vpop.eup %4070  ;;  %v2475_v3 = vmul.f32 0.25, %v2426_v33  ;;  %v1822_v12 = vadd.f32 %v4069_v59, %v5345_v28 }
 0x21d   :  { %4080 = vtanh.f32 %v1653_v2 }
 0x21e   :  { %2525 = vst.msk [vmem:[%s5939_s3 + $0xd0] sm:$0xff] %vm2498_vm5, %v2475_v3  ;;  %v2427_v43 = vadd.f32 %v4071_v0, %v1822_v12  ;;  %4082 = vtanh.f32 %v2258_v44  ;;  %v1657_v37 = vpop.f32.mrb[160].mxu0  ;;  %v2262_v11 = vpop.f32.mrb[160].mxu1 }
 0x21f   :  { %v4073_v19 = vpop.eup %4072  ;;  %v1658_v60 = vadd.f32 %v5698_v35, %v1657_v37  ;;  %v3525_v46 = vpop.f32.mrb[161].mxu0  ;;  %v2263_v18 = vadd.f32 %v5698_v35, %v2262_v11 }
 0x220   :  { %v3680_v17 = vpop.f32.mrb[161].mxu1  ;;  %v4075_v6 = vpop.eup %4074  ;;  %v2476_v61 = vmul.f32 0.25, %v2427_v43  ;;  %v1823_v28 = vadd.f32 %v4073_v19, %v5366_v49 }
 0x221   :  { %4084 = vtanh.f32 %v1658_v60 }
 0x222   :  { %2526 = vst.msk [vmem:[%s5939_s3 + $0xd8] sm:$0xff] %vm2498_vm5, %v2476_v61  ;;  %v2428_v21 = vadd.f32 %v4075_v6, %v1823_v28  ;;  %4086 = vtanh.f32 %v2263_v18  ;;  %v1662_v36 = vpop.f32.mrb[162].mxu0  ;;  %v2267_v58 = vpop.f32.mrb[162].mxu1 }
 0x223   :  { %v4077_v63 = vpop.eup %4076  ;;  %v1663_v13 = vadd.f32 %v5698_v35, %v1662_v36  ;;  %v3528_v24 = vpop.f32.mrb[163].mxu0  ;;  %v2268_v56 = vadd.f32 %v5698_v35, %v2267_v58 }
 0x224   :  { %v3683_v23 = vpop.f32.mrb[163].mxu1  ;;  %v4079_v34 = vpop.eup %4078  ;;  %v2477_v26 = vmul.f32 0.25, %v2428_v21  ;;  %v1824_v49 = vadd.f32 %v4077_v63, %v5382_v7 }
 0x225   :  { %4088 = vtanh.f32 %v1663_v13 }
 0x226   :  { %2527 = vst.msk [vmem:[%s5939_s3 + $0xe0] sm:$0xff] %vm2498_vm5, %v2477_v26  ;;  %v2429_v9 = vadd.f32 %v4079_v34, %v1824_v49  ;;  %4090 = vtanh.f32 %v2268_v56  ;;  %v1667_v39 = vpop.f32.mrb[164].mxu0  ;;  %v2272_v40 = vpop.f32.mrb[164].mxu1 }
 0x227   :  { %v4081_v31 = vpop.eup %4080  ;;  %v1668_v51 = vadd.f32 %v5698_v35, %v1667_v39  ;;  %v3531_v30 = vpop.f32.mrb[165].mxu0  ;;  %v2273_v48 = vadd.f32 %v5698_v35, %v2272_v40 }
 0x228   :  { %v3686_v8 = vpop.f32.mrb[165].mxu1  ;;  %v4083_v16 = vpop.eup %4082  ;;  %v2478_v20 = vmul.f32 0.25, %v2429_v9  ;;  %v1825_v7 = vadd.f32 %v4081_v31, %v5398_v27 }
 0x229   :  { %4092 = vtanh.f32 %v1668_v51 }
 0x22a   :  { %2528 = vst.msk [vmem:[%s5939_s3 + $0xe8] sm:$0xff] %vm2498_vm5, %v2478_v20  ;;  %v2430_v50 = vadd.f32 %v4083_v16, %v1825_v7  ;;  %4094 = vtanh.f32 %v2273_v48  ;;  %v1672_v52 = vpop.f32.mrb[166].mxu0  ;;  %v2277_v57 = vpop.f32.mrb[166].mxu1 }
 0x22b   :  { %v4085_v33 = vpop.eup %4084  ;;  %v1673_v4 = vadd.f32 %v5698_v35, %v1672_v52  ;;  %v3534_v45 = vpop.f32.mrb[167].mxu0  ;;  %v2278_v59 = vadd.f32 %v5698_v35, %v2277_v57 }
 0x22c   :  { %v3689_v2 = vpop.f32.mrb[167].mxu1  ;;  %v4087_v54 = vpop.eup %4086  ;;  %v2479_v44 = vmul.f32 0.25, %v2430_v50  ;;  %v1826_v27 = vadd.f32 %v4085_v33, %v5414_v47 }
 0x22d   :  { %4096 = vtanh.f32 %v1673_v4 }
 0x22e   :  { %2529 = vst.msk [vmem:[%s5939_s3 + $0xf0] sm:$0xff] %vm2498_vm5, %v2479_v44  ;;  %v2431_v22 = vadd.f32 %v4087_v54, %v1826_v27  ;;  %4098 = vtanh.f32 %v2278_v59  ;;  %v1677_v0 = vpop.f32.mrb[168].mxu0  ;;  %v2282_v3 = vpop.f32.mrb[168].mxu1 }
 0x22f   :  { %v4089_v12 = vpop.eup %4088  ;;  %v1678_v43 = vadd.f32 %v5698_v35, %v1677_v0  ;;  %v3537_v37 = vpop.f32.mrb[169].mxu0  ;;  %v2283_v11 = vadd.f32 %v5698_v35, %v2282_v3 }
 0x230   :  { %v3692_v19 = vpop.f32.mrb[169].mxu1  ;;  %v4091_v60 = vpop.eup %4090  ;;  %v2480_v46 = vmul.f32 0.25, %v2431_v22  ;;  %v1827_v47 = vadd.f32 %v4089_v12, %v5430_v10 }
 0x231   :  { %4100 = vtanh.f32 %v1678_v43 }
 0x232   :  { %2530 = vst.msk [vmem:[%s5939_s3 + $0xf8] sm:$0xff] %vm2498_vm5, %v2480_v46  ;;  %v2432_v18 = vadd.f32 %v4091_v60, %v1827_v47  ;;  %4102 = vtanh.f32 %v2283_v11  ;;  %v1682_v17 = vpop.f32.mrb[170].mxu0  ;;  %v2287_v6 = vpop.f32.mrb[170].mxu1 }
 0x233   :  { %v4093_v61 = vpop.eup %4092  ;;  %v1683_v28 = vadd.f32 %v5698_v35, %v1682_v17  ;;  %v3540_v21 = vpop.f32.mrb[171].mxu0  ;;  %v2288_v36 = vadd.f32 %v5698_v35, %v2287_v6 }
 0x234   :  { %v3695_v58 = vpop.f32.mrb[171].mxu1  ;;  %v4095_v63 = vpop.eup %4094  ;;  %v2481_v13 = vmul.f32 0.25, %v2432_v18  ;;  %v1828_v10 = vadd.f32 %v4093_v61, %v5446_v29 }
 0x235   :  { %4104 = vtanh.f32 %v1683_v28 }
 0x236   :  { %2531 = vst.msk [vmem:[%s5939_s3 + $0x100] sm:$0xff] %vm2498_vm5, %v2481_v13  ;;  %v2433_v24 = vadd.f32 %v4095_v63, %v1828_v10  ;;  %4106 = vtanh.f32 %v2288_v36  ;;  %v1687_v56 = vpop.f32.mrb[172].mxu0  ;;  %v2292_v23 = vpop.f32.mrb[172].mxu1 }
 0x237   :  { %v4097_v34 = vpop.eup %4096  ;;  %v1688_v26 = vadd.f32 %v5698_v35, %v1687_v56  ;;  %v3543_v49 = vpop.f32.mrb[173].mxu0  ;;  %v2293_v9 = vadd.f32 %v5698_v35, %v2292_v23 }
 0x238   :  { %v3698_v39 = vpop.f32.mrb[173].mxu1  ;;  %v4099_v40 = vpop.eup %4098  ;;  %v2482_v31 = vmul.f32 0.25, %v2433_v24  ;;  %v1829_v29 = vadd.f32 %v4097_v34, %v5462_v55 }
 0x239   :  { %4108 = vtanh.f32 %v1688_v26 }
 0x23a   :  { %2532 = vst.msk [vmem:[%s5939_s3 + $0x108] sm:$0xff] %vm2498_vm5, %v2482_v31  ;;  %v2434_v51 = vadd.f32 %v4099_v40, %v1829_v29  ;;  %4110 = vtanh.f32 %v2293_v9  ;;  %v1692_v30 = vpop.f32.mrb[174].mxu0  ;;  %v2297_v48 = vpop.f32.mrb[174].mxu1 }
 0x23b   :  { %v4101_v8 = vpop.eup %4100  ;;  %v1693_v16 = vadd.f32 %v5698_v35, %v1692_v30  ;;  %v3546_v20 = vpop.f32.mrb[175].mxu0  ;;  %v2298_v7 = vadd.f32 %v5698_v35, %v2297_v48 }
 0x23c   :  { %v3701_v50 = vpop.f32.mrb[175].mxu1  ;;  %v4103_v52 = vpop.eup %4102  ;;  %v2483_v57 = vmul.f32 0.25, %v2434_v51  ;;  %v1830_v55 = vadd.f32 %v4101_v8, %v5478_v15 }
 0x23d   :  { %4112 = vtanh.f32 %v1693_v16 }
 0x23e   :  { %2533 = vst.msk [vmem:[%s5939_s3 + $0x110] sm:$0xff] %vm2498_vm5, %v2483_v57  ;;  %v2435_v33 = vadd.f32 %v4103_v52, %v1830_v55  ;;  %4114 = vtanh.f32 %v2298_v7  ;;  %v1697_v4 = vpop.f32.mrb[176].mxu0  ;;  %v2302_v45 = vpop.f32.mrb[176].mxu1 }
 0x23f   :  { %v4105_v59 = vpop.eup %4104  ;;  %v1698_v2 = vadd.f32 %v5698_v35, %v1697_v4  ;;  %v3549_v54 = vpop.f32.mrb[177].mxu0  ;;  %v2303_v44 = vadd.f32 %v5698_v35, %v2302_v45 }
 0x240   :  { %v3704_v27 = vpop.f32.mrb[177].mxu1  ;;  %v4107_v22 = vpop.eup %4106  ;;  %v2484_v0 = vmul.f32 0.25, %v2435_v33  ;;  %v1831_v15 = vadd.f32 %v4105_v59, %v5494_v41 }
 0x241   :  { %4116 = vtanh.f32 %v1698_v2 }
 0x242   :  { %2534 = vst.msk [vmem:[%s5939_s3 + $0x118] sm:$0xff] %vm2498_vm5, %v2484_v0  ;;  %v2436_v3 = vadd.f32 %v4107_v22, %v1831_v15  ;;  %4118 = vtanh.f32 %v2303_v44  ;;  %v1702_v12 = vpop.f32.mrb[178].mxu0  ;;  %v2307_v43 = vpop.f32.mrb[178].mxu1 }
 0x243   :  { %v4109_v37 = vpop.eup %4108  ;;  %v1703_v11 = vadd.f32 %v5698_v35, %v1702_v12  ;;  %v3552_v19 = vpop.f32.mrb[179].mxu0  ;;  %v2308_v60 = vadd.f32 %v5698_v35, %v2307_v43 }
 0x244   :  { %v3707_v46 = vpop.f32.mrb[179].mxu1  ;;  %v4111_v47 = vpop.eup %4110  ;;  %v2485_v18 = vmul.f32 0.25, %v2436_v3  ;;  %v1832_v41 = vadd.f32 %v4109_v37, %v5510_v1 }
 0x245   :  { %4120 = vtanh.f32 %v1703_v11 }
 0x246   :  { %2535 = vst.msk [vmem:[%s5939_s3 + $0x120] sm:$0xff] %vm2498_vm5, %v2485_v18  ;;  %v2437_v17 = vadd.f32 %v4111_v47, %v1832_v41  ;;  %4122 = vtanh.f32 %v2308_v60  ;;  %v1707_v6 = vpop.f32.mrb[180].mxu0  ;;  %v2312_v61 = vpop.f32.mrb[180].mxu1 }
 0x247   :  { %v4113_v28 = vpop.eup %4112  ;;  %v1708_v21 = vadd.f32 %v5698_v35, %v1707_v6  ;;  %v3555_v36 = vpop.f32.mrb[181].mxu0  ;;  %v2313_v58 = vadd.f32 %v5698_v35, %v2312_v61 }
 0x248   :  { %v3710_v63 = vpop.f32.mrb[181].mxu1  ;;  %v4115_v13 = vpop.eup %4114  ;;  %v2486_v10 = vmul.f32 0.25, %v2437_v17  ;;  %v1833_v1 = vadd.f32 %v4113_v28, %v5526_v32 }
 0x249   :  { %4124 = vtanh.f32 %v1708_v21 }
 0x24a   :  { %2536 = vst.msk [vmem:[%s5939_s3 + $0x128] sm:$0xff] %vm2498_vm5, %v2486_v10  ;;  %v2438_v24 = vadd.f32 %v4115_v13, %v1833_v1  ;;  %4126 = vtanh.f32 %v2313_v58  ;;  %v1712_v56 = vpop.f32.mrb[182].mxu0  ;;  %v2317_v23 = vpop.f32.mrb[182].mxu1 }
 0x24b   :  { %v4117_v34 = vpop.eup %4116  ;;  %v1713_v26 = vadd.f32 %v5698_v35, %v1712_v56  ;;  %v3558_v49 = vpop.f32.mrb[183].mxu0  ;;  %v2318_v9 = vadd.f32 %v5698_v35, %v2317_v23 }
 0x24c   :  { %v3713_v39 = vpop.f32.mrb[183].mxu1  ;;  %v4119_v40 = vpop.eup %4118  ;;  %v2487_v31 = vmul.f32 0.25, %v2438_v24  ;;  %v1834_v32 = vadd.f32 %v4117_v34, %v5542_v62 }
 0x24d   :  { %4128 = vtanh.f32 %v1713_v26 }
 0x24e   :  { %2537 = vst.msk [vmem:[%s5939_s3 + $0x130] sm:$0xff] %vm2498_vm5, %v2487_v31  ;;  %v2439_v29 = vadd.f32 %v4119_v40, %v1834_v32  ;;  %4130 = vtanh.f32 %v2318_v9  ;;  %v1717_v51 = vpop.f32.mrb[184].mxu0  ;;  %v2322_v30 = vpop.f32.mrb[184].mxu1 }
 0x24f   :  { %v4121_v48 = vpop.eup %4120  ;;  %v1718_v8 = vadd.f32 %v5698_v35, %v1717_v51  ;;  %v3561_v16 = vpop.f32.mrb[185].mxu0  ;;  %v2323_v20 = vadd.f32 %v5698_v35, %v2322_v30 }
 0x250   :  { %v3716_v7 = vpop.f32.mrb[185].mxu1  ;;  %v4123_v50 = vpop.eup %4122  ;;  %v2488_v52 = vmul.f32 0.25, %v2439_v29  ;;  %v1835_v62 = vadd.f32 %v4121_v48, %v5558_v25 }
 0x251   :  { %4132 = vtanh.f32 %v1718_v8 }
 0x252   :  { %2538 = vst.msk [vmem:[%s5939_s3 + $0x138] sm:$0xff] %vm2498_vm5, %v2488_v52  ;;  %v2440_v57 = vadd.f32 %v4123_v50, %v1835_v62  ;;  %4134 = vtanh.f32 %v2323_v20  ;;  %v1722_v55 = vpop.f32.mrb[186].mxu0  ;;  %v2327_v33 = vpop.f32.mrb[186].mxu1  ;;  %v5945_v50 = vld [vmem:[#allocation2_spill] sm:$0xff] }
 0x253   :  { %v4125_v4 = vpop.eup %4124  ;;  %v1723_v45 = vadd.f32 %v5698_v35, %v1722_v55  ;;  %v3564_v59 = vpop.f32.mrb[187].mxu0  ;;  %v2328_v2 = vadd.f32 %v5698_v35, %v2327_v33  ;;  %v5946_v55 = vld [vmem:[#allocation3_spill] sm:$0xff] }
 0x254   :  { %v3719_v54 = vpop.f32.mrb[187].mxu1  ;;  %v4127_v44 = vpop.eup %4126  ;;  %v2489_v27 = vmul.f32 0.25, %v2440_v57  ;;  %v1836_v25 = vadd.f32 %v4125_v4, %v5564_v53 }
 0x255   :  { %4136 = vtanh.f32 %v1723_v45  ;;  %v5947_v54 = vld [vmem:[#allocation4_spill] sm:$0xff] }
 0x256   :  { %2539 = vst.msk [vmem:[%s5939_s3 + $0x140] sm:$0xff] %vm2498_vm5, %v2489_v27  ;;  %v2441_v22 = vadd.f32 %v4127_v44, %v1836_v25  ;;  %4138 = vtanh.f32 %v2328_v2  ;;  %v1727_v0 = vpop.f32.mrb[188].mxu0  ;;  %v2332_v15 = vpop.f32.mrb[188].mxu1 }
 0x257   :  { %v4129_v3 = vpop.eup %4128  ;;  %v1728_v12 = vadd.f32 %v5698_v35, %v1727_v0  ;;  %v3567_v43 = vpop.f32.mrb[189].mxu0  ;;  %v2333_v37 = vadd.f32 %v5698_v35, %v2332_v15 }
 0x258   :  { %v3722_v11 = vpop.f32.mrb[189].mxu1  ;;  %v4131_v19 = vpop.eup %4130  ;;  %v2490_v60 = vmul.f32 0.25, %v2441_v22  ;;  %v1837_v53 = vadd.f32 %v4129_v3, %v5568_v14 }
 0x259   :  { %4140 = vtanh.f32 %v1728_v12 }
 0x25a   :  { %2540 = vst.msk [vmem:[%s5939_s3 + $0x148] sm:$0xff] %vm2498_vm5, %v2490_v60  ;;  %v2442_v46 = vadd.f32 %v4131_v19, %v1837_v53  ;;  %4142 = vtanh.f32 %v2333_v37  ;;  %v1732_v47 = vpop.f32.mrb[190].mxu0  ;;  %v2337_v18 = vpop.f32.mrb[190].mxu1 }
 0x25b   :  { %v4133_v41 = vpop.eup %4132  ;;  %v1733_v17 = vadd.f32 %v5698_v35, %v1732_v47  ;;  %v3570_v6 = vpop.f32.mrb[191].mxu0  ;;  %v2338_v61 = vadd.f32 %v5698_v35, %v2337_v18 }
 0x25c   :  { %v3725_v28 = vpop.f32.mrb[191].mxu1  ;;  %v4135_v21 = vpop.eup %4134  ;;  %v2491_v36 = vmul.f32 0.25, %v2442_v46  ;;  %v1838_v14 = vadd.f32 %v4133_v41, %v5572_v42 }
 0x25d   :  { %4144 = vtanh.f32 %v1733_v17 }
 0x25e   :  { %2541 = vst.msk [vmem:[%s5939_s3 + $0x150] sm:$0xff] %vm2498_vm5, %v2491_v36  ;;  %v2443_v58 = vadd.f32 %v4135_v21, %v1838_v14  ;;  %4146 = vtanh.f32 %v2338_v61  ;;  %v1737_v63 = vpop.f32.mrb[192].mxu0  ;;  %v2342_v13 = vpop.f32.mrb[192].mxu1 }
 0x25f   :  { %v4137_v10 = vpop.eup %4136  ;;  %v1738_v1 = vadd.f32 %v5698_v35, %v1737_v63  ;;  %v3573_v24 = vpop.f32.mrb[193].mxu0  ;;  %v2343_v56 = vadd.f32 %v5698_v35, %v2342_v13 }
 0x260   :  { %v3728_v23 = vpop.f32.mrb[193].mxu1  ;;  %v4139_v34 = vpop.eup %4138  ;;  %v2492_v26 = vmul.f32 0.25, %v2443_v58  ;;  %v1839_v42 = vadd.f32 %v4137_v10, %v5576_v5 }
 0x261   :  { %4148 = vtanh.f32 %v1738_v1 }
 0x262   :  { %2542 = vst.msk [vmem:[%s5939_s3 + $0x158] sm:$0xff] %vm2498_vm5, %v2492_v26  ;;  %v2444_v49 = vadd.f32 %v4139_v34, %v1839_v42  ;;  %4150 = vtanh.f32 %v2343_v56  ;;  %v1742_v9 = vpop.f32.mrb[194].mxu0  ;;  %v2347_v39 = vpop.f32.mrb[194].mxu1 }
 0x263   :  { %v4141_v40 = vpop.eup %4140  ;;  %v1743_v31 = vadd.f32 %v5698_v35, %v1742_v9  ;;  %v3576_v32 = vpop.f32.mrb[195].mxu0  ;;  %v2348_v29 = vadd.f32 %v5698_v35, %v2347_v39 }
 0x264   :  { %v3731_v51 = vpop.f32.mrb[195].mxu1  ;;  %v4143_v30 = vpop.eup %4142  ;;  %v2493_v48 = vmul.f32 0.25, %v2444_v49  ;;  %v1840_v5 = vadd.f32 %v4141_v40, %v5580_v38 }
 0x265   :  { %4152 = vtanh.f32 %v1743_v31 }
 0x266   :  { %2543 = vst.msk [vmem:[%s5939_s3 + $0x160] sm:$0xff] %vm2498_vm5, %v2493_v48  ;;  %v2445_v8 = vadd.f32 %v4143_v30, %v1840_v5  ;;  %4154 = vtanh.f32 %v2348_v29 }
 0x267   :  { %v4145_v16 = vpop.eup %4144 }
 0x268   :  { %v4147_v20 = vpop.eup %4146  ;;  %v2494_v7 = vmul.f32 0.25, %v2445_v8  ;;  %v1841_v52 = vadd.f32 %v4145_v16, %v5945_v50 }
 0x26a   :  { %2544 = vst.msk [vmem:[%s5939_s3 + $0x168] sm:$0xff] %vm2498_vm5, %v2494_v7  ;;  %v2446_v35 = vadd.f32 %v4147_v20, %v1841_v52 }
 0x26b   :  { %v4149_v38 = vpop.eup %4148 }
 0x26c   :  { %v4151_v62 = vpop.eup %4150  ;;  %v2495_v57 = vmul.f32 0.25, %v2446_v35  ;;  %v1842_v33 = vadd.f32 %v4149_v38, %v5946_v55 }
 0x26e   :  { %2545 = vst.msk [vmem:[%s5939_s3 + $0x170] sm:$0xff] %vm2498_vm5, %v2495_v57  ;;  %v2447_v4 = vadd.f32 %v4151_v62, %v1842_v33 }
 0x26f   :  { %v4153_v45 = vpop.eup %4152 }
 0x270   :  { %v4155_v59 = vpop.eup %4154  ;;  %v2496_v2 = vmul.f32 0.25, %v2447_v4  ;;  %v1843_v44 = vadd.f32 %v4153_v45, %v5947_v54 }
 0x272   :  { %2546 = vst.msk [vmem:[%s5939_s3 + $0x178] sm:$0xff] %vm2498_vm5, %v2496_v2  ;;  %v2448_v27 = vadd.f32 %v4155_v59, %v1843_v44 }
 0x274   :  { %v2497_v25 = vmul.f32 0.25, %v2448_v27 }
 0x276   :  { %2547 = vst.msk [vmem:[%s5939_s3 + $0x180] sm:$0xff] %vm2498_vm5, %v2497_v25 }

// kernel: lenet5_forward.4
= control target key start
LH: loop header
LB: loop body
LE: loop exit
PB: predicated region body
PF: predicated region fallthrough
CT: control target
= control target key end

     0   :  { %v926_v0 = vmov 0.0|0.0   ;;  %vm54_vm0 = vcmask 179200   ;;  %v927_v30 = vmov 0.0   ;;  %vm76_vm1 = vcmask 1045504   ;;  %s1386_s1 = inlined_call_operand.vmem [shape: f32[150,16], index: 1, kind: input, shape index: {}]   ;;  %s1387_s0 = inlined_call_operand.vmem [shape: f32[4,50,150], index: 0, kind: input, shape index: {}]   ;;  %s1388_s2 = inlined_call_operand.vmem [shape: f32[1,16], index: 2, kind: input, shape index: {}]   ;;  %s1389_s3 = inlined_call_operand.vmem [shape: f32[50,16], index: 3, kind: output, shape index: {}]  }
   0x1   :  { %746 = vmatprep.subr.bf16.mxu0 %v926_v0  ;;  %v14_v1 = vld [vmem:[%s1386_s1] sm:$0xff]  ;;  %v15_v2 = vld [vmem:[%s1386_s1 + $0x8] sm:$0xff]  ;;  %773 = vmatprep.subr.bf16.mxu1 %v926_v0  ;;  %v16_v3 = vld [vmem:[%s1386_s1 + $0x10] sm:$0xff]  ;;  %vm658_vm2 = vcmask 130048   ;;  %vm665_vm3 = vcmask 123904  }
   0x2   :  { %v959_v4 = vpack.c.bf16 %v15_v2, %v14_v1  ;;  %v17_v5 = vld [vmem:[%s1386_s1 + $0x18] sm:$0xff]  ;;  %v18_v7 = vld [vmem:[%s1386_s1 + $0x20] sm:$0xff]  ;;  %v19_v8 = vld [vmem:[%s1386_s1 + $0x28] sm:$0xff] }
   0x3   :  { %v966_v6 = vpack.c.bf16 %v17_v5, %v16_v3  ;;  %v35_v9 = vld [vmem:[%s1387_s0 + $0x8] sm:$0xff]  ;;  %v981_v10 = vpack.c.bf16 %v19_v8, %v18_v7  ;;  %v681_v11 = vld [vmem:[%s1387_s0 + $0x78] sm:$0xff]  ;;  %v20_v12 = vld [vmem:[%s1386_s1 + $0x30] sm:$0xff] }
   0x4   :  { %748 = vmatpush1.bf16.msra.mxu0 %v959_v4  ;;  %775 = vmatpush1.bf16.msra.mxu1 %v959_v4  ;;  %v21_v13 = vld [vmem:[%s1386_s1 + $0x38] sm:$0xff]  ;;  %v22_v15 = vld [vmem:[%s1386_s1 + $0x40] sm:$0xff]  ;;  %v23_v16 = vld [vmem:[%s1386_s1 + $0x48] sm:$0xff] }
   0x5   :  { %749 = vmatprep.subr.bf16.mxu0 %v926_v0  ;;  %776 = vmatprep.subr.bf16.mxu1 %v926_v0  ;;  %v998_v14 = vpack.c.bf16 %v21_v13, %v20_v12  ;;  %v1010_v17 = vpack.c.bf16 %v23_v16, %v22_v15  ;;  %v24_v18 = vld [vmem:[%s1386_s1 + $0x50] sm:$0xff]  ;;  %v25_v19 = vld [vmem:[%s1386_s1 + $0x58] sm:$0xff]  ;;  %v26_v21 = vld [vmem:[%s1386_s1 + $0x60] sm:$0xff] }
   0x6   :  { %673 = vmatprep.mubr.msk.f32.mxu0 %vm54_vm0, %v35_v9  ;;  %695 = vmatprep.mubr.msk.f32.mxu1 %vm54_vm0, %v681_v11  ;;  %v1022_v20 = vpack.c.bf16 %v25_v19, %v24_v18  ;;  %v27_v22 = vld [vmem:[%s1386_s1 + $0x68] sm:$0xff]  ;;  %v28_v24 = vld [vmem:[%s1386_s1 + $0x70] sm:$0xff]  ;;  %v29_v25 = vld [vmem:[%s1386_s1 + $0x78] sm:$0xff] }
   0x7   :  { %v1034_v23 = vpack.c.bf16 %v27_v22, %v26_v21  ;;  %v1046_v26 = vpack.c.bf16 %v29_v25, %v28_v24  ;;  %v30_v27 = vld [vmem:[%s1386_s1 + $0x80] sm:$0xff]  ;;  %v31_v28 = vld [vmem:[%s1386_s1 + $0x88] sm:$0xff]  ;;  %v1068_v31 = vld [vmem:[%s1386_s1 + $0x90] sm:$0x3f] }
   0x8   :  { %751 = vmatpush1.bf16.msra.mxu0 %v966_v6  ;;  %778 = vmatpush1.bf16.msra.mxu1 %v966_v6  ;;  %v1058_v29 = vpack.c.bf16 %v31_v28, %v30_v27  ;;  %v34_v32 = vld [vmem:[%s1387_s0] sm:$0xff]  ;;  %v680_v33 = vld [vmem:[%s1387_s0 + $0x70] sm:$0xff]  ;;  %v37_v34 = vld [vmem:[%s1387_s0 + $0x18] sm:$0xff] }
   0x9   :  { %752 = vmatprep.subr.bf16.mxu0 %v926_v0  ;;  %779 = vmatprep.subr.bf16.mxu1 %v926_v0  ;;  %v36_v35 = vld [vmem:[%s1387_s0 + $0x10] sm:$0xff]  ;;  %v683_v36 = vld [vmem:[%s1387_s0 + $0x88] sm:$0xff]  ;;  %v682_v37 = vld [vmem:[%s1387_s0 + $0x80] sm:$0xff] }
   0xa   :  { %v39_v38 = vld [vmem:[%s1387_s0 + $0x28] sm:$0xff]  ;;  %v38_v39 = vld [vmem:[%s1387_s0 + $0x20] sm:$0xff]  ;;  %v685_v40 = vld [vmem:[%s1387_s0 + $0x98] sm:$0xff] }
   0xb   :  { %v684_v41 = vld [vmem:[%s1387_s0 + $0x90] sm:$0xff]  ;;  %v41_v42 = vld [vmem:[%s1387_s0 + $0x38] sm:$0xff]  ;;  %v687_v44 = vld [vmem:[%s1387_s0 + $0xa8] sm:$0xff] }
   0xc   :  { %754 = vmatpush1.bf16.msra.mxu0 %v981_v10  ;;  %781 = vmatpush1.bf16.msra.mxu1 %v981_v10  ;;  %v40_v43 = vld [vmem:[%s1387_s0 + $0x30] sm:$0xff]  ;;  %v686_v45 = vld [vmem:[%s1387_s0 + $0xa0] sm:$0xff]  ;;  %v43_v46 = vld [vmem:[%s1387_s0 + $0x48] sm:$0xff] }
   0xd   :  { %755 = vmatprep.subr.bf16.mxu0 %v926_v0  ;;  %782 = vmatprep.subr.bf16.mxu1 %v926_v0  ;;  %v42_v47 = vld [vmem:[%s1387_s0 + $0x40] sm:$0xff]  ;;  %v689_v48 = vld [vmem:[%s1387_s0 + $0xb8] sm:$0xff]  ;;  %v688_v49 = vld [vmem:[%s1387_s0 + $0xb0] sm:$0xff] }
   0xe   :  { %v45_v50 = vld [vmem:[%s1387_s0 + $0x58] sm:$0xff]  ;;  %v44_v51 = vld [vmem:[%s1387_s0 + $0x50] sm:$0xff]  ;;  %v691_v52 = vld [vmem:[%s1387_s0 + $0xc8] sm:$0xff] }
   0xf   :  { %v690_v53 = vld [vmem:[%s1387_s0 + $0xc0] sm:$0xff]  ;;  %v47_v54 = vld [vmem:[%s1387_s0 + $0x68] sm:$0x3]  ;;  %v693_v56 = vld [vmem:[%s1387_s0 + $0xd8] sm:$0x3] }
  0x10   :  { %757 = vmatpush1.bf16.msra.mxu0 %v998_v14  ;;  %784 = vmatpush1.bf16.msra.mxu1 %v998_v14  ;;  %v46_v55 = vld [vmem:[%s1387_s0 + $0x60] sm:$0x3]  ;;  %v692_v57 = vld [vmem:[%s1387_s0 + $0xd0] sm:$0x3]  ;;  %v703_v58 = vld [vmem:[%s1387_s0 + $0xe8] sm:$0xff] }
  0x11   :  { %758 = vmatprep.subr.bf16.mxu0 %v926_v0  ;;  %785 = vmatprep.subr.bf16.mxu1 %v926_v0  ;;  %v725_v59 = vld [vmem:[%s1387_s0 + $0x158] sm:$0xff]  ;;  %v702_v60 = vld [vmem:[%s1387_s0 + $0xe0] sm:$0xff]  ;;  %v724_v62 = vld [vmem:[%s1387_s0 + $0x150] sm:$0xff] }
  0x12   :  { %v705_v61 = vld [vmem:[%s1387_s0 + $0xf8] sm:$0xff]  ;;  %v727_v63 = vld [vmem:[%s1387_s0 + $0x168] sm:$0xff]  ;;  %v726_v2 = vld [vmem:[%s1387_s0 + $0x160] sm:$0xff] }
  0x13   :  { %v707_v1 = vld [vmem:[%s1387_s0 + $0x108] sm:$0xff]  ;;  %v729_v3 = vld [vmem:[%s1387_s0 + $0x178] sm:$0xff]  ;;  %v708_v8 = vld [vmem:[%s1387_s0 + $0x110] sm:$0xff] }
  0x14   :  { %760 = vmatpush1.bf16.msra.mxu0 %v1010_v17  ;;  %787 = vmatpush1.bf16.msra.mxu1 %v1010_v17  ;;  %v709_v5 = vld [vmem:[%s1387_s0 + $0x118] sm:$0xff]  ;;  %v731_v7 = vld [vmem:[%s1387_s0 + $0x188] sm:$0xff]  ;;  %v710_v12 = vld [vmem:[%s1387_s0 + $0x120] sm:$0xff] }
  0x15   :  { %761 = vmatprep.subr.bf16.mxu0 %v926_v0  ;;  %788 = vmatprep.subr.bf16.mxu1 %v926_v0  ;;  %v711_v9 = vld [vmem:[%s1387_s0 + $0x128] sm:$0xff]  ;;  %v733_v11 = vld [vmem:[%s1387_s0 + $0x198] sm:$0xff]  ;;  %v712_v16 = vld [vmem:[%s1387_s0 + $0x130] sm:$0xff] }
  0x16   :  { %v713_v13 = vld [vmem:[%s1387_s0 + $0x138] sm:$0xff]  ;;  %v735_v15 = vld [vmem:[%s1387_s0 + $0x1a8] sm:$0xff]  ;;  %v734_v18 = vld [vmem:[%s1387_s0 + $0x1a0] sm:$0xff] }
  0x17   :  { %v737_v19 = vld [vmem:[%s1387_s0 + $0x1b8] sm:$0x3]  ;;  %v736_v21 = vld [vmem:[%s1387_s0 + $0x1b0] sm:$0x3]  ;;  %v1308_v22 = vld [vmem:[%s1388_s2] ss:$0 sm:$0xff] }
  0x18   :  { %763 = vmatpush1.bf16.msra.mxu0 %v1022_v20  ;;  %790 = vmatpush1.bf16.msra.mxu1 %v1022_v20 }
  0x19   :  { %764 = vmatprep.subr.bf16.mxu0 %v926_v0  ;;  %791 = vmatprep.subr.bf16.mxu1 %v926_v0 }
  0x1c   :  { %766 = vmatpush1.bf16.msra.mxu0 %v1034_v23  ;;  %793 = vmatpush1.bf16.msra.mxu1 %v1034_v23 }
  0x1d   :  { %767 = vmatprep.subr.bf16.mxu0 %v926_v0  ;;  %794 = vmatprep.subr.bf16.mxu1 %v926_v0 }
  0x20   :  { %769 = vmatpush1.bf16.msra.mxu0 %v1046_v26  ;;  %796 = vmatpush1.bf16.msra.mxu1 %v1046_v26 }
  0x21   :  { %770 = vmatprep.subr.bf16.mxu0 %v926_v0  ;;  %797 = vmatprep.subr.bf16.mxu1 %v926_v0 }
  0x24   :  { %772 = vmatpush1.bf16.msra.mxu0 %v1058_v29  ;;  %799 = vmatpush1.bf16.msra.mxu1 %v1058_v29 }
  0x25   :  { %116 = vmatprep.subr.mxu0 %v927_v30  ;;  %266 = vmatprep.subr.mxu1 %v927_v30 }
  0x28   :  { %672 = vmatpush1.msk.msra.mxu0 %vm76_vm1, %v1068_v31  ;;  %694 = vmatpush1.msk.msra.mxu1 %vm76_vm1, %v1068_v31 }
  0x29   :  { %145 = vmatmul.mubr.f32.vlgmr.msra.gmra.mrb[0].mxu0 %v34_v32  ;;  %800 = vmatprep.subr.bf16.mxu0 %v926_v0 }
  0x2a   :  { %295 = vmatmul.mubr.f32.vlgmr.msra.gmra.mrb[0].mxu1 %v680_v33  ;;  %802 = vmatpush1.bf16.msra.mxu0 %v959_v4 }
  0x2b   :  { %827 = vmatprep.subr.bf16.mxu1 %v926_v0  ;;  %803 = vmatprep.subr.bf16.mxu0 %v926_v0 }
  0x2c   :  { %829 = vmatpush1.bf16.msra.mxu1 %v959_v4  ;;  %674 = vmatprep.mubr.msk.f32.mxu0 %vm54_vm0, %v37_v34  ;;  %v706_v4 = vld [vmem:[%s1387_s0 + $0x100] sm:$0xff] }
  0x2d   :  { %830 = vmatprep.subr.bf16.mxu1 %v926_v0  ;;  %150 = vmatmul.mubr.f32.gmra.mrb[2].mxu0 %v36_v35 }
  0x2e   :  { %805 = vmatpush1.bf16.msra.mxu0 %v966_v6  ;;  %696 = vmatprep.mubr.msk.f32.mxu1 %vm54_vm0, %v683_v36 }
  0x2f   :  { %806 = vmatprep.subr.bf16.mxu0 %v926_v0  ;;  %300 = vmatmul.mubr.f32.gmra.mrb[2].mxu1 %v682_v37 }
  0x30   :  { %832 = vmatpush1.bf16.msra.mxu1 %v966_v6  ;;  %675 = vmatprep.mubr.msk.f32.mxu0 %vm54_vm0, %v39_v38  ;;  %v728_v6 = vld [vmem:[%s1387_s0 + $0x170] sm:$0xff] }
  0x31   :  { %833 = vmatprep.subr.bf16.mxu1 %v926_v0  ;;  %155 = vmatmul.mubr.f32.gmra.mrb[4].mxu0 %v38_v39 }
  0x32   :  { %808 = vmatpush1.bf16.msra.mxu0 %v981_v10  ;;  %697 = vmatprep.mubr.msk.f32.mxu1 %vm54_vm0, %v685_v40 }
  0x33   :  { %809 = vmatprep.subr.bf16.mxu0 %v926_v0  ;;  %305 = vmatmul.mubr.f32.gmra.mrb[4].mxu1 %v684_v41 }
  0x34   :  { %835 = vmatpush1.bf16.msra.mxu1 %v981_v10  ;;  %676 = vmatprep.mubr.msk.f32.mxu0 %vm54_vm0, %v41_v42  ;;  %v730_v10 = vld [vmem:[%s1387_s0 + $0x180] sm:$0xff] }
  0x35   :  { %836 = vmatprep.subr.bf16.mxu1 %v926_v0  ;;  %160 = vmatmul.mubr.f32.gmra.mrb[6].mxu0 %v40_v43 }
  0x36   :  { %811 = vmatpush1.bf16.msra.mxu0 %v998_v14  ;;  %698 = vmatprep.mubr.msk.f32.mxu1 %vm54_vm0, %v687_v44 }
  0x37   :  { %812 = vmatprep.subr.bf16.mxu0 %v926_v0  ;;  %310 = vmatmul.mubr.f32.gmra.mrb[6].mxu1 %v686_v45 }
  0x38   :  { %838 = vmatpush1.bf16.msra.mxu1 %v998_v14  ;;  %677 = vmatprep.mubr.msk.f32.mxu0 %vm54_vm0, %v43_v46  ;;  %v732_v14 = vld [vmem:[%s1387_s0 + $0x190] sm:$0xff] }
  0x39   :  { %839 = vmatprep.subr.bf16.mxu1 %v926_v0  ;;  %165 = vmatmul.mubr.f32.gmra.mrb[8].mxu0 %v42_v47 }
  0x3a   :  { %814 = vmatpush1.bf16.msra.mxu0 %v1010_v17  ;;  %699 = vmatprep.mubr.msk.f32.mxu1 %vm54_vm0, %v689_v48 }
  0x3b   :  { %815 = vmatprep.subr.bf16.mxu0 %v926_v0  ;;  %315 = vmatmul.mubr.f32.gmra.mrb[8].mxu1 %v688_v49 }
  0x3c   :  { %841 = vmatpush1.bf16.msra.mxu1 %v1010_v17  ;;  %678 = vmatprep.mubr.msk.f32.mxu0 %vm54_vm0, %v45_v50  ;;  %v715_v17 = vld [vmem:[%s1387_s0 + $0x148] sm:$0x3] }
  0x3d   :  { %842 = vmatprep.subr.bf16.mxu1 %v926_v0  ;;  %170 = vmatmul.mubr.f32.gmra.mrb[10].mxu0 %v44_v51 }
  0x3e   :  { %817 = vmatpush1.bf16.msra.mxu0 %v1022_v20  ;;  %700 = vmatprep.mubr.msk.f32.mxu1 %vm54_vm0, %v691_v52 }
  0x3f   :  { %818 = vmatprep.subr.bf16.mxu0 %v926_v0  ;;  %320 = vmatmul.mubr.f32.gmra.mrb[10].mxu1 %v690_v53 }
  0x40   :  { %844 = vmatpush1.bf16.msra.mxu1 %v1022_v20  ;;  %679 = vmatprep.mubr.msk.f32.mxu0 %vm54_vm0, %v47_v54  ;;  %v714_v20 = vld [vmem:[%s1387_s0 + $0x140] sm:$0x3] }
  0x41   :  { %845 = vmatprep.subr.bf16.mxu1 %v926_v0  ;;  %175 = vmatmul.mubr.f32.gmra.mrb[12].mxu0 %v46_v55 }
  0x42   :  { %820 = vmatpush1.bf16.msra.mxu0 %v1034_v23  ;;  %701 = vmatprep.mubr.msk.f32.mxu1 %vm54_vm0, %v693_v56 }
  0x43   :  { %821 = vmatprep.subr.bf16.mxu0 %v926_v0  ;;  %325 = vmatmul.mubr.f32.gmra.mrb[12].mxu1 %v692_v57 }
  0x44   :  { %847 = vmatpush1.bf16.msra.mxu1 %v1034_v23  ;;  %717 = vmatprep.mubr.msk.f32.mxu0 %vm54_vm0, %v703_v58 }
  0x45   :  { %848 = vmatprep.subr.bf16.mxu1 %v926_v0  ;;  %739 = vmatprep.mubr.msk.f32.mxu1 %vm54_vm0, %v725_v59 }
  0x46   :  { %823 = vmatpush1.bf16.msra.mxu0 %v1046_v26 }
  0x47   :  { %824 = vmatprep.subr.bf16.mxu0 %v926_v0 }
  0x48   :  { %850 = vmatpush1.bf16.msra.mxu1 %v1046_v26 }
  0x49   :  { %851 = vmatprep.subr.bf16.mxu1 %v926_v0  ;;  %v704_v0 = vld [vmem:[%s1387_s0 + $0xf0] sm:$0xff] }
  0x4a   :  { %826 = vmatpush1.bf16.msra.mxu0 %v1058_v29 }
  0x4b   :  { %416 = vmatprep.subr.mxu0 %v927_v30 }
  0x4c   :  { %853 = vmatpush1.bf16.msra.mxu1 %v1058_v29 }
  0x4d   :  { %566 = vmatprep.subr.mxu1 %v927_v30 }
  0x4e   :  { %716 = vmatpush1.msk.msra.mxu0 %vm76_vm1, %v1068_v31 }
  0x4f   :  { %445 = vmatmul.mubr.f32.vlgmr.msra.gmra.mrb[14].mxu0 %v702_v60 }
  0x50   :  { %738 = vmatpush1.msk.msra.mxu1 %vm76_vm1, %v1068_v31  ;;  %718 = vmatprep.mubr.msk.f32.mxu0 %vm54_vm0, %v705_v61 }
  0x51   :  { %595 = vmatmul.mubr.f32.vlgmr.msra.gmra.mrb[14].mxu1 %v724_v62 }
  0x52   :  { %740 = vmatprep.mubr.msk.f32.mxu1 %vm54_vm0, %v727_v63 }
  0x53   :  { %450 = vmatmul.mubr.f32.gmra.mrb[16].mxu0 %v704_v0 }
  0x54   :  { %719 = vmatprep.mubr.msk.f32.mxu0 %vm54_vm0, %v707_v1 }
  0x55   :  { %600 = vmatmul.mubr.f32.gmra.mrb[16].mxu1 %v726_v2 }
  0x56   :  { %741 = vmatprep.mubr.msk.f32.mxu1 %vm54_vm0, %v729_v3 }
  0x57   :  { %455 = vmatmul.mubr.f32.gmra.mrb[18].mxu0 %v706_v4 }
  0x58   :  { %720 = vmatprep.mubr.msk.f32.mxu0 %vm54_vm0, %v709_v5 }
  0x59   :  { %605 = vmatmul.mubr.f32.gmra.mrb[18].mxu1 %v728_v6 }
  0x5a   :  { %742 = vmatprep.mubr.msk.f32.mxu1 %vm54_vm0, %v731_v7 }
  0x5b   :  { %460 = vmatmul.mubr.f32.gmra.mrb[20].mxu0 %v708_v8 }
  0x5c   :  { %721 = vmatprep.mubr.msk.f32.mxu0 %vm54_vm0, %v711_v9 }
  0x5d   :  { %610 = vmatmul.mubr.f32.gmra.mrb[20].mxu1 %v730_v10 }
  0x5e   :  { %743 = vmatprep.mubr.msk.f32.mxu1 %vm54_vm0, %v733_v11 }
  0x5f   :  { %465 = vmatmul.mubr.f32.gmra.mrb[22].mxu0 %v710_v12 }
  0x60   :  { %722 = vmatprep.mubr.msk.f32.mxu0 %vm54_vm0, %v713_v13 }
  0x61   :  { %615 = vmatmul.mubr.f32.gmra.mrb[22].mxu1 %v732_v14 }
  0x62   :  { %744 = vmatprep.mubr.msk.f32.mxu1 %vm54_vm0, %v735_v15 }
  0x63   :  { %470 = vmatmul.mubr.f32.gmra.mrb[24].mxu0 %v712_v16 }
  0x64   :  { %723 = vmatprep.mubr.msk.f32.mxu0 %vm54_vm0, %v715_v17 }
  0x65   :  { %620 = vmatmul.mubr.f32.gmra.mrb[24].mxu1 %v734_v18 }
  0x66   :  { %745 = vmatprep.mubr.msk.f32.mxu1 %vm54_vm0, %v737_v19 }
  0x67   :  { %475 = vmatmul.mubr.f32.gmra.mrb[26].mxu0 %v714_v20 }
  0x69   :  { %625 = vmatmul.mubr.f32.gmra.mrb[26].mxu1 %v736_v21 }
  0xfc   :  { %v146_v23 = vpop.f32.mrb[0].mxu0 }
  0xfd   :  { %v147_v24 = vadd.f32 %v1308_v22, %v146_v23  ;;  %v148_v25 = vpop.f32.mrb[1].mxu0  ;;  %v296_v26 = vpop.f32.mrb[0].mxu1 }
  0xfe   :  { %v297_v27 = vadd.f32 %v1308_v22, %v296_v26  ;;  %v298_v28 = vpop.f32.mrb[1].mxu1 }
  0xff   :  { %856 = vtanh.f32 %v147_v24 }
 0x100   :  { %858 = vtanh.f32 %v297_v27  ;;  %v151_v29 = vpop.f32.mrb[2].mxu0 }
 0x101   :  { %v152_v30 = vadd.f32 %v1308_v22, %v151_v29  ;;  %v153_v31 = vpop.f32.mrb[3].mxu0 }
 0x102   :  { %v301_v32 = vpop.f32.mrb[2].mxu1 }
 0x103   :  { %860 = vtanh.f32 %v152_v30  ;;  %v302_v33 = vadd.f32 %v1308_v22, %v301_v32  ;;  %v303_v34 = vpop.f32.mrb[3].mxu1 }
 0x104   :  { %v156_v35 = vpop.f32.mrb[4].mxu0 }
 0x105   :  { %862 = vtanh.f32 %v302_v33  ;;  %v157_v36 = vadd.f32 %v1308_v22, %v156_v35  ;;  %v158_v37 = vpop.f32.mrb[5].mxu0 }
 0x106   :  { %v306_v38 = vpop.f32.mrb[4].mxu1 }
 0x107   :  { %864 = vtanh.f32 %v157_v36  ;;  %v307_v39 = vadd.f32 %v1308_v22, %v306_v38  ;;  %v308_v40 = vpop.f32.mrb[5].mxu1 }
 0x108   :  { %v161_v41 = vpop.f32.mrb[6].mxu0 }
 0x109   :  { %v857_v42 = vpop.eup %856  ;;  %866 = vtanh.f32 %v307_v39  ;;  %v162_v43 = vadd.f32 %v1308_v22, %v161_v41  ;;  %v163_v44 = vpop.f32.mrb[7].mxu0 }
 0x10a   :  { %v859_v45 = vpop.eup %858  ;;  %v311_v46 = vpop.f32.mrb[6].mxu1 }
 0x10b   :  { %v1317_v47 = vadd.f32 %v859_v45, %v857_v42  ;;  %868 = vtanh.f32 %v162_v43  ;;  %v312_v48 = vadd.f32 %v1308_v22, %v311_v46  ;;  %v313_v49 = vpop.f32.mrb[7].mxu1 }
 0x10c   :  { %v166_v50 = vpop.f32.mrb[8].mxu0 }
 0x10d   :  { %v861_v51 = vpop.eup %860  ;;  %870 = vtanh.f32 %v312_v48  ;;  %v167_v52 = vadd.f32 %v1308_v22, %v166_v50  ;;  %v168_v53 = vpop.f32.mrb[9].mxu0 }
 0x10e   :  { %v316_v54 = vpop.f32.mrb[8].mxu1 }
 0x10f   :  { %v863_v55 = vpop.eup %862  ;;  %872 = vtanh.f32 %v167_v52  ;;  %v317_v56 = vadd.f32 %v1308_v22, %v316_v54  ;;  %v318_v57 = vpop.f32.mrb[9].mxu1 }
 0x110   :  { %v1322_v58 = vadd.f32 %v863_v55, %v861_v51  ;;  %v171_v59 = vpop.f32.mrb[10].mxu0 }
 0x111   :  { %v865_v60 = vpop.eup %864  ;;  %874 = vtanh.f32 %v317_v56  ;;  %v172_v61 = vadd.f32 %v1308_v22, %v171_v59  ;;  %v173_v62 = vpop.f32.mrb[11].mxu0 }
 0x112   :  { %v321_v63 = vpop.f32.mrb[10].mxu1 }
 0x113   :  { %v867_v0 = vpop.eup %866  ;;  %876 = vtanh.f32 %v172_v61  ;;  %v322_v1 = vadd.f32 %v1308_v22, %v321_v63  ;;  %v323_v2 = vpop.f32.mrb[11].mxu1 }
 0x114   :  { %v1326_v3 = vadd.f32 %v867_v0, %v865_v60  ;;  %v176_v4 = vpop.f32.mrb[12].mxu0 }
 0x115   :  { %v869_v5 = vpop.eup %868  ;;  %878 = vtanh.f32 %v322_v1  ;;  %v177_v6 = vadd.f32 %v1308_v22, %v176_v4  ;;  %v178_v7 = vpop.f32.mrb[13].mxu0 }
 0x116   :  { %v326_v8 = vpop.f32.mrb[12].mxu1 }
 0x117   :  { %v871_v9 = vpop.eup %870  ;;  %880 = vtanh.f32 %v177_v6  ;;  %v327_v10 = vadd.f32 %v1308_v22, %v326_v8  ;;  %v328_v11 = vpop.f32.mrb[13].mxu1 }
 0x118   :  { %v1330_v12 = vadd.f32 %v871_v9, %v869_v5 }
 0x119   :  { %v873_v13 = vpop.eup %872  ;;  %882 = vtanh.f32 %v327_v10 }
 0x11b   :  { %v875_v14 = vpop.eup %874 }
 0x11c   :  { %v1332_v15 = vadd.f32 %v875_v14, %v873_v13 }
 0x11d   :  { %v877_v16 = vpop.eup %876 }
 0x11f   :  { %v879_v17 = vpop.eup %878 }
 0x120   :  { %v1334_v18 = vadd.f32 %v879_v17, %v877_v16 }
 0x121   :  { %v881_v19 = vpop.eup %880 }
 0x122   :  { %v446_v20 = vpop.f32.mrb[14].mxu0 }
 0x123   :  { %v883_v21 = vpop.eup %882  ;;  %v447_v23 = vadd.f32 %v1308_v22, %v446_v20  ;;  %v448_v24 = vpop.f32.mrb[15].mxu0 }
 0x124   :  { %v1337_v25 = vadd.f32 %v883_v21, %v881_v19  ;;  %v596_v26 = vpop.f32.mrb[14].mxu1 }
 0x125   :  { %884 = vtanh.f32 %v447_v23  ;;  %v597_v27 = vadd.f32 %v1308_v22, %v596_v26  ;;  %v598_v28 = vpop.f32.mrb[15].mxu1 }
 0x126   :  { %v451_v29 = vpop.f32.mrb[16].mxu0 }
 0x127   :  { %886 = vtanh.f32 %v597_v27  ;;  %v452_v30 = vadd.f32 %v1308_v22, %v451_v29  ;;  %v453_v31 = vpop.f32.mrb[17].mxu0 }
 0x128   :  { %v601_v32 = vpop.f32.mrb[16].mxu1 }
 0x129   :  { %888 = vtanh.f32 %v452_v30  ;;  %v602_v33 = vadd.f32 %v1308_v22, %v601_v32  ;;  %v603_v34 = vpop.f32.mrb[17].mxu1 }
 0x12a   :  { %v456_v35 = vpop.f32.mrb[18].mxu0 }
 0x12b   :  { %890 = vtanh.f32 %v602_v33  ;;  %v457_v36 = vadd.f32 %v1308_v22, %v456_v35  ;;  %v458_v37 = vpop.f32.mrb[19].mxu0 }
 0x12c   :  { %v606_v38 = vpop.f32.mrb[18].mxu1 }
 0x12d   :  { %892 = vtanh.f32 %v457_v36  ;;  %v607_v39 = vadd.f32 %v1308_v22, %v606_v38  ;;  %v608_v40 = vpop.f32.mrb[19].mxu1 }
 0x12e   :  { %v461_v41 = vpop.f32.mrb[20].mxu0 }
 0x12f   :  { %v885_v42 = vpop.eup %884  ;;  %894 = vtanh.f32 %v607_v39  ;;  %v462_v43 = vadd.f32 %v1308_v22, %v461_v41  ;;  %v463_v44 = vpop.f32.mrb[21].mxu0 }
 0x130   :  { %v487_v45 = vadd.f32 %v885_v42, %v1317_v47  ;;  %v611_v46 = vpop.f32.mrb[20].mxu1 }
 0x131   :  { %v887_v48 = vpop.eup %886  ;;  %896 = vtanh.f32 %v462_v43  ;;  %v612_v49 = vadd.f32 %v1308_v22, %v611_v46  ;;  %v613_v50 = vpop.f32.mrb[21].mxu1 }
 0x132   :  { %v637_v51 = vadd.f32 %v887_v48, %v487_v45  ;;  %v466_v52 = vpop.f32.mrb[22].mxu0 }
 0x133   :  { %v889_v53 = vpop.eup %888  ;;  %898 = vtanh.f32 %v612_v49  ;;  %v467_v54 = vadd.f32 %v1308_v22, %v466_v52  ;;  %v468_v55 = vpop.f32.mrb[23].mxu0 }
 0x134   :  { %v644_v56 = vmul.f32 0.25, %v637_v51  ;;  %v488_v57 = vadd.f32 %v889_v53, %v1322_v58  ;;  %v616_v59 = vpop.f32.mrb[22].mxu1 }
 0x135   :  { %v891_v60 = vpop.eup %890  ;;  %900 = vtanh.f32 %v467_v54  ;;  %v617_v47 = vadd.f32 %v1308_v22, %v616_v59  ;;  %v618_v61 = vpop.f32.mrb[23].mxu1 }
 0x136   :  { %902 = vtanh.f32 %v644_v56  ;;  %v638_v62 = vadd.f32 %v891_v60, %v488_v57  ;;  %v471_v63 = vpop.f32.mrb[24].mxu0 }
 0x137   :  { %v893_v0 = vpop.eup %892  ;;  %904 = vtanh.f32 %v617_v47  ;;  %v472_v1 = vadd.f32 %v1308_v22, %v471_v63  ;;  %v473_v2 = vpop.f32.mrb[25].mxu0 }
 0x138   :  { %v645_v4 = vmul.f32 0.25, %v638_v62  ;;  %v489_v5 = vadd.f32 %v893_v0, %v1326_v3  ;;  %v621_v6 = vpop.f32.mrb[24].mxu1 }
 0x139   :  { %v895_v7 = vpop.eup %894  ;;  %906 = vtanh.f32 %v472_v1  ;;  %v622_v58 = vadd.f32 %v1308_v22, %v621_v6  ;;  %v623_v8 = vpop.f32.mrb[25].mxu1 }
 0x13a   :  { %908 = vtanh.f32 %v645_v4  ;;  %v639_v9 = vadd.f32 %v895_v7, %v489_v5  ;;  %v476_v10 = vpop.f32.mrb[26].mxu0 }
 0x13b   :  { %v897_v11 = vpop.eup %896  ;;  %910 = vtanh.f32 %v622_v58  ;;  %v477_v13 = vadd.f32 %v1308_v22, %v476_v10  ;;  %v478_v14 = vpop.f32.mrb[27].mxu0 }
 0x13c   :  { %v646_v16 = vmul.f32 0.25, %v639_v9  ;;  %v490_v17 = vadd.f32 %v897_v11, %v1330_v12  ;;  %v626_v19 = vpop.f32.mrb[26].mxu1 }
 0x13d   :  { %v899_v20 = vpop.eup %898  ;;  %912 = vtanh.f32 %v477_v13  ;;  %v627_v3 = vadd.f32 %v1308_v22, %v626_v19  ;;  %v628_v21 = vpop.f32.mrb[27].mxu1 }
 0x13e   :  { %914 = vtanh.f32 %v646_v16  ;;  %v640_v23 = vadd.f32 %v899_v20, %v490_v17 }
 0x13f   :  { %v901_v24 = vpop.eup %900  ;;  %916 = vtanh.f32 %v627_v3 }
 0x140   :  { %v903_v26 = vpop.eup %902  ;;  %v647_v27 = vmul.f32 0.25, %v640_v23  ;;  %v491_v28 = vadd.f32 %v901_v24, %v1332_v15 }
 0x141   :  { %v905_v29 = vpop.eup %904  ;;  %659 = vst.msk [vmem:[%s1389_s3] sm:$0xff] %vm658_vm2, %v903_v26 }
 0x142   :  { %918 = vtanh.f32 %v647_v27  ;;  %v641_v12 = vadd.f32 %v905_v29, %v491_v28 }
 0x143   :  { %v907_v30 = vpop.eup %906 }
 0x144   :  { %v909_v22 = vpop.eup %908  ;;  %v648_v31 = vmul.f32 0.25, %v641_v12  ;;  %v492_v32 = vadd.f32 %v907_v30, %v1334_v18 }
 0x145   :  { %v911_v33 = vpop.eup %910  ;;  %660 = vst.msk [vmem:[%s1389_s3 + $0x8] sm:$0xff] %vm658_vm2, %v909_v22 }
 0x146   :  { %920 = vtanh.f32 %v648_v31  ;;  %v642_v15 = vadd.f32 %v911_v33, %v492_v32 }
 0x147   :  { %v913_v34 = vpop.eup %912 }
 0x148   :  { %v915_v35 = vpop.eup %914  ;;  %v649_v36 = vmul.f32 0.25, %v642_v15  ;;  %v493_v37 = vadd.f32 %v913_v34, %v1337_v25 }
 0x149   :  { %v917_v38 = vpop.eup %916  ;;  %661 = vst.msk [vmem:[%s1389_s3 + $0x10] sm:$0xff] %vm658_vm2, %v915_v35 }
 0x14a   :  { %922 = vtanh.f32 %v649_v36  ;;  %v643_v18 = vadd.f32 %v917_v38, %v493_v37 }
 0x14c   :  { %v919_v39 = vpop.eup %918  ;;  %v650_v40 = vmul.f32 0.25, %v643_v18 }
 0x14d   :  { %662 = vst.msk [vmem:[%s1389_s3 + $0x18] sm:$0xff] %vm658_vm2, %v919_v39 }
 0x14e   :  { %924 = vtanh.f32 %v650_v40 }
 0x150   :  { %v921_v41 = vpop.eup %920 }
 0x151   :  { %663 = vst.msk [vmem:[%s1389_s3 + $0x20] sm:$0xff] %vm658_vm2, %v921_v41 }
 0x154   :  { %v923_v25 = vpop.eup %922 }
 0x155   :  { %664 = vst.msk [vmem:[%s1389_s3 + $0x28] sm:$0xff] %vm658_vm2, %v923_v25 }
 0x158   :  { %v925_v42 = vpop.eup %924 }
 0x159   :  { %666 = vst.msk [vmem:[%s1389_s3 + $0x30] sm:$0x3] %vm665_vm3, %v925_v42 }

// kernel: lenet5_forward.5
= control target key start
LH: loop header
LB: loop body
LE: loop exit
PB: predicated region body
PF: predicated region fallthrough
CT: control target
= control target key end

     0   :  { %v716_v4 = vmov 0.0|0.0   ;;  %v717_v26 = vmov 1983009808   ;;  %v90_v28 = vlaneseq  ;;  %s1034_s0 = inlined_call_operand.vmem [shape: f32[2,400], index: 0, kind: input, shape index: {}]   ;;  %s1035_s1 = inlined_call_operand.vmem [shape: f32[400,120], index: 1, kind: input, shape index: {}]   ;;  %s1036_s2 = inlined_call_operand.vmem [shape: f32[1,120], index: 2, kind: input, shape index: {}]   ;;  %s1037_s3 = inlined_call_operand.vmem [shape: f32[120,84], index: 3, kind: input, shape index: {}]   ;;  %s1038_s4 = inlined_call_operand.vmem [shape: f32[1,84], index: 4, kind: input, shape index: {}]   ;;  %s1039_s5 = inlined_call_operand.vmem [shape: f32[84,10], index: 5, kind: input, shape index: {}]   ;;  %s1040_s6 = inlined_call_operand.vmem [shape: f32[1,10], index: 6, kind: input, shape index: {}]   ;;  %s1041_s7 = inlined_call_operand.hbm [shape: f32[2,10], index: 7, kind: output, shape index: {}]  }
   0x1   :  { %v44_v0 = vld [vmem:[%s1035_s1 + $0x80] sm:$0xff]  ;;  %v45_v1 = vld [vmem:[%s1035_s1 + $0x88] sm:$0xff]  ;;  %619 = vmatprep.subr.bf16.mxu1 %v716_v4  ;;  %v46_v10 = vld [vmem:[%s1035_s1 + $0x90] sm:$0xff]  ;;  %v88_v27 = vunpack.c.l.s4 %v717_v26 }
   0x2   :  { %v28_v2 = vld [vmem:[%s1035_s1] sm:$0xff]  ;;  %v587_v3 = vpack.c.bf16 %v45_v1, %v44_v0  ;;  %v29_v5 = vld [vmem:[%s1035_s1 + $0x8] sm:$0xff]  ;;  %v47_v11 = vld [vmem:[%s1035_s1 + $0x98] sm:$0xff]  ;;  %v91_v39 = vshrl.u32 %v90_v28, 7 }
   0x3   :  { %v60_v6 = vld [vmem:[%s1035_s1 + $0x100] sm:$0xff]  ;;  %v61_v7 = vld [vmem:[%s1035_s1 + $0x108] sm:$0xff]  ;;  %v589_v8 = vpack.c.bf16 %v29_v5, %v28_v2  ;;  %v30_v12 = vld [vmem:[%s1035_s1 + $0x10] sm:$0xff]  ;;  %v591_v13 = vpack.c.bf16 %v47_v11, %v46_v10  ;;  %v89_v38 = vunpack.c.0.s8 %v88_v27 }
   0x4   :  { %v620_v9 = vpack.c.bf16 %v61_v7, %v60_v6  ;;  %588 = vmatprep.subr.bf16.mxu0 %v587_v3  ;;  %v31_v14 = vld [vmem:[%s1035_s1 + $0x18] sm:$0xff]  ;;  %v62_v15 = vld [vmem:[%s1035_s1 + $0x110] sm:$0xff]  ;;  %v48_v19 = vld [vmem:[%s1035_s1 + $0xa0] sm:$0xff] }
   0x5   :  { %v63_v16 = vld [vmem:[%s1035_s1 + $0x118] sm:$0xff]  ;;  %590 = vmatpush3.bf16.msra.mxu0 %v589_v8  ;;  %v593_v17 = vpack.c.bf16 %v31_v14, %v30_v12  ;;  %v49_v20 = vld [vmem:[%s1035_s1 + $0xa8] sm:$0xff]  ;;  %v32_v21 = vld [vmem:[%s1035_s1 + $0x20] sm:$0xff]  ;;  %v92_v49 = vsub.s32 %v89_v38, %v91_v39 }
   0x6   :  { %621 = vmatpush1.bf16.msra.mxu1 %v620_v9  ;;  %v623_v18 = vpack.c.bf16 %v63_v16, %v62_v15  ;;  %592 = vmatprep.subr.bf16.mxu0 %v591_v13  ;;  %v595_v22 = vpack.c.bf16 %v49_v20, %v48_v19  ;;  %v33_v23 = vld [vmem:[%s1035_s1 + $0x28] sm:$0xff]  ;;  %v64_v24 = vld [vmem:[%s1035_s1 + $0x120] sm:$0xff]  ;;  %v50_v29 = vld [vmem:[%s1035_s1 + $0xb0] sm:$0xff] }
   0x7   :  { %622 = vmatprep.subr.bf16.mxu1 %v716_v4  ;;  %v65_v25 = vld [vmem:[%s1035_s1 + $0x128] sm:$0xff]  ;;  %v51_v30 = vld [vmem:[%s1035_s1 + $0xb8] sm:$0xff]  ;;  %v597_v31 = vpack.c.bf16 %v33_v23, %v32_v21  ;;  %v34_v33 = vld [vmem:[%s1035_s1 + $0x30] sm:$0xff] }
   0x8   :  { %v626_v32 = vpack.c.bf16 %v65_v25, %v64_v24  ;;  %v599_v34 = vpack.c.bf16 %v51_v30, %v50_v29  ;;  %v35_v35 = vld [vmem:[%s1035_s1 + $0x38] sm:$0xff]  ;;  %v66_v36 = vld [vmem:[%s1035_s1 + $0x130] sm:$0xff]  ;;  %v52_v40 = vld [vmem:[%s1035_s1 + $0xc0] sm:$0xff] }
   0x9   :  { %594 = vmatpush3.bf16.msra.mxu0 %v593_v17  ;;  %v67_v37 = vld [vmem:[%s1035_s1 + $0x138] sm:$0xff]  ;;  %v53_v41 = vld [vmem:[%s1035_s1 + $0xc8] sm:$0xff]  ;;  %v601_v42 = vpack.c.bf16 %v35_v35, %v34_v33  ;;  %v36_v44 = vld [vmem:[%s1035_s1 + $0x40] sm:$0xff] }
   0xa   :  { %624 = vmatpush1.bf16.msra.mxu1 %v623_v18  ;;  %596 = vmatprep.subr.bf16.mxu0 %v595_v22  ;;  %v629_v43 = vpack.c.bf16 %v67_v37, %v66_v36  ;;  %v603_v45 = vpack.c.bf16 %v53_v41, %v52_v40  ;;  %v37_v46 = vld [vmem:[%s1035_s1 + $0x48] sm:$0xff]  ;;  %v68_v47 = vld [vmem:[%s1035_s1 + $0x140] sm:$0xff]  ;;  %v54_v50 = vld [vmem:[%s1035_s1 + $0xd0] sm:$0xff] }
   0xb   :  { %625 = vmatprep.subr.bf16.mxu1 %v716_v4  ;;  %v69_v48 = vld [vmem:[%s1035_s1 + $0x148] sm:$0xff]  ;;  %v55_v51 = vld [vmem:[%s1035_s1 + $0xd8] sm:$0xff]  ;;  %v605_v52 = vpack.c.bf16 %v37_v46, %v36_v44  ;;  %v38_v54 = vld [vmem:[%s1035_s1 + $0x50] sm:$0xff] }
   0xc   :  { %v632_v53 = vpack.c.bf16 %v69_v48, %v68_v47  ;;  %v27_v55 = vld [vmem:[%s1034_s0] sm:$0xff]  ;;  %v607_v56 = vpack.c.bf16 %v55_v51, %v54_v50  ;;  %v39_v57 = vld [vmem:[%s1035_s1 + $0x58] sm:$0xff]  ;;  %v70_v58 = vld [vmem:[%s1035_s1 + $0x150] sm:$0xff] }
   0xd   :  { %598 = vmatpush3.bf16.msra.mxu0 %v597_v31  ;;  %v71_v59 = vld [vmem:[%s1035_s1 + $0x158] sm:$0xff]  ;;  %v86_v60 = vcombine.high %v27_v55, %v27_v55  ;;  %v93_v61 = vrot.slane %v27_v55, %v92_v49  ;;  %v56_v62 = vld [vmem:[%s1035_s1 + $0xe0] sm:$0xff]  ;;  %v57_v63 = vld [vmem:[%s1035_s1 + $0xe8] sm:$0xff] }
   0xe   :  { %627 = vmatpush1.bf16.msra.mxu1 %v626_v32  ;;  %600 = vmatprep.subr.bf16.mxu0 %v599_v34 }
   0xf   :  { %628 = vmatprep.subr.bf16.mxu1 %v716_v4  ;;  %v101_v0 = vcombine.high %v93_v61, %v93_v61  ;;  %v100_v1 = vrot.slane %v86_v60, %v92_v49 }
  0x11   :  { %602 = vmatpush3.bf16.msra.mxu0 %v601_v42 }
  0x12   :  { %630 = vmatpush1.bf16.msra.mxu1 %v629_v43  ;;  %604 = vmatprep.subr.bf16.mxu0 %v603_v45 }
  0x13   :  { %631 = vmatprep.subr.bf16.mxu1 %v716_v4 }
  0x14   :  { %12 = vsyncpa [#allocation3], 0  ;;  %v609_v2 = vpack.c.bf16 %v39_v57, %v38_v54  ;;  %v635_v3 = vpack.c.bf16 %v71_v59, %v70_v58  ;;  %v40_v5 = vld [vmem:[%s1035_s1 + $0x60] sm:$0xff]  ;;  %vm106_vm0 = vcmask 130048   ;;  %v611_v6 = vpack.c.bf16 %v57_v63, %v56_v62  ;;  %v41_v7 = vld [vmem:[%s1035_s1 + $0x68] sm:$0xff]  ;;  %173 = vmatprep.mubr.f32.mxu0 %v101_v0 }
  0x15   :  { %606 = vmatpush3.bf16.msra.mxu0 %v605_v52  ;;  %v72_v8 = vld [vmem:[%s1035_s1 + $0x160] sm:$0xff]  ;;  %v73_v9 = vld [vmem:[%s1035_s1 + $0x168] sm:$0xff]  ;;  %v102_v10 = vcombine.high %v100_v1, %v100_v1  ;;  %v58_v11 = vld [vmem:[%s1035_s1 + $0xf0] sm:$0xff]  ;;  %v613_v13 = vpack.c.bf16 %v41_v7, %v40_v5  ;;  %vm718_vm1 = vmmov 0   ;;  %v719_v45 = vmov 0.0  }
  0x16   :  { %633 = vmatpush1.bf16.msra.mxu1 %v632_v53  ;;  %608 = vmatprep.subr.bf16.mxu0 %v607_v56  ;;  %v59_v12 = vld [vmem:[%s1035_s1 + $0xf8] sm:$0xff]  ;;  %v638_v14 = vpack.c.bf16 %v73_v9, %v72_v8  ;;  %v42_v15 = vld [vmem:[%s1035_s1 + $0x70] sm:$0xff]  ;;  %v76_v22 = vld [vmem:[%s1035_s1 + $0x180] sm:$0xff]  ;;  %vm272_vm2 = vcmask 982016   ;;  %vm369_vm3 = vcmask 1043456   ;;  %vm365_vm4 = vcmask 687104  }
  0x17   :  { %634 = vmatprep.subr.bf16.mxu1 %v716_v4  ;;  %460 = vmatprep.mubr.msk.f32.mxu1 %vm106_vm0, %v102_v10  ;;  %v615_v16 = vpack.c.bf16 %v59_v12, %v58_v11  ;;  %v43_v17 = vld [vmem:[%s1035_s1 + $0x78] sm:$0xff]  ;;  %v74_v18 = vld [vmem:[%s1035_s1 + $0x170] sm:$0xff]  ;;  %v77_v23 = vld [vmem:[%s1035_s1 + $0x188] sm:$0xff]  ;;  %vm443_vm5 = vcmask 74752  }
  0x18   :  { %v75_v19 = vld [vmem:[%s1035_s1 + $0x178] sm:$0xff]  ;;  %v617_v20 = vpack.c.bf16 %v43_v17, %v42_v15  ;;  %v250_v24 = vld [vmem:[%s1037_s3] sm:$0xff]  ;;  %v251_v25 = vld [vmem:[%s1037_s3 + $0x8] sm:$0xff]  ;;  %v644_v26 = vpack.c.bf16 %v77_v23, %v76_v22  ;;  %s720_s1 = smov [#allocation2]  }
  0x19   :  { %610 = vmatpush3.bf16.msra.mxu0 %v609_v2  ;;  %v641_v21 = vpack.c.bf16 %v75_v19, %v74_v18  ;;  %v647_v27 = vpack.c.bf16 %v251_v25, %v250_v24  ;;  %v252_v28 = vld [vmem:[%s1037_s3 + $0x10] sm:$0xff]  ;;  %v253_v29 = vld [vmem:[%s1037_s3 + $0x18] sm:$0xff]  ;;  %v254_v31 = vld [vmem:[%s1037_s3 + $0x20] sm:$0xff]  ;;  %s451_s15 = sshll.u32 %s720_s1, 4  ;;  %s452_s15 = int_to_ptr.vmem [resolvable:$true] %s451_s15 }
  0x1a   :  { %636 = vmatpush1.bf16.msra.mxu1 %v635_v3  ;;  %612 = vmatprep.subr.bf16.mxu0 %v611_v6  ;;  %v650_v30 = vpack.c.bf16 %v253_v29, %v252_v28  ;;  %v255_v32 = vld [vmem:[%s1037_s3 + $0x28] sm:$0xff]  ;;  %v256_v34 = vld [vmem:[%s1037_s3 + $0x30] sm:$0xff]  ;;  %v257_v35 = vld [vmem:[%s1037_s3 + $0x38] sm:$0xff]  ;;  %p697_p1 = scmp.lt.s32.totalorder %s452_s15, %s452_s15 }
  0x1b   :  { %637 = vmatprep.subr.bf16.mxu1 %v716_v4  ;;  %v653_v33 = vpack.c.bf16 %v255_v32, %v254_v31  ;;  %v656_v36 = vpack.c.bf16 %v257_v35, %v256_v34  ;;  %v258_v37 = vld [vmem:[%s1037_s3 + $0x40] sm:$0xff]  ;;  %v259_v38 = vld [vmem:[%s1037_s3 + $0x48] sm:$0xff]  ;;  %v260_v40 = vld [vmem:[%s1037_s3 + $0x50] sm:$0xff] }
  0x1c   :  { %v659_v39 = vpack.c.bf16 %v259_v38, %v258_v37  ;;  %v261_v41 = vld [vmem:[%s1037_s3 + $0x58] sm:$0xff]  ;;  %v262_v43 = vld [vmem:[%s1037_s3 + $0x60] sm:$0xff]  ;;  %v263_v44 = vld [vmem:[%s1037_s3 + $0x68] sm:$0xff] }
  0x1d   :  { %614 = vmatpush3.bf16.msra.mxu0 %v613_v13  ;;  %v662_v42 = vpack.c.bf16 %v261_v41, %v260_v40  ;;  %v665_v46 = vpack.c.bf16 %v263_v44, %v262_v43  ;;  %v264_v47 = vld [vmem:[%s1037_s3 + $0x70] sm:$0xff]  ;;  %v347_v48 = vld [vmem:[%s1039_s5] sm:$0xff]  ;;  %v348_v49 = vld [vmem:[%s1039_s5 + $0x8] sm:$0xff] }
  0x1e   :  { %639 = vmatpush1.bf16.msra.mxu1 %v638_v14  ;;  %616 = vmatprep.subr.bf16.mxu0 %v615_v16  ;;  %v349_v50 = vld [vmem:[%s1039_s5 + $0x10] sm:$0xff]  ;;  %v668_v51 = vpack.c.bf16 %v348_v49, %v347_v48  ;;  %v350_v52 = vld [vmem:[%s1039_s5 + $0x18] sm:$0xff]  ;;  %v459_v56 = vld [vmem:[%s1036_s2] ss:$0 sm:$0xff] }
  0x1f   :  { %640 = vmatprep.subr.bf16.mxu1 %v716_v4  ;;  %v671_v53 = vpack.c.bf16 %v350_v52, %v349_v50  ;;  %v351_v63 = vld [vmem:[%s1039_s5 + $0x20] sm:$0xff]  ;;  %v352_v0 = vld [vmem:[%s1039_s5 + $0x28] sm:$0xff]  ;;  %v353_v2 = vld [vmem:[%s1039_s5 + $0x30] sm:$0xff] }
  0x20   :  { %v354_v3 = vld [vmem:[%s1039_s5 + $0x38] sm:$0xff]  ;;  %v355_v6 = vld [vmem:[%s1039_s5 + $0x40] sm:$0xff]  ;;  %v356_v7 = vld [vmem:[%s1039_s5 + $0x48] sm:$0xff] }
  0x21   :  { %618 = vmatpush3.bf16.msra.mxu0 %v617_v20  ;;  %v677_v5 = vpack.c.bf16 %v354_v3, %v353_v2  ;;  %v680_v8 = vpack.c.bf16 %v356_v7, %v355_v6  ;;  %v357_v9 = vld [vmem:[%s1039_s5 + $0x50] sm:$0xf]  ;;  %v461_v10 = vld [vmem:[%s1038_s4] ss:$0 sm:$0xff]  ;;  %s692_s4 = scalar_lea.vmem %s452_s15, 32 }
  0x22   :  { %642 = vmatpush1.bf16.msra.mxu1 %v641_v21  ;;  %646 = vmatprep.subr.bf16.mxu0 %v716_v4  ;;  %p693_p0 = scmp.ne.s32.totalorder %s452_s15, %s692_s4  ;;  %p698_p2 = scmp.lt.s32.totalorder %s692_s4, %s692_s4 }
  0x23   :  { %643 = vmatprep.subr.bf16.mxu1 %v716_v4 }
  0x24   :  { %174 = vmatmul.mubr.f32.vlgmr.msra.gmra.mrb[0].mxu0 %v93_v61  ;;  %p699_p3 = por %p698_p2, %p697_p1 }
  0x25   :  { %648 = vmatpush3.bf16.msra.mxu0 %v647_v27  ;;  %559 = vmatprep.mubr.msk.f32.mxu0 %vm718_vm1, %v719_v45 }
  0x26   :  { %645 = vmatpush1.bf16.msra.mxu1 %v644_v26  ;;  %649 = vmatprep.subr.bf16.mxu0 %v716_v4  ;;  %p700_p4 = pnand %p699_p3, %p693_p0 }
  0x27   :  { %667 = vmatprep.subr.bf16.mxu1 %v716_v4 }
  0x29   :  { %244 = vmatmul.mubr.f32.vlgmr.msra.gmra.mrb[0].mxu1 %v100_v1  ;;  %651 = vmatpush3.bf16.msra.mxu0 %v650_v30  ;;  %v674_v1 = vpack.c.bf16 %v352_v0, %v351_v63 }
  0x2a   :  { %652 = vmatprep.subr.bf16.mxu0 %v716_v4  ;;  %584 = vmatprep.mubr.msk.f32.mxu1 %vm718_vm1, %v719_v45 }
  0x2b   :  { %669 = vmatpush3.bf16.msra.mxu1 %v668_v51 }
  0x2c   :  { %670 = vmatprep.subr.bf16.mxu1 %v716_v4 }
  0x2d   :  { %654 = vmatpush3.bf16.msra.mxu0 %v653_v33 }
  0x2e   :  { %655 = vmatprep.subr.bf16.mxu0 %v716_v4 }
  0x2f   :  { %672 = vmatpush3.bf16.msra.mxu1 %v671_v53 }
  0x30   :  { %673 = vmatprep.subr.bf16.mxu1 %v716_v4 }
  0x31   :  { %657 = vmatpush3.bf16.msra.mxu0 %v656_v36 }
  0x32   :  { %658 = vmatprep.subr.bf16.mxu0 %v716_v4 }
  0x33   :  { %675 = vmatpush3.bf16.msra.mxu1 %v674_v1 }
  0x34   :  { %676 = vmatprep.subr.bf16.mxu1 %v716_v4 }
  0x35   :  { %660 = vmatpush3.bf16.msra.mxu0 %v659_v39 }
  0x36   :  { %661 = vmatprep.subr.bf16.mxu0 %v716_v4 }
  0x37   :  { %678 = vmatpush3.bf16.msra.mxu1 %v677_v5 }
  0x38   :  { %679 = vmatprep.subr.bf16.mxu1 %v716_v4 }
  0x39   :  { %663 = vmatpush3.bf16.msra.mxu0 %v662_v42 }
  0x3a   :  { %664 = vmatprep.subr.bf16.mxu0 %v716_v4  ;;  %v463_v4 = vld [vmem:[%s1040_s6] ss:$0 sm:$0xff] }
  0x3b   :  { %681 = vmatpush3.bf16.msra.mxu1 %v680_v8 }
  0x3c   :  { %582 = vmatprep.subr.mxu1 %v719_v45 }
  0x3d   :  { %666 = vmatpush3.bf16.msra.mxu0 %v665_v46 }
  0x3e   :  { %557 = vmatprep.subr.mxu0 %v719_v45 }
  0x3f   :  { %583 = vmatpush3.msk.msra.mxu1 %vm369_vm3, %v357_v9 }
  0x41   :  { %558 = vmatpush3.msra.mxu0 %v264_v47 }
  0xf7   :  { %v498_v54 = vpop.f32.mrb[0].mxu0 }
  0xf8   :  { %v499_v55 = vpop.f32.mrb[1].mxu0 }
  0xf9   :  { %v500_v57 = vadd.f32 %v499_v55, %v498_v54 }
  0xfb   :  { %v176_v58 = vadd.f32 %v500_v57, %v459_v56 }
  0xfc   :  { %v245_v59 = vpop.f32.mrb[0].mxu1 }
  0xfd   :  { %v247_v60 = vpop.f32.mrb[1].mxu1  ;;  %v246_v61 = vadd.f32 %v245_v59, %v176_v58 }
  0xff   :  { %688 = vtanh.f32 %v246_v61 }
 0x109   :  { %v689_v62 = vpop.eup %688 }
 0x10a   :  { %560 = vmatmul.mubr.msk.f32.vlgmr.msra.gmra.mrb[2].mxu0 %vm272_vm2, %v689_v62 }
 0x1dd   :  { %v342_v11 = vpop.f32.mrb[2].mxu0 }
 0x1de   :  { %v343_v12 = vadd.f32 %v461_v10, %v342_v11  ;;  %v561_v13 = vpop.f32.mrb[3].mxu0 }
 0x1e0   :  { %690 = vtanh.f32 %v343_v12 }
 0x1ea   :  { %v691_v14 = vpop.eup %690 }
 0x1eb   :  { %585 = vmatmul.mubr.msk.f32.vlgmr.msra.gmra.mrb[2].mxu1 %vm365_vm4, %v691_v14 }
 0x2be   :  { %v439_v15 = vpop.f32.mrb[2].mxu1 }
 0x2bf   :  { %v440_v16 = vadd.f32 %v463_v4, %v439_v15  ;;  %v586_v17 = vpop.f32.mrb[3].mxu1 }
 0x2c1   :  { %444 = vst.msk [vmem:[#allocation2] sm:$0x3] %vm443_vm5, %v440_v16 }
 0x2c2   :  { %703 = shalt.err (!%p700_p4)
}
 0x2c3   :  { %s704_s17 = scalar_lea.hbm %s1041_s7, 32 }
 0x2c4   :  { %p705_p5 = scmp.ne.s32.totalorder %s1041_s7, %s704_s17  ;;  %p708_p6 = scmp.lt.u32.totalorder %s704_s17, %s1041_s7 }
 0x2c6   :  { %p710_p7 = pnand %p708_p6, %p705_p5 }
 0x2c8   :  { %713 = shalt.err (!%p710_p7)
}
 0x2c9   :  { %454 = dma.vmem_to_hbm [thread:$0]  %s452_s15, 32, %s1041_s7, [#allocation3]  }
 0x2ca   :  { %714 = dma.done.wait [#allocation3], 32  }
 0x2cb   :  { %715 = vsyncadd [#allocation3], 4294967264 }
 0x2cc   :  { %458 = vsyncpa [#allocation3], 1 }

</bundles_post_ra>
